<compile_context>
chip_gen: v7x
topology: tpu7x:2x2x1
jax: 0.10.0
libtpu: 0.0.40
codegen_flags: <defaults>
</compile_context>

<pallas_src>
import jax
import jax.numpy as jnp
from jax.experimental import pallas as pl
from jax.experimental.pallas import tpu as pltpu


def _round_up(x, m):
    return (x + m - 1) // m * m


def build_fused_params(params, max_nbrs, f_nbr, f_agent, f_hop, hidden, n_pow_opts,
                       dtype=jnp.float32, q_pad=128):
    """Fuse + pack the module parameters into two weight slabs (host-side).

    slab_w1 [D1, 512] (rows = input bands, cols = fused outputs):
        rows: [ h | nbr_flat | edge_flat(pad) | agent feats, ones lane (pad) ]
        cols:   0:128  per-edge message pre-activation (block-diag, + b_msg)
              128:256  f_out edge pre-activation        (block-diag, + b_e1)
              256:384  GRU h-side gates [r|z|gi_n|gh_n]  (+ all GRU biases)
              384:416  node-update agent term            (+ b_node)
              416:448  b_a1 (bias-only columns)
    slab_aux [R, 160] (vertically stacked, 8-row aligned sections):
        w_node_m_st [N*H, H], w_am_st [N*H, H]   (neighbour sums on the MXU)
        w_ihx [H, 4H]  GRU x-side gates [r|z|gi_n|0]
        w_hn  [H, N*H+H]  = [ tile(w_ex, N) | w_ax ]
        w_out [N*H+2H, 128]  merged Q head + identity block routing h_new
        b_q   [1, 128]
    """
    f32 = jnp.float32
    N, H, P = max_nbrs, hidden, n_pow_opts
    NH, NP, QP = N * H, N * P, q_pad

    # Lane-density assumptions of the kernel (see correctness review).
    assert N * H == 128, "kernel assumes N*H == 128 lanes (e.g. N=4, H=32)"
    assert 4 * H == 128, "kernel assumes 4*H == 128 lanes for the GRU gates"
    assert NP + 1 <= QP - H, "edge+agent Q and h_new must share one 128-lane block"

    def p(name):
        return params[name].astype(f32)

    # ---------------- W1 ----------------
    r_h = 0
    r_n = H
    r_e = r_n + _round_up(N * f_nbr, 8)
    r_a = r_e + _round_up(N * f_hop, 8)
    r_one = r_a + f_agent                      # constant-one input lane -> biases
    D1 = r_a + _round_up(f_agent + 1, 8)

    C1 = 512
    c_msg, c_ep, c_gh = 0, NH, 2 * NH
    c_ag, c_ba1 = 2 * NH + 4 * H, 2 * NH + 5 * H
    assert c_ba1 + H <= C1

    w1 = jnp.zeros((D1, C1), f32)
    for n in range(N):                         # block-diagonal per-edge projections
        rn, re, cn = r_n + n * f_nbr, r_e + n * f_hop, n * H
        w1 = w1.at[rn:rn + f_nbr, c_msg + cn:c_msg + cn + H].set(p('w_msg_n'))
        w1 = w1.at[re:re + f_hop, c_msg + cn:c_msg + cn + H].set(p('w_msg_e'))
        w1 = w1.at[rn:rn + f_nbr, c_ep + cn:c_ep + cn + H].set(p('w_en'))
        w1 = w1.at[re:re + f_hop, c_ep + cn:c_ep + cn + H].set(p('w_eh'))
    w1 = w1.at[r_one, c_msg:c_msg + NH].set(jnp.tile(p('b_msg')[0], N))
    w1 = w1.at[r_one, c_ep:c_ep + NH].set(jnp.tile(p('b_e1')[0], N))

    w_hh, b_ih, b_hh = p('w_hh'), p('b_ih')[0], p('b_hh')[0]
    w_hh_ext = jnp.concatenate(                # gate layout [r | z | gi_n | gh_n]
        [w_hh[:, 0:H], w_hh[:, H:2 * H], jnp.zeros((H, H), f32), w_hh[:, 2 * H:3 * H]],
        axis=1)
    bias_g = jnp.concatenate(
        [b_ih[0:H] + b_hh[0:H], b_ih[H:2 * H] + b_hh[H:2 * H],
         b_ih[2 * H:3 * H], b_hh[2 * H:3 * H]])
    w1 = w1.at[r_h:r_h + H, c_gh:c_gh + 4 * H].set(w_hh_ext)
    w1 = w1.at[r_one, c_gh:c_gh + 4 * H].set(bias_g)
    w1 = w1.at[r_a:r_a + f_agent, c_ag:c_ag + H].set(p('w_node_a'))
    w1 = w1.at[r_one, c_ag:c_ag + H].set(p('b_node')[0])
    w1 = w1.at[r_one, c_ba1:c_ba1 + H].set(p('b_a1')[0])

    # ---------------- aux slab ----------------
    w_node_m_st = jnp.concatenate([p('w_node_m')] * N, axis=0)              # [NH, H]
    w_am_st = jnp.concatenate([p('w_am')] * N, axis=0)                      # [NH, H]
    w_ih = p('w_ih')
    w_ihx = jnp.concatenate(
        [w_ih[:, 0:H], w_ih[:, H:2 * H], w_ih[:, 2 * H:3 * H], jnp.zeros((H, H), f32)],
        axis=1)                                                              # [H, 4H]
    w_hn = jnp.concatenate([jnp.tile(p('w_ex'), (1, N)), p('w_ax')], axis=1)  # [H, NH+H]
    w_out = jnp.zeros((NH + 2 * H, QP), f32)
    for n in range(N):
        w_out = w_out.at[n * H:(n + 1) * H, n * P:(n + 1) * P].set(p('w_e2'))
    w_out = w_out.at[NH:NH + H, NP].set(p('w_a2')[:, 0])
    w_out = w_out.at[NH + H:NH + 2 * H, QP - H:QP].set(jnp.eye(H, dtype=f32))
    b_q = jnp.zeros((1, QP), f32)
    b_q = b_q.at[0, 0:NP].set(jnp.tile(p('b_e2')[0], N))
    b_q = b_q.at[0, NP].set(p('b_a2')[0, 0])

    aux_sections = [('w_node_m_st', w_node_m_st), ('w_am_st', w_am_st),
                    ('w_ihx', w_ihx), ('w_hn', w_hn), ('w_out', w_out), ('b_q', b_q)]
    aux_w = max(s.shape[1] for _, s in aux_sections)                          # 160
    rows, aux_off, off = [], {}, 0
    for name, mat in aux_sections:
        aux_off[name] = off
        r = _round_up(mat.shape[0], 8)                 # keep sections sublane-aligned
        rows.append(jnp.pad(mat, ((0, r - mat.shape[0]), (0, aux_w - mat.shape[1]))))
        off += r
    slab_aux = jnp.concatenate(rows, axis=0)

    meta = dict(N=N, H=H, P=P, NH=NH, NP=NP, QP=QP,
                f_nbr=f_nbr, f_agent=f_agent, f_hop=f_hop,
                D1=D1, C1=C1, r_h=r_h, r_n=r_n, r_e=r_e, r_a=r_a,
                n_cols=_round_up(N * f_nbr, 8), e_cols=_round_up(N * f_hop, 8),
                a_cols=_round_up(f_agent + 1, 8),
                c_msg=c_msg, c_ep=c_ep, c_gh=c_gh, c_ag=c_ag, c_ba1=c_ba1,
                aux_off=aux_off)
    return w1.astype(dtype), slab_aux.astype(dtype), meta


def _make_kernel(meta):
    H, NH, QP = meta['H'], meta['NH'], meta['QP']
    r_h, r_n, r_e, r_a = meta['r_h'], meta['r_n'], meta['r_e'], meta['r_a']
    nc, ec, ac = meta['n_cols'], meta['e_cols'], meta['a_cols']
    c_msg, c_ep, c_gh, c_ag, c_ba1 = (meta['c_msg'], meta['c_ep'], meta['c_gh'],
                                      meta['c_ag'], meta['c_ba1'])
    ao = meta['aux_off']
    f32 = jnp.float32

    def kernel(h_ref, nbr_ref, edge_ref, agent_ref, w1_ref, aux_ref, out_ref):
        w_dt = w1_ref.dtype
        prec = (jax.lax.Precision.HIGHEST if w_dt == jnp.float32
                else jax.lax.Precision.DEFAULT)

        def mxdot(a, w):                      # MXU matmul, always f32 accumulation
            return jnp.dot(a.astype(w_dt), w, precision=prec,
                           preferred_element_type=f32)

        h_prev = h_ref[...].astype(f32)

        # One fused projection of every host-visible input (+ all biases via the
        # constant-one lane of the agent input).
        m1 = (mxdot(h_ref[...], w1_ref[r_h:r_h + H, :])
              + mxdot(nbr_ref[...], w1_ref[r_n:r_n + nc, :])
              + mxdot(edge_ref[...], w1_ref[r_e:r_e + ec, :])
              + mxdot(agent_ref[...], w1_ref[r_a:r_a + ac, :]))           # [tb, 512]
        pre_msg = m1[:, c_msg:c_msg + NH]
        e_pre = m1[:, c_ep:c_ep + NH]
        gh = m1[:, c_gh:c_gh + 4 * H]
        agent_t = m1[:, c_ag:c_ag + H]
        b_a1_t = m1[:, c_ba1:c_ba1 + H]

        # ---- NodeGNBlock '1hop': tanh message; neighbour-sum folded into the MXU
        msg = jnp.tanh(pre_msg)                                           # [tb, N*H]
        x = jnp.tanh(agent_t + mxdot(
            msg, aux_ref[ao['w_node_m_st']:ao['w_node_m_st'] + NH, 0:H]))

        # ---- GRU cell (PyTorch gate order r, z, n); gh already carries all biases
        gates = gh + mxdot(x, aux_ref[ao['w_ihx']:ao['w_ihx'] + H, 0:4 * H])
        rz = jax.nn.sigmoid(gates[:, 0:2 * H])
        r, z = rz[:, 0:H], rz[:, H:2 * H]
        ng = jnp.tanh(gates[:, 2 * H:3 * H] + r * gates[:, 3 * H:4 * H])
        h_new = (1.0 - z) * ng + z * h_prev                               # [tb, H]

        # ---- EdgeGNBlock f_out: edge hidden, neighbour-sum on MXU, agent hidden
        hn = mxdot(h_new, aux_ref[ao['w_hn']:ao['w_hn'] + H, 0:NH + H])
        e_hid = jnp.tanh(e_pre + hn[:, 0:NH])                             # [tb, N*H]
        a_hid = jnp.tanh(
            hn[:, NH:NH + H] + b_a1_t
            + mxdot(e_hid, aux_ref[ao['w_am_st']:ao['w_am_st'] + NH, 0:H]))

        # ---- single lane-dense store: [edge Q (N*P) | agent Q | 0.. | h_new (H)]
        wo = ao['w_out']
        q = (mxdot(e_hid, aux_ref[wo:wo + NH, 0:QP])
             + mxdot(a_hid, aux_ref[wo + NH:wo + NH + H, 0:QP])
             + mxdot(h_new, aux_ref[wo + NH + H:wo + NH + 2 * H, 0:QP])
             + aux_ref[ao['b_q']:ao['b_q'] + 1, 0:QP].astype(f32))
        out_ref[...] = q.astype(out_ref.dtype)

    return kernel


def adhoc_graph_q_forward(nbr_feat, agent_feat, edge_feat, h, slab_w1, slab_aux, meta,
                          tile_b=None):
    """One fused forward step.  Returns (q_vals [B, N*P+1], h_new [B, H])."""
    B, N, f_nbr = nbr_feat.shape
    H, NP, QP = meta['H'], meta['NP'], meta['QP']
    io_dt = slab_w1.dtype
    assert N == meta['N'] and f_nbr == meta['f_nbr']
    assert edge_feat.shape == (B, N, meta['f_hop'])
    assert agent_feat.shape == (B, meta['f_agent']) and h.shape == (B, H)

    # Layout plumbing only (reshapes + tiny pads) -- no concat round trip via HBM.
    nbr_flat = nbr_feat.reshape(B, N * f_nbr).astype(io_dt)
    edge_flat = edge_feat.reshape(B, N * meta['f_hop']).astype(io_dt)
    agent1 = jnp.concatenate(
        [agent_feat.astype(io_dt), jnp.ones((B, 1), io_dt)], axis=-1)  # ones -> biases
    h_in = h.astype(io_dt)

    def pad_cols(a, w):
        return a if a.shape[1] == w else jnp.pad(a, ((0, 0), (0, w - a.shape[1])))
    nbr_flat = pad_cols(nbr_flat, meta['n_cols'])
    edge_flat = pad_cols(edge_flat, meta['e_cols'])
    agent1 = pad_cols(agent1, meta['a_cols'])

    if tile_b is None:
        # Large tiles amortize the ~0.35us/grid-step overhead; keep >=2 tiles when
        # possible so the "parallel" batch axis can shard across v7x's two TCs.
        bp8 = _round_up(B, 8)
        tile_b = min(1024, bp8)
        if bp8 >= 16 and bp8 // tile_b < 2:
            tile_b = _round_up((bp8 + 1) // 2, 8)
    Bp = _round_up(B, tile_b)

    def pad_rows(a):
        return a if a.shape[0] == Bp else jnp.pad(a, ((0, Bp - a.shape[0]), (0, 0)))
    # NOTE: padded rows compute bias-only garbage; they are sliced off below and must
    # stay excluded if h is ever carried in-kernel (input_output_aliases / T-axis TODO).
    inputs = [pad_rows(a) for a in (h_in, nbr_flat, edge_flat, agent1)]

    grid = (Bp // tile_b,)
    act_specs = [pl.BlockSpec((tile_b, a.shape[1]), lambda i: (i, 0)) for a in inputs]
    w_specs = [pl.BlockSpec(slab_w1.shape, lambda i: (0, 0)),     # weights stay resident
               pl.BlockSpec(slab_aux.shape, lambda i: (0, 0))]

    out = pl.pallas_call(
        _make_kernel(meta),
        out_shape=jax.ShapeDtypeStruct((Bp, QP), io_dt),
        grid=grid,
        in_specs=act_specs + w_specs,
        out_specs=pl.BlockSpec((tile_b, QP), lambda i: (i, 0)),
        compiler_params=pltpu.CompilerParams(
            dimension_semantics=("parallel",),
            vmem_limit_bytes=48 * 1024 * 1024),
    )(*inputs, slab_w1, slab_aux)

    q_vals = out[:B, 0:NP + 1]
    h_new = out[:B, QP - H:QP]
    return q_vals, h_new


def reference_forward(nbr_feat, agent_feat, edge_feat, h, params):
    """Pure-JAX reference with identical math (full-f32 precision)."""
    PH = jax.lax.Precision.HIGHEST
    H = h.shape[-1]
    msg = jnp.tanh(jnp.einsum('bnf,fh->bnh', nbr_feat, params['w_msg_n'], precision=PH)
                   + jnp.einsum('bnf,fh->bnh', edge_feat, params['w_msg_e'], precision=PH)
                   + params['b_msg'][None])
    agg = jnp.sum(msg, axis=1)
    x = jnp.tanh(jnp.dot(agent_feat, params['w_node_a'], precision=PH)
                 + jnp.dot(agg, params['w_node_m'], precision=PH) + params['b_node'])
    gi = jnp.dot(x, params['w_ih'], precision=PH) + params['b_ih']
    gh = jnp.dot(h, params['w_hh'], precision=PH) + params['b_hh']
    r = jax.nn.sigmoid(gi[:, :H] + gh[:, :H])
    z = jax.nn.sigmoid(gi[:, H:2 * H] + gh[:, H:2 * H])
    n = jnp.tanh(gi[:, 2 * H:] + r * gh[:, 2 * H:])
    h_new = (1.0 - z) * n + z * h
    x = h_new
    e_hid = jnp.tanh(jnp.einsum('bnf,fh->bnh', nbr_feat, params['w_en'], precision=PH)
                     + jnp.einsum('bnf,fh->bnh', edge_feat, params['w_eh'], precision=PH)
                     + jnp.dot(x, params['w_ex'], precision=PH)[:, None, :]
                     + params['b_e1'][None])
    nbr_out = (jnp.einsum('bnh,hp->bnp', e_hid, params['w_e2'], precision=PH)
               + params['b_e2'][None])
    agg2 = jnp.sum(e_hid, axis=1)
    a_hid = jnp.tanh(jnp.dot(x, params['w_ax'], precision=PH)
                     + jnp.dot(agg2, params['w_am'], precision=PH) + params['b_a1'])
    agent_out = jnp.dot(a_hid, params['w_a2'], precision=PH) + params['b_a2']
    B, N, P = nbr_out.shape
    q_vals = jnp.concatenate([nbr_out.reshape(B, N * P), agent_out], axis=1)
    return q_vals, h_new


def init_params(key, f_nbr, f_agent, f_hop, hidden, n_pow_opts):
    """Deterministic synthetic parameter init (shapes from the module __init__)."""
    ks = jax.random.split(key, 25)
    s = 0.1

    def w(k, shape):
        return s * jax.random.normal(k, shape, dtype=jnp.float32)

    return {
        # NodeGNBlock '1hop': msg MLP over [nbr_feat, edge('hop')_feat] -> H
        'w_msg_n': w(ks[0], (f_nbr, hidden)),
        'w_msg_e': w(ks[1], (f_hop, hidden)),
        'b_msg': w(ks[2], (1, hidden)),
        #                   node MLP over [agent_feat, agg_msg] -> H
        'w_node_a': w(ks[3], (f_agent, hidden)),
        'w_node_m': w(ks[4], (hidden, hidden)),
        'b_node': w(ks[5], (1, hidden)),
        # RnnLayer: GRUCell(H, H)  (weights stored pre-transposed: [in, 3H])
        'w_ih': w(ks[6], (hidden, 3 * hidden)),
        'w_hh': w(ks[7], (hidden, 3 * hidden)),
        'b_ih': w(ks[8], (1, 3 * hidden)),
        'b_hh': w(ks[9], (1, 3 * hidden)),
        # EdgeGNBlock f_out: edge head over [nbr_feat, x, edge_feat] -> H -> n_pow_opts
        'w_en': w(ks[10], (f_nbr, hidden)),
        'w_ex': w(ks[11], (hidden, hidden)),
        'w_eh': w(ks[12], (f_hop, hidden)),
        'b_e1': w(ks[13], (1, hidden)),
        'w_e2': w(ks[14], (hidden, n_pow_opts)),
        'b_e2': w(ks[15], (1, n_pow_opts)),
        #                   agent head over [x, agg_edge_hidden] -> H -> 1
        'w_ax': w(ks[16], (hidden, hidden)),
        'w_am': w(ks[17], (hidden, hidden)),
        'b_a1': w(ks[18], (1, hidden)),
        'w_a2': w(ks[19], (hidden, 1)),
        'b_a2': w(ks[20], (1, 1)),
    }


if __name__ == "__main__":
    # Small shapes consistent with the module (khops=1):
    B, N = 8, 4                       # batch of agents, max_nbrs neighbours each
    F_NBR, F_AGENT, F_HOP = 6, 5, 3   # shared_obs_shape['nbr'/'agent'/'hop']
    H, P = 32, 2                      # critic_hidden_size, n_pow_opts

    key = jax.random.PRNGKey(0)
    k_nbr, k_ag, k_ed, k_p = jax.random.split(key, 4)
    nbr_feat = jax.random.normal(k_nbr, (B, N, F_NBR), dtype=jnp.float32)
    agent_feat = jax.random.normal(k_ag, (B, F_AGENT), dtype=jnp.float32)
    edge_feat = jax.random.normal(k_ed, (B, N, F_HOP), dtype=jnp.float32)
    h0 = jnp.zeros((B, H), dtype=jnp.float32)       # init_hidden(batch_size=B)
    params = init_params(k_p, F_NBR, F_AGENT, F_HOP, H, P)

    w1_f32, aux_f32, meta = build_fused_params(params, N, F_NBR, F_AGENT, F_HOP, H, P)

    # ---- f32 path, two recurrent steps (exercises both the input and GRU-h paths)
    q1, h1 = adhoc_graph_q_forward(nbr_feat, agent_feat, edge_feat, h0,
                                   w1_f32, aux_f32, meta)
    q2, h2 = adhoc_graph_q_forward(nbr_feat, agent_feat, edge_feat, h1,
                                   w1_f32, aux_f32, meta)
    jax.block_until_ready((q1, h1, q2, h2))

    q1_r, h1_r = reference_forward(nbr_feat, agent_feat, edge_feat, h0, params)
    q2_r, h2_r = reference_forward(nbr_feat, agent_feat, edge_feat, h1_r, params)

    assert q1.shape == (B, N * P + 1) and h1.shape == (B, H)
    assert jnp.allclose(q1, q1_r, atol=1e-4), "step-1 q_vals mismatch vs reference"
    assert jnp.allclose(h1, h1_r, atol=1e-4), "step-1 hidden mismatch vs reference"
    assert jnp.allclose(q2, q2_r, atol=1e-4), "step-2 q_vals mismatch vs reference"
    assert jnp.allclose(h2, h2_r, atol=1e-4), "step-2 hidden mismatch vs reference"

    # ---- multi-tile grid path (batch padding + >=2 "parallel" tiles)
    Bl = 300
    kb = jax.random.split(key, 3)
    nbr_l = jax.random.normal(kb[0], (Bl, N, F_NBR), dtype=jnp.float32)
    ag_l = jax.random.normal(kb[1], (Bl, F_AGENT), dtype=jnp.float32)
    ed_l = jax.random.normal(kb[2], (Bl, N, F_HOP), dtype=jnp.float32)
    h0_l = jnp.zeros((Bl, H), dtype=jnp.float32)
    ql, hl = adhoc_graph_q_forward(nbr_l, ag_l, ed_l, h0_l, w1_f32, aux_f32, meta)
    jax.block_until_ready((ql, hl))
    ql_r, hl_r = reference_forward(nbr_l, ag_l, ed_l, h0_l, params)
    assert jnp.allclose(ql, ql_r, atol=1e-4), "large-batch q_vals mismatch vs reference"
    assert jnp.allclose(hl, hl_r, atol=1e-4), "large-batch hidden mismatch vs reference"

    # ---- bf16 weight/activation I/O path (f32 MXU accumulation), looser tolerance
    w1_bf, aux_bf, _ = build_fused_params(params, N, F_NBR, F_AGENT, F_HOP, H, P,
                                          dtype=jnp.bfloat16)
    qb1, hb1 = adhoc_graph_q_forward(nbr_feat, agent_feat, edge_feat, h0,
                                     w1_bf, aux_bf, meta)
    qb2, hb2 = adhoc_graph_q_forward(nbr_feat, agent_feat, edge_feat, hb1,
                                     w1_bf, aux_bf, meta)
    jax.block_until_ready((qb1, qb2))
    assert jnp.allclose(qb1.astype(jnp.float32), q1_r, atol=1e-1), "bf16 step-1 mismatch"
    assert jnp.allclose(qb2.astype(jnp.float32), q2_r, atol=1e-1), "bf16 step-2 mismatch"

    print("KERNEL_OK")
</pallas_src>

<mosaic_0001>
module attributes {stable_mosaic.version = 11 : i64} {
  func.func @kernel(%arg0: i32, %arg1: memref<8x32xf32, #tpu.memory_space<vmem>>, %arg2: memref<8x24xf32, #tpu.memory_space<vmem>>, %arg3: memref<8x16xf32, #tpu.memory_space<vmem>>, %arg4: memref<8x8xf32, #tpu.memory_space<vmem>>, %arg5: memref<80x512xf32, #tpu.memory_space<vmem>>, %arg6: memref<520x160xf32, #tpu.memory_space<vmem>>, %arg7: memref<8x128xf32, #tpu.memory_space<vmem>>) attributes {dimension_semantics = [#tpu.dimension_semantics<parallel>], iteration_bounds = array<i64: 1>, scalar_prefetch = 0 : i64, scratch_operands = 0 : i64, tpu.core_type = #tpu.core_type<tc>, window_params = [{transform_indices = @transform_0, window_bounds = array<i64: 8, 32>}, {transform_indices = @transform_1, window_bounds = array<i64: 8, 24>}, {transform_indices = @transform_2, window_bounds = array<i64: 8, 16>}, {transform_indices = @transform_3, window_bounds = array<i64: 8, 8>}, {pipeline_mode = #tpu.pipeline_mode<synchronous>, transform_indices = @transform_4, window_bounds = array<i64: 80, 512>}, {pipeline_mode = #tpu.pipeline_mode<synchronous>, transform_indices = @transform_5, window_bounds = array<i64: 520, 160>}, {transform_indices = @transform_6, window_bounds = array<i64: 8, 128>}]} {
    %c0 = arith.constant 0 : index
    %c0_0 = arith.constant 0 : index
    %0 = vector.load %arg1[%c0, %c0_0] : memref<8x32xf32, #tpu.memory_space<vmem>>, vector<8x32xf32>
    %c0_1 = arith.constant 0 : index
    %c0_2 = arith.constant 0 : index
    %1 = vector.load %arg1[%c0_1, %c0_2] : memref<8x32xf32, #tpu.memory_space<vmem>>, vector<8x32xf32>
    %c0_3 = arith.constant 0 : index
    %c0_4 = arith.constant 0 : index
    %2 = vector.load %arg5[%c0_3, %c0_4] : memref<80x512xf32, #tpu.memory_space<vmem>>, vector<32x512xf32>
    %cst = arith.constant dense<0.000000e+00> : vector<8x512xf32>
    %3 = tpu.matmul %1, %2, %cst {dimension_numbers = #tpu.dot_dimension_numbers<[1], [0], [0], [1], [0, 0, 1, 1], [], []>, precision = #tpu.contract_precision<fp32>} : vector<8x32xf32>, vector<32x512xf32>, vector<8x512xf32> -> vector<8x512xf32>
    %c0_5 = arith.constant 0 : index
    %c0_6 = arith.constant 0 : index
    %4 = vector.load %arg2[%c0_5, %c0_6] : memref<8x24xf32, #tpu.memory_space<vmem>>, vector<8x24xf32>
    %c32 = arith.constant 32 : index
    %c0_7 = arith.constant 0 : index
    %5 = vector.load %arg5[%c32, %c0_7] : memref<80x512xf32, #tpu.memory_space<vmem>>, vector<24x512xf32>
    %cst_8 = arith.constant dense<0.000000e+00> : vector<8x512xf32>
    %6 = tpu.matmul %4, %5, %cst_8 {dimension_numbers = #tpu.dot_dimension_numbers<[1], [0], [0], [1], [0, 0, 1, 1], [], []>, precision = #tpu.contract_precision<fp32>} : vector<8x24xf32>, vector<24x512xf32>, vector<8x512xf32> -> vector<8x512xf32>
    %7 = arith.addf %3, %6 : vector<8x512xf32>
    %c0_9 = arith.constant 0 : index
    %c0_10 = arith.constant 0 : index
    %8 = vector.load %arg3[%c0_9, %c0_10] : memref<8x16xf32, #tpu.memory_space<vmem>>, vector<8x16xf32>
    %c56 = arith.constant 56 : index
    %c0_11 = arith.constant 0 : index
    %9 = vector.load %arg5[%c56, %c0_11] : memref<80x512xf32, #tpu.memory_space<vmem>>, vector<16x512xf32>
    %cst_12 = arith.constant dense<0.000000e+00> : vector<8x512xf32>
    %10 = tpu.matmul %8, %9, %cst_12 {dimension_numbers = #tpu.dot_dimension_numbers<[1], [0], [0], [1], [0, 0, 1, 1], [], []>, precision = #tpu.contract_precision<fp32>} : vector<8x16xf32>, vector<16x512xf32>, vector<8x512xf32> -> vector<8x512xf32>
    %11 = arith.addf %7, %10 : vector<8x512xf32>
    %c0_13 = arith.constant 0 : index
    %c0_14 = arith.constant 0 : index
    %12 = vector.load %arg4[%c0_13, %c0_14] : memref<8x8xf32, #tpu.memory_space<vmem>>, vector<8x8xf32>
    %c72 = arith.constant 72 : index
    %c0_15 = arith.constant 0 : index
    %13 = vector.load %arg5[%c72, %c0_15] : memref<80x512xf32, #tpu.memory_space<vmem>>, vector<8x512xf32>
    %cst_16 = arith.constant dense<0.000000e+00> : vector<8x512xf32>
    %14 = tpu.matmul %12, %13, %cst_16 {dimension_numbers = #tpu.dot_dimension_numbers<[1], [0], [0], [1], [0, 0, 1, 1], [], []>, precision = #tpu.contract_precision<fp32>} : vector<8x8xf32>, vector<8x512xf32>, vector<8x512xf32> -> vector<8x512xf32>
    %15 = arith.addf %11, %14 : vector<8x512xf32>
    %16 = vector.extract_strided_slice %15 {offsets = [0, 0], sizes = [8, 128], strides = [1, 1]} : vector<8x512xf32> to vector<8x128xf32>
    %17 = vector.extract_strided_slice %15 {offsets = [0, 128], sizes = [8, 128], strides = [1, 1]} : vector<8x512xf32> to vector<8x128xf32>
    %18 = vector.extract_strided_slice %15 {offsets = [0, 256], sizes = [8, 128], strides = [1, 1]} : vector<8x512xf32> to vector<8x128xf32>
    %19 = vector.extract_strided_slice %15 {offsets = [0, 384], sizes = [8, 32], strides = [1, 1]} : vector<8x512xf32> to vector<8x32xf32>
    %20 = vector.extract_strided_slice %15 {offsets = [0, 416], sizes = [8, 32], strides = [1, 1]} : vector<8x512xf32> to vector<8x32xf32>
    %21 = math.tanh %16 : vector<8x128xf32>
    %c0_17 = arith.constant 0 : index
    %c0_18 = arith.constant 0 : index
    %22 = vector.load %arg6[%c0_17, %c0_18] : memref<520x160xf32, #tpu.memory_space<vmem>>, vector<128x32xf32>
    %cst_19 = arith.constant dense<0.000000e+00> : vector<8x32xf32>
    %23 = tpu.matmul %21, %22, %cst_19 {dimension_numbers = #tpu.dot_dimension_numbers<[1], [0], [0], [1], [0, 0, 1, 1], [], []>, precision = #tpu.contract_precision<fp32>} : vector<8x128xf32>, vector<128x32xf32>, vector<8x32xf32> -> vector<8x32xf32>
    %24 = arith.addf %19, %23 : vector<8x32xf32>
    %25 = math.tanh %24 : vector<8x32xf32>
    %c256 = arith.constant 256 : index
    %c0_20 = arith.constant 0 : index
    %26 = vector.load %arg6[%c256, %c0_20] : memref<520x160xf32, #tpu.memory_space<vmem>>, vector<32x128xf32>
    %cst_21 = arith.constant dense<0.000000e+00> : vector<8x128xf32>
    %27 = tpu.matmul %25, %26, %cst_21 {dimension_numbers = #tpu.dot_dimension_numbers<[1], [0], [0], [1], [0, 0, 1, 1], [], []>, precision = #tpu.contract_precision<fp32>} : vector<8x32xf32>, vector<32x128xf32>, vector<8x128xf32> -> vector<8x128xf32>
    %28 = arith.addf %18, %27 : vector<8x128xf32>
    %29 = vector.extract_strided_slice %28 {offsets = [0, 0], sizes = [8, 64], strides = [1, 1]} : vector<8x128xf32> to vector<8x64xf32>
    %30 = arith.negf %29 : vector<8x64xf32>
    %31 = math.exp %30 : vector<8x64xf32>
    %cst_22 = arith.constant 1.000000e+00 : f32
    %32 = vector.broadcast %cst_22 : f32 to vector<8x64xf32>
    %33 = arith.addf %32, %31 : vector<8x64xf32>
    %34 = arith.divf %32, %33 : vector<8x64xf32>
    %35 = vector.extract_strided_slice %34 {offsets = [0, 0], sizes = [8, 32], strides = [1, 1]} : vector<8x64xf32> to vector<8x32xf32>
    %36 = vector.extract_strided_slice %34 {offsets = [0, 32], sizes = [8, 32], strides = [1, 1]} : vector<8x64xf32> to vector<8x32xf32>
    %37 = vector.extract_strided_slice %28 {offsets = [0, 64], sizes = [8, 32], strides = [1, 1]} : vector<8x128xf32> to vector<8x32xf32>
    %38 = vector.extract_strided_slice %28 {offsets = [0, 96], sizes = [8, 32], strides = [1, 1]} : vector<8x128xf32> to vector<8x32xf32>
    %39 = arith.mulf %35, %38 : vector<8x32xf32>
    %40 = arith.addf %37, %39 : vector<8x32xf32>
    %41 = math.tanh %40 : vector<8x32xf32>
    %cst_23 = arith.constant 1.000000e+00 : f32
    %42 = vector.broadcast %cst_23 : f32 to vector<8x32xf32>
    %43 = arith.subf %42, %36 : vector<8x32xf32>
    %44 = arith.mulf %43, %41 : vector<8x32xf32>
    %45 = arith.mulf %36, %0 : vector<8x32xf32>
    %46 = arith.addf %44, %45 : vector<8x32xf32>
    %c288 = arith.constant 288 : index
    %c0_24 = arith.constant 0 : index
    %47 = vector.load %arg6[%c288, %c0_24] : memref<520x160xf32, #tpu.memory_space<vmem>>, vector<32x160xf32>
    %cst_25 = arith.constant dense<0.000000e+00> : vector<8x160xf32>
    %48 = tpu.matmul %46, %47, %cst_25 {dimension_numbers = #tpu.dot_dimension_numbers<[1], [0], [0], [1], [0, 0, 1, 1], [], []>, precision = #tpu.contract_precision<fp32>} : vector<8x32xf32>, vector<32x160xf32>, vector<8x160xf32> -> vector<8x160xf32>
    %49 = vector.extract_strided_slice %48 {offsets = [0, 0], sizes = [8, 128], strides = [1, 1]} : vector<8x160xf32> to vector<8x128xf32>
    %50 = arith.addf %17, %49 : vector<8x128xf32>
    %51 = math.tanh %50 : vector<8x128xf32>
    %52 = vector.extract_strided_slice %48 {offsets = [0, 128], sizes = [8, 32], strides = [1, 1]} : vector<8x160xf32> to vector<8x32xf32>
    %53 = arith.addf %52, %20 : vector<8x32xf32>
    %c128 = arith.constant 128 : index
    %c0_26 = arith.constant 0 : index
    %54 = vector.load %arg6[%c128, %c0_26] : memref<520x160xf32, #tpu.memory_space<vmem>>, vector<128x32xf32>
    %cst_27 = arith.constant dense<0.000000e+00> : vector<8x32xf32>
    %55 = tpu.matmul %51, %54, %cst_27 {dimension_numbers = #tpu.dot_dimension_numbers<[1], [0], [0], [1], [0, 0, 1, 1], [], []>, precision = #tpu.contract_precision<fp32>} : vector<8x128xf32>, vector<128x32xf32>, vector<8x32xf32> -> vector<8x32xf32>
    %56 = arith.addf %53, %55 : vector<8x32xf32>
    %57 = math.tanh %56 : vector<8x32xf32>
    %c320 = arith.constant 320 : index
    %c0_28 = arith.constant 0 : index
    %58 = vector.load %arg6[%c320, %c0_28] : memref<520x160xf32, #tpu.memory_space<vmem>>, vector<128x128xf32>
    %cst_29 = arith.constant dense<0.000000e+00> : vector<8x128xf32>
    %59 = tpu.matmul %51, %58, %cst_29 {dimension_numbers = #tpu.dot_dimension_numbers<[1], [0], [0], [1], [0, 0, 1, 1], [], []>, precision = #tpu.contract_precision<fp32>} : vector<8x128xf32>, vector<128x128xf32>, vector<8x128xf32> -> vector<8x128xf32>
    %c448 = arith.constant 448 : index
    %c0_30 = arith.constant 0 : index
    %60 = vector.load %arg6[%c448, %c0_30] : memref<520x160xf32, #tpu.memory_space<vmem>>, vector<32x128xf32>
    %cst_31 = arith.constant dense<0.000000e+00> : vector<8x128xf32>
    %61 = tpu.matmul %57, %60, %cst_31 {dimension_numbers = #tpu.dot_dimension_numbers<[1], [0], [0], [1], [0, 0, 1, 1], [], []>, precision = #tpu.contract_precision<fp32>} : vector<8x32xf32>, vector<32x128xf32>, vector<8x128xf32> -> vector<8x128xf32>
    %62 = arith.addf %59, %61 : vector<8x128xf32>
    %c480 = arith.constant 480 : index
    %c0_32 = arith.constant 0 : index
    %63 = vector.load %arg6[%c480, %c0_32] : memref<520x160xf32, #tpu.memory_space<vmem>>, vector<32x128xf32>
    %cst_33 = arith.constant dense<0.000000e+00> : vector<8x128xf32>
    %64 = tpu.matmul %46, %63, %cst_33 {dimension_numbers = #tpu.dot_dimension_numbers<[1], [0], [0], [1], [0, 0, 1, 1], [], []>, precision = #tpu.contract_precision<fp32>} : vector<8x32xf32>, vector<32x128xf32>, vector<8x128xf32> -> vector<8x128xf32>
    %65 = arith.addf %62, %64 : vector<8x128xf32>
    %c512 = arith.constant 512 : index
    %c0_34 = arith.constant 0 : index
    %66 = vector.load %arg6[%c512, %c0_34] : memref<520x160xf32, #tpu.memory_space<vmem>>, vector<1x128xf32>
    %67 = vector.broadcast %66 : vector<1x128xf32> to vector<8x128xf32>
    %68 = arith.addf %65, %67 : vector<8x128xf32>
    %c0_35 = arith.constant 0 : index
    %c0_36 = arith.constant 0 : index
    %69 = vector.load %arg7[%c0_35, %c0_36] : memref<8x128xf32, #tpu.memory_space<vmem>>, vector<8x128xf32>
    tpu.vector_store %arg7[%c0_35, %c0_36], %68 {strides = array<i32>} : memref<8x128xf32, #tpu.memory_space<vmem>>, vector<8x128xf32>,
    return
  }
  func.func @transform_0(%arg0: i32) -> (i32, i32) {
    %c0_i32 = arith.constant 0 : i32
    %c0_i32_0 = arith.constant 0 : i32
    return %arg0, %c0_i32 : i32, i32
  }
  func.func @transform_1(%arg0: i32) -> (i32, i32) {
    %c0_i32 = arith.constant 0 : i32
    %c0_i32_0 = arith.constant 0 : i32
    return %arg0, %c0_i32 : i32, i32
  }
  func.func @transform_2(%arg0: i32) -> (i32, i32) {
    %c0_i32 = arith.constant 0 : i32
    %c0_i32_0 = arith.constant 0 : i32
    return %arg0, %c0_i32 : i32, i32
  }
  func.func @transform_3(%arg0: i32) -> (i32, i32) {
    %c0_i32 = arith.constant 0 : i32
    %c0_i32_0 = arith.constant 0 : i32
    return %arg0, %c0_i32 : i32, i32
  }
  func.func @transform_4(%arg0: i32) -> (i32, i32) {
    %c0_i32 = arith.constant 0 : i32
    %c0_i32_0 = arith.constant 0 : i32
    %c0_i32_1 = arith.constant 0 : i32
    return %c0_i32, %c0_i32_0 : i32, i32
  }
  func.func @transform_5(%arg0: i32) -> (i32, i32) {
    %c0_i32 = arith.constant 0 : i32
    %c0_i32_0 = arith.constant 0 : i32
    %c0_i32_1 = arith.constant 0 : i32
    return %c0_i32, %c0_i32_0 : i32, i32
  }
  func.func @transform_6(%arg0: i32) -> (i32, i32) {
    %c0_i32 = arith.constant 0 : i32
    %c0_i32_0 = arith.constant 0 : i32
    return %arg0, %c0_i32 : i32, i32
  }
}

</mosaic_0001>

<bundles_post_ra>
// kernel: tpu_custom_call.1
= control target key start
LH: loop header
LB: loop body
LE: loop exit
PB: predicated region body
PF: predicated region fallthrough
CT: control target
= control target key end

     0   :  { %vm54_vm0 = vcmask 195584   ;;  %v12762_v9 = vmov 0.0   ;;  %s12725_s0 = inlined_call_operand.vmem [shape: f32[8,32], index: 0, kind: input, shape index: {}]   ;;  %s12726_s1 = inlined_call_operand.vmem [shape: f32[8,24], index: 1, kind: input, shape index: {}]   ;;  %s12727_s2 = inlined_call_operand.vmem [shape: f32[8,16], index: 2, kind: input, shape index: {}]   ;;  %s12728_s3 = inlined_call_operand.vmem [shape: f32[8,8], index: 3, kind: input, shape index: {}]   ;;  %s12729_s4 = inlined_call_operand.vmem [shape: f32[80,512], index: 4, kind: input, shape index: {}]   ;;  %s12730_s5 = inlined_call_operand.vmem [shape: f32[520,160], index: 5, kind: input, shape index: {}]   ;;  %s12731_s6 = inlined_call_operand.hbm [shape: f32[8,128], index: 6, kind: output, shape index: {}]  }
   0x1   :  { %v43_v0 = vld [vmem:[%s12729_s4 + $0x88] sm:$0xff]  ;;  %v42_v2 = vld [vmem:[%s12729_s4 + $0x80] sm:$0xff]  ;;  %128 = vmatprep.mubr.f32.mxu0 %v12762_v9  ;;  %645 = vmatprep.mubr.f32.mxu1 %v12762_v9  ;;  %v45_v33 = vld [vmem:[%s12729_s4 + $0x98] sm:$0xff] }
   0x2   :  { %v47_v1 = vld [vmem:[%s12729_s4 + $0xa8] sm:$0xff]  ;;  %v58_v3 = vand.u32 4294901760, %v43_v0  ;;  %v46_v5 = vld [vmem:[%s12729_s4 + $0xa0] sm:$0xff]  ;;  %v60_v6 = vand.u32 4294901760, %v42_v2  ;;  %v49_v36 = vld [vmem:[%s12729_s4 + $0xb8] sm:$0xff]  ;;  %v575_v46 = vand.u32 4294901760, %v45_v33 }
   0x3   :  { %v62_v4 = vand.u32 4294901760, %v47_v1  ;;  %v51_v7 = vld [vmem:[%s12729_s4 + $0xc8] sm:$0xff]  ;;  %v50_v8 = vld [vmem:[%s12729_s4 + $0xc0] sm:$0xff]  ;;  %v64_v10 = vand.u32 4294901760, %v46_v5  ;;  %v44_v37 = vld [vmem:[%s12729_s4 + $0x90] sm:$0xff]  ;;  %v579_v49 = vand.u32 4294901760, %v49_v36 }
   0x4   :  { %v10418_v11 = vand.u32 4294901760, %v51_v7  ;;  %v10420_v12 = vand.u32 4294901760, %v50_v8  ;;  %v41_v13 = vld [vmem:[%s12726_s1] sm:$0xff]  ;;  %v10427_v15 = vsub.f32 %v43_v0, %v58_v3  ;;  %v10431_v17 = vsub.f32 %v42_v2, %v60_v6  ;;  %v48_v42 = vld [vmem:[%s12729_s4 + $0xb0] sm:$0xff]  ;;  %v53_v51 = vld [vmem:[%s12729_s4 + $0xd8] sm:$0xff] }
   0x5   :  { %v10425_v14 = vpack.c.bf16 %v62_v4, %v58_v3  ;;  %v10429_v16 = vsub.f32 %v47_v1, %v62_v4  ;;  %v10433_v18 = vpack.c.bf16 %v64_v10, %v60_v6  ;;  %v10435_v19 = vsub.f32 %v46_v5, %v64_v10  ;;  %v52_v52 = vld [vmem:[%s12729_s4 + $0xd0] sm:$0xff] }
   0x6   :  { %v10438_v20 = vsub.f32 %v50_v8, %v10420_v12  ;;  %v56_v21 = vsel %vm54_vm0, %v41_v13, 0  ;;  %v142_v23 = vand.u32 4294901760, %v10427_v15  ;;  %v148_v25 = vand.u32 4294901760, %v10431_v17 }
   0x7   :  { %9409 = vmatprep.subr.bf16.mxu0 %v10425_v14  ;;  %v10442_v22 = vand.u32 4294901760, %v56_v21  ;;  %v154_v24 = vand.u32 4294901760, %v10429_v16  ;;  %v160_v26 = vand.u32 4294901760, %v10435_v19  ;;  %v10450_v27 = vsub.f32 %v51_v7, %v10418_v11 }
   0x8   :  { %9411 = vmatpush1.bf16.msra.mxu0 %v10433_v18  ;;  %v172_v28 = vand.u32 4294901760, %v10438_v20  ;;  %v143_v30 = vsub.f32 %v10427_v15, %v142_v23  ;;  %v149_v32 = vsub.f32 %v10431_v17, %v148_v25  ;;  %v577_v50 = vand.u32 4294901760, %v44_v37 }
   0x9   :  { %67 = vmatprep.subr.mxu0 %v10418_v11  ;;  %v10455_v29 = vsub.f32 %v56_v21, %v10442_v22  ;;  %v155_v31 = vsub.f32 %v10429_v16, %v154_v24  ;;  %v161_v34 = vsub.f32 %v10435_v19, %v160_v26  ;;  %v166_v35 = vand.u32 4294901760, %v10450_v27 }
   0xa   :  { %v144_v39 = vand.u32 4294901760, %v143_v30  ;;  %v150_v41 = vand.u32 4294901760, %v149_v32  ;;  %v173_v45 = vsub.f32 %v10438_v20, %v172_v28  ;;  %v10500_v55 = vsub.f32 %v45_v33, %v575_v46 }
   0xb   :  { %v10480_v38 = vand.u32 4294901760, %v10455_v29  ;;  %v156_v40 = vand.u32 4294901760, %v155_v31  ;;  %v162_v43 = vand.u32 4294901760, %v161_v34  ;;  %v167_v44 = vsub.f32 %v10450_v27, %v166_v35 }
   0xc   :  { %69 = vmatpush1.msra.mxu0 %v10420_v12  ;;  %v581_v56 = vand.u32 4294901760, %v48_v42  ;;  %v10502_v58 = vpack.c.bf16 %v579_v49, %v575_v46  ;;  %v10504_v59 = vsub.f32 %v49_v36, %v579_v49  ;;  %v10506_v60 = vsub.f32 %v44_v37, %v577_v50 }
   0xd   :  { %v132_v47 = vsub.f32 %v10455_v29, %v10480_v38  ;;  %v9412_v48 = vpack.c.bf16 %v156_v40, %v144_v39  ;;  %v9414_v53 = vpack.c.bf16 %v162_v43, %v150_v41  ;;  %v168_v54 = vand.u32 4294901760, %v167_v44 }
   0xf   :  { %v133_v57 = vand.u32 4294901760, %v132_v47  ;;  %9413 = vmatprep.subr.bf16.mxu0 %v9412_v48 }
  0x10   :  { %11 = vsyncpa [#allocation3], 0  ;;  %v10508_v61 = vpack.c.bf16 %v581_v56, %v577_v50  ;;  %v10510_v62 = vsub.f32 %v48_v42, %v581_v56  ;;  %v10512_v63 = vand.u32 4294901760, %v53_v51  ;;  %v10514_v0 = vand.u32 4294901760, %v52_v52  ;;  %9433 = vmatprep.subr.bf16.mxu1 %v10502_v58  ;;  %v26_v48 = vld [vmem:[%s12729_s4 + $0x8] sm:$0xff]  ;;  %s10359_s18 = smov 32  }
  0x11   :  { %134 = vmatmul.mubr.f32.vlgmr.msra.gmra.mrb[0].mxu0 %v133_v57  ;;  %v9416_v1 = vpack.c.bf16 %v10429_v16, %v10427_v15  ;;  %v659_v2 = vand.u32 4294901760, %v10500_v55  ;;  %v671_v3 = vand.u32 4294901760, %v10504_v59  ;;  %v665_v4 = vand.u32 4294901760, %v10506_v60  ;;  %v30_v50 = vld [vmem:[%s12729_s4 + $0x28] sm:$0xff]  ;;  %v29_v15 = vld [vmem:[%s12729_s4 + $0x20] sm:$0xff]  ;;  %s10360_s19 = smov 64  }
  0x12   :  { %9415 = vmatpush1.bf16.msra.mxu0 %v9414_v53  ;;  %v174_v5 = vand.u32 4294901760, %v173_v45  ;;  %234 = vmatprep.mubr.f32.mxu0 %v12762_v9  ;;  %v10524_v6 = vsub.f32 %v52_v52, %v10514_v0  ;;  %v677_v7 = vand.u32 4294901760, %v10510_v62  ;;  %v10528_v8 = vsub.f32 %v53_v51, %v10512_v63  ;;  %v25_v51 = vld [vmem:[%s12729_s4] sm:$0xff]  ;;  %v34_v16 = vld [vmem:[%s12729_s4 + $0x48] sm:$0xff]  ;;  %s10362_s7 = smov [#allocation2]  }
  0x13   :  { %169 = vmatprep.subr.mxu0 %v168_v54  ;;  %9435 = vmatpush1.bf16.msra.mxu1 %v10508_v61  ;;  %v660_v10 = vsub.f32 %v10500_v55, %v659_v2  ;;  %v672_v13 = vsub.f32 %v10504_v59, %v671_v3  ;;  %v666_v21 = vsub.f32 %v10506_v60, %v665_v4  ;;  %v1096_v52 = vand.u32 4294901760, %v26_v48  ;;  %v38_v54 = vld [vmem:[%s12729_s4 + $0x68] sm:$0xff] }
  0x14   :  { %584 = vmatprep.subr.mxu1 %v10512_v63  ;;  %v678_v30 = vsub.f32 %v10510_v62, %v677_v7  ;;  %v683_v31 = vand.u32 4294901760, %v10528_v8  ;;  %v689_v32 = vand.u32 4294901760, %v10524_v6  ;;  %v9418_v37 = vpack.c.bf16 %v10435_v19, %v10431_v17  ;;  %v33_v17 = vld [vmem:[%s12729_s4 + $0x40] sm:$0xff] }
  0x15   :  { %v661_v33 = vand.u32 4294901760, %v660_v10  ;;  %v673_v34 = vand.u32 4294901760, %v672_v13  ;;  %v667_v36 = vand.u32 4294901760, %v666_v21  ;;  %v9440_v46 = vpack.c.bf16 %v10504_v59, %v10500_v55  ;;  %v10636_v55 = vld [vmem:[%s12729_s4 + $0x38] sm:$0xff] }
  0x16   :  { %175 = vmatpush1.msra.mxu0 %v174_v5  ;;  %v679_v39 = vand.u32 4294901760, %v678_v30  ;;  %v684_v40 = vsub.f32 %v10528_v8, %v683_v31  ;;  %v690_v42 = vsub.f32 %v10524_v6, %v689_v32  ;;  %v9442_v47 = vpack.c.bf16 %v10510_v62, %v10506_v60  ;;  %v10631_v30 = vld [vmem:[%s12729_s4 + $0x18] sm:$0xff]  ;;  %v10663_v60 = vld [vmem:[%s12729_s4 + $0x10] sm:$0xff] }
  0x17   :  { %9417 = vmatprep.subr.bf16.mxu0 %v9416_v1  ;;  %586 = vmatpush1.msra.mxu1 %v10514_v0  ;;  %v9436_v41 = vpack.c.bf16 %v673_v34, %v661_v33  ;;  %v9424_v49 = vpack.c.bf16 %v154_v24, %v142_v23  ;;  %v24_v23 = vld [vmem:[%s12725_s0] sm:$0xff]  ;;  %vm1092_vm1 = vcmask 261120   ;;  %v9426_v24 = vpack.c.bf16 %v160_v26, %v148_v25  ;;  %v10668_v62 = vld [vmem:[%s12729_s4 + $0x30] sm:$0xff] }
  0x18   :  { %651 = vmatmul.mubr.f32.vlgmr.msra.gmra.mrb[0].mxu1 %v133_v57  ;;  %v9438_v43 = vpack.c.bf16 %v679_v39, %v667_v36  ;;  %v685_v44 = vand.u32 4294901760, %v684_v40  ;;  %v691_v45 = vand.u32 4294901760, %v690_v42  ;;  %v1100_v53 = vand.u32 4294901760, %v30_v50  ;;  %v37_v26 = vld [vmem:[%s12729_s4 + $0x60] sm:$0xff] }
  0x19   :  { %236 = vmatmul.mubr.f32.vlgmr.msra.gmra.mrb[0].mxu0 %v10442_v22  ;;  %9437 = vmatprep.subr.bf16.mxu1 %v9436_v41  ;;  %v1098_v56 = vand.u32 4294901760, %v25_v51  ;;  %v1102_v57 = vand.u32 4294901760, %v29_v15  ;;  %v1104_v1 = vand.u32 4294901760, %v34_v16  ;;  %v1094_v19 = vsel %vm1092_vm1, %v24_v23, 0 }
  0x1a   :  { %9419 = vmatpush1.bf16.msra.mxu0 %v9418_v37  ;;  %318 = vmatprep.mubr.f32.mxu0 %v12762_v9  ;;  %v10611_v25 = vsub.f32 %v26_v48, %v1096_v52  ;;  %v1108_v5 = vand.u32 4294901760, %v38_v54  ;;  %v9448_v10 = vpack.c.bf16 %v671_v3, %v659_v2  ;;  %v1106_v13 = vand.u32 4294901760, %v33_v17 }
  0x1b   :  { %256 = vmatprep.subr.mxu0 %v10450_v27  ;;  %9439 = vmatpush1.bf16.msra.mxu1 %v9438_v43  ;;  %v10626_v21 = vand.u32 4294901760, %v1094_v19  ;;  %v10638_v59 = vsub.f32 %v25_v51, %v1098_v56  ;;  %v10640_v2 = vsub.f32 %v29_v15, %v1102_v57  ;;  %v10643_v27 = vsub.f32 %v34_v16, %v1104_v1  ;;  %v10728_v15 = vld [vmem:[%s12729_s4 + $0x70] sm:$0xff] }
  0x1c   :  { %686 = vmatprep.subr.mxu1 %v685_v44  ;;  %751 = vmatprep.mubr.f32.mxu1 %v12762_v9  ;;  %v10645_v3 = vpack.c.bf16 %v1100_v53, %v1096_v52  ;;  %v9450_v33 = vpack.c.bf16 %v677_v7, %v665_v4  ;;  %v1182_v34 = vand.u32 4294901760, %v10611_v25  ;;  %v10655_v36 = vsub.f32 %v38_v54, %v1108_v5 }
  0x1d   :  { %v1639_v39 = vand.u32 4294901760, %v10631_v30  ;;  %v1643_v40 = vand.u32 4294901760, %v10636_v55  ;;  %v10675_v4 = vsub.f32 %v33_v17, %v1106_v13  ;;  %v10678_v7 = vsub.f32 %v1094_v19, %v10626_v21 }
  0x1e   :  { %259 = vmatpush1.msra.mxu0 %v10438_v20  ;;  %v10671_v20 = vpack.c.bf16 %v1102_v57, %v1098_v56  ;;  %v1188_v42 = vand.u32 4294901760, %v10638_v59  ;;  %v1200_v43 = vand.u32 4294901760, %v10640_v2  ;;  %v1206_v44 = vand.u32 4294901760, %v10643_v27 }
  0x1f   :  { %9421 = vmatprep.subr.bf16.mxu0 %v10425_v14  ;;  %692 = vmatpush1.msra.mxu1 %v691_v45  ;;  %v10694_v45 = vld [vmem:[%s12729_s4 + $0x78] sm:$0xff]  ;;  %v1645_v48 = vand.u32 4294901760, %v10668_v62  ;;  %v10713_v51 = vsub.f32 %v10631_v30, %v1639_v39  ;;  %v10718_v52 = vsub.f32 %v10636_v55, %v1643_v40  ;;  %v10732_v16 = vand.u32 4294901760, %v10678_v7 }
  0x20   :  { %753 = vmatmul.mubr.f32.vlgmr.msra.gmra.mrb[0].mxu1 %v10442_v22  ;;  %9441 = vmatprep.subr.bf16.mxu1 %v9440_v46  ;;  %v1183_v46 = vsub.f32 %v10611_v25, %v1182_v34  ;;  %v12733_v23 = vand.u32 4294901760, %v10675_v4  ;;  %v1189_v54 = vsub.f32 %v10638_v59, %v1188_v42  ;;  %v1653_v17 = vand.u32 4294901760, %v10728_v15 }
  0x21   :  { %321 = vmatmul.mubr.f32.vlgmr.msra.gmra.mrb[0].mxu0 %v10455_v29  ;;  %9443 = vmatpush1.bf16.msra.mxu1 %v9442_v47  ;;  %v1641_v47 = vand.u32 4294901760, %v10663_v60  ;;  %v10758_v57 = vsub.f32 %v10668_v62, %v1645_v48  ;;  %vm2191_vm2 = vcmask 130048   ;;  %vm3186_vm3 = vcmask 64512  }
  0x22   :  { %9423 = vmatpush1.bf16.msra.mxu0 %v10433_v18  ;;  %397 = vmatprep.mubr.f32.mxu0 %v12762_v9  ;;  %v1184_v19 = vand.u32 4294901760, %v1183_v46  ;;  %vm10358_vm4 = vmmov 0  }
  0x23   :  { %336 = vmatprep.subr.mxu0 %v10418_v11  ;;  %773 = vmatprep.subr.mxu1 %v10528_v8  ;;  %v1207_v8 = vsub.f32 %v10643_v27, %v1206_v44  ;;  %v10755_v56 = vsub.f32 %v10663_v60, %v1641_v47 }
  0x24   :  { %835 = vmatprep.mubr.f32.mxu1 %v12762_v9 }
  0x25   :  { %776 = vmatpush1.msra.mxu1 %v10524_v6  ;;  %v1725_v6 = vand.u32 4294901760, %v10713_v51 }
  0x26   :  { %338 = vmatpush1.msra.mxu0 %v10420_v12  ;;  %9445 = vmatprep.subr.bf16.mxu1 %v10502_v58 }
  0x27   :  { %9425 = vmatprep.subr.bf16.mxu0 %v9424_v49 }
  0x28   :  { %838 = vmatmul.mubr.f32.vlgmr.msra.gmra.mrb[0].mxu1 %v10455_v29  ;;  %v10617_v29 = vsub.f32 %v30_v50, %v1100_v53  ;;  %v1218_v50 = vand.u32 4294901760, %v10655_v36  ;;  %v1651_v53 = vand.u32 4294901760, %v10694_v45 }
  0x29   :  { %401 = vmatmul.mubr.f32.vlgmr.msra.gmra.mrb[0].mxu0 %v10480_v38  ;;  %9447 = vmatpush1.bf16.msra.mxu1 %v10508_v61 }
  0x2a   :  { %9427 = vmatpush1.bf16.msra.mxu0 %v9426_v24  ;;  %489 = vmatprep.mubr.f32.mxu0 %v12762_v9  ;;  %v1194_v37 = vand.u32 4294901760, %v10617_v29 }
  0x2b   :  { %426 = vmatprep.subr.mxu0 %v166_v35  ;;  %853 = vmatprep.subr.mxu1 %v10512_v63  ;;  %v1110_v35 = vand.u32 4294901760, %v37_v26 }
  0x2c   :  { %914 = vmatprep.mubr.f32.mxu1 %v12762_v9  ;;  %v1195_v49 = vsub.f32 %v10617_v29, %v1194_v37 }
  0x2d   :  { %855 = vmatpush1.msra.mxu1 %v10514_v0  ;;  %v10681_v41 = vsub.f32 %v37_v26, %v1110_v35 }
  0x2e   :  { %430 = vmatpush1.msra.mxu0 %v172_v28  ;;  %9449 = vmatprep.subr.bf16.mxu1 %v9448_v10  ;;  %v10673_v28 = vpack.c.bf16 %v1108_v5, %v1104_v1  ;;  %v1196_v26 = vand.u32 4294901760, %v1195_v49  ;;  %v1219_v5 = vsub.f32 %v10655_v36, %v1218_v50  ;;  %v1213_v10 = vsub.f32 %v10675_v4, %v12733_v23 }
  0x2f   :  { %9429 = vmatprep.subr.bf16.mxu0 %v10425_v14  ;;  %v10689_v14 = vld [vmem:[%s12729_s4 + $0x58] sm:$0xff]  ;;  %v12735_v49 = vand.u32 4294901760, %v10755_v56 }
  0x30   :  { %918 = vmatmul.mubr.f32.vlgmr.msra.gmra.mrb[0].mxu1 %v10480_v38  ;;  %v10697_v38 = vpack.c.bf16 %v1110_v35, %v1106_v13  ;;  %v1647_v24 = vand.u32 4294901760, %v10689_v14  ;;  %v1172_v13 = vsub.f32 %v10678_v7, %v10732_v16  ;;  %v1190_v35 = vand.u32 4294901760, %v1189_v54 }
  0x31   :  { %491 = vmatmul.mubr.f32.vlgmr.msra.gmra.mrb[0].mxu0 %v10442_v22  ;;  %9451 = vmatpush1.bf16.msra.mxu1 %v9450_v33  ;;  %v12734_v54 = vand.u32 4294901760, %v10758_v57  ;;  %v1220_v23 = vand.u32 4294901760, %v1219_v5 }
  0x32   :  { %9431 = vmatpush1.bf16.msra.mxu0 %v10433_v18  ;;  %567 = vmatprep.mubr.f32.mxu0 %v12762_v9  ;;  %v10723_v18 = vld [vmem:[%s12729_s4 + $0x50] sm:$0xff] }
  0x33   :  { %506 = vmatprep.subr.mxu0 %v10418_v11  ;;  %943 = vmatprep.subr.mxu1 %v683_v31  ;;  %v1201_v11 = vsub.f32 %v10640_v2, %v1200_v43  ;;  %v12732_v31 = vand.u32 4294901760, %v10681_v41  ;;  %v1649_v1 = vand.u32 4294901760, %v10723_v18 }
  0x34   :  { %1006 = vmatprep.mubr.f32.mxu1 %v12762_v9 }
  0x35   :  { %947 = vmatpush1.msra.mxu1 %v689_v32  ;;  %v1737_v32 = vand.u32 4294901760, %v10718_v52  ;;  %v1202_v33 = vand.u32 4294901760, %v1201_v11  ;;  %v1225_v62 = vsub.f32 %v10681_v41, %v12732_v31  ;;  %v10790_v46 = vsub.f32 %v10723_v18, %v1649_v1 }
  0x36   :  { %508 = vmatpush1.msra.mxu0 %v10420_v12  ;;  %9453 = vmatprep.subr.bf16.mxu1 %v10502_v58  ;;  %v10776_v12 = vsub.f32 %v10689_v14, %v1647_v24  ;;  %v10779_v58 = vsub.f32 %v10694_v45, %v1651_v53  ;;  %v10793_v45 = vsub.f32 %v10728_v15, %v1653_v17  ;;  %v1208_v11 = vand.u32 4294901760, %v1207_v8 }
  0x37   :  { %9457 = vmatprep.subr.bf16.mxu0 %v10645_v3  ;;  %v1726_v18 = vsub.f32 %v10713_v51, %v1725_v6  ;;  %v1738_v15 = vsub.f32 %v10718_v52, %v1737_v32  ;;  %v9464_v31 = vpack.c.bf16 %v1196_v26, %v1184_v19  ;;  %v10818_v8 = vpack.c.bf16 %v1645_v48, %v1641_v47 }
  0x38   :  { %1008 = vmatmul.mubr.f32.vlgmr.msra.gmra.mrb[0].mxu1 %v10442_v22  ;;  %v1749_v30 = vand.u32 4294901760, %v10776_v12  ;;  %v1761_v55 = vand.u32 4294901760, %v10779_v58  ;;  %v1732_v19 = vsub.f32 %v10755_v56, %v12735_v49  ;;  %v1755_v26 = vand.u32 4294901760, %v10790_v46 }
  0x39   :  { %569 = vmatmul.mubr.f32.vlgmr.msra.gmra.mrb[0].mxu0 %v10442_v22  ;;  %9455 = vmatpush1.bf16.msra.mxu1 %v10508_v61  ;;  %v10803_v61 = vpack.c.bf16 %v1643_v40, %v1639_v39  ;;  %v1173_v39 = vand.u32 4294901760, %v1172_v13  ;;  %v1214_v40 = vand.u32 4294901760, %v1213_v10  ;;  %v1767_v5 = vand.u32 4294901760, %v10793_v45 }
  0x3a   :  { %9459 = vmatpush1.bf16.msra.mxu0 %v10671_v20  ;;  %1168 = vmatprep.mubr.f32.mxu0 %v12762_v9  ;;  %v9466_v10 = vpack.c.bf16 %v1202_v33, %v1190_v35  ;;  %v1226_v60 = vand.u32 4294901760, %v1225_v62  ;;  %v1727_v47 = vand.u32 4294901760, %v1726_v18  ;;  %v9468_v48 = vpack.c.bf16 %v1220_v23, %v1208_v11 }
  0x3b   :  { %9461 = vmatprep.subr.bf16.mxu0 %v10673_v28  ;;  %1023 = vmatprep.subr.mxu1 %v10512_v63  ;;  %v1744_v63 = vsub.f32 %v10758_v57, %v12734_v54  ;;  %v10833_v13 = vpack.c.bf16 %v1651_v53, %v1647_v24  ;;  %v1750_v54 = vsub.f32 %v10776_v12, %v1749_v30  ;;  %v1733_v23 = vand.u32 4294901760, %v1732_v19 }
  0x3c   :  { %1084 = vmatprep.mubr.f32.mxu1 %v12762_v9  ;;  %v1762_v49 = vsub.f32 %v10779_v58, %v1761_v55  ;;  %v10842_v35 = vpack.c.bf16 %v1653_v17, %v1649_v1  ;;  %v1756_v14 = vsub.f32 %v10790_v46, %v1755_v26  ;;  %v1768_v24 = vsub.f32 %v10793_v45, %v1767_v5 }
  0x3d   :  { %1025 = vmatpush1.msra.mxu1 %v10514_v0  ;;  %v1739_v0 = vand.u32 4294901760, %v1738_v15  ;;  %v9470_v53 = vpack.c.bf16 %v1226_v60, %v1214_v40  ;;  %v9472_v1 = vpack.c.bf16 %v10617_v29, %v10611_v25  ;;  %v1751_v17 = vand.u32 4294901760, %v1750_v54  ;;  %v10877_v60 = vld [vmem:[%s12729_s4 + $0xe8] sm:$0xff] }
  0x3e   :  { %9463 = vmatpush1.bf16.msra.mxu0 %v10697_v38  ;;  %9505 = vmatprep.subr.bf16.mxu1 %v10803_v61  ;;  %v1763_v33 = vand.u32 4294901760, %v1762_v49  ;;  %v1757_v11 = vand.u32 4294901760, %v1756_v14  ;;  %v1769_v18 = vand.u32 4294901760, %v1768_v24  ;;  %v9474_v15 = vpack.c.bf16 %v10640_v2, %v10638_v59  ;;  %v10916_v59 = vld [vmem:[%s12729_s4 + $0xe0] sm:$0xff] }
  0x3f   :  { %9465 = vmatprep.subr.bf16.mxu0 %v9464_v31  ;;  %v1745_v31 = vand.u32 4294901760, %v1744_v63  ;;  %v9476_v40 = vpack.c.bf16 %v10655_v36, %v10643_v27  ;;  %v9478_v54 = vpack.c.bf16 %v10681_v41, %v10675_v4  ;;  %v9520_v63 = vpack.c.bf16 %v10718_v52, %v10713_v51  ;;  %v2187_v2 = vld [vmem:[%s12729_s4 + $0x100] sm:$0xff] }
  0x40   :  { %1086 = vmatmul.mubr.f32.vlgmr.msra.gmra.mrb[0].mxu1 %v10442_v22  ;;  %v9512_v22 = vpack.c.bf16 %v1739_v0, %v1727_v47  ;;  %v9516_v19 = vpack.c.bf16 %v1763_v33, %v1751_v17  ;;  %v9518_v49 = vpack.c.bf16 %v1769_v18, %v1757_v11  ;;  %v10882_v47 = vld [vmem:[%s12729_s4 + $0x108] sm:$0xff]  ;;  %v9526_v0 = vpack.c.bf16 %v10793_v45, %v10790_v46  ;;  %v2182_v27 = vld [vmem:[%s12727_s2] sm:$0xff]  ;;  %s10361_s2 = smov 96  }
  0x41   :  { %1174 = vmatmul.mubr.f32.vlgmr.msra.gmra.mrb[0].mxu0 %v1173_v39  ;;  %9507 = vmatpush1.bf16.msra.mxu1 %v10818_v8  ;;  %v9514_v62 = vpack.c.bf16 %v1745_v31, %v1733_v23  ;;  %v2195_v23 = vand.u32 4294901760, %v10877_v60  ;;  %v2199_v31 = vand.u32 4294901760, %v10882_v47  ;;  %v9490_v14 = vpack.c.bf16 %v1200_v43, %v1188_v42  ;;  %v10934_v43 = vld [vmem:[%s12729_s4 + $0xf8] sm:$0xff] }
  0x42   :  { %9467 = vmatpush1.bf16.msra.mxu0 %v9466_v10  ;;  %1284 = vmatprep.mubr.f32.mxu0 %v12762_v9  ;;  %v9524_v10 = vpack.c.bf16 %v10779_v58, %v10776_v12  ;;  %v9492_v25 = vpack.c.bf16 %v1218_v50, %v1206_v44  ;;  %v12811_v36 = vand.u32 4294901760, %v10675_v4  ;;  %v10939_v44 = vld [vmem:[%s12729_s4 + $0x118] sm:$0xff]  ;;  %v2197_v4 = vand.u32 4294901760, %v10916_v59 }
  0x43   :  { %9469 = vmatprep.subr.bf16.mxu0 %v9468_v48  ;;  %9509 = vmatprep.subr.bf16.mxu1 %v10833_v13  ;;  %v9488_v48 = vpack.c.bf16 %v1194_v37, %v1182_v34  ;;  %v10908_v29 = vsub.f32 %v10877_v60, %v2195_v23  ;;  %v10911_v34 = vsub.f32 %v10882_v47, %v2199_v31  ;;  %v12812_v37 = vand.u32 4294901760, %v10681_v41 }
  0x44   :  { %1711 = vmatprep.mubr.f32.mxu1 %v12762_v9  ;;  %v9536_v41 = vpack.c.bf16 %v1737_v32, %v1725_v6  ;;  %v2193_v50 = vsel %vm2191_vm2, %v2182_v27, 0  ;;  %v12813_v51 = vand.u32 4294901760, %v10755_v56  ;;  %v12814_v52 = vand.u32 4294901760, %v10758_v57 }
  0x45   :  { %9511 = vmatpush1.bf16.msra.mxu1 %v10842_v35  ;;  %v9494_v42 = vpack.c.bf16 %v12812_v37, %v12811_v36  ;;  %v2277_v24 = vand.u32 4294901760, %v10908_v29  ;;  %v10958_v32 = vand.u32 4294901760, %v2193_v50  ;;  %v10961_v17 = vsub.f32 %v10916_v59, %v2197_v4 }
  0x46   :  { %9471 = vmatpush1.bf16.msra.mxu0 %v9470_v53  ;;  %9513 = vmatprep.subr.bf16.mxu1 %v9512_v22  ;;  %v2289_v53 = vand.u32 4294901760, %v10911_v34  ;;  %v2686_v22 = vand.u32 4294901760, %v10934_v43  ;;  %v9538_v6 = vpack.c.bf16 %v12814_v52, %v12813_v51  ;;  %v9542_v58 = vpack.c.bf16 %v1767_v5, %v1755_v26 }
  0x47   :  { %9473 = vmatprep.subr.bf16.mxu0 %v9472_v1  ;;  %v2690_v1 = vand.u32 4294901760, %v10939_v44  ;;  %v2278_v11 = vsub.f32 %v10908_v29, %v2277_v24  ;;  %v10991_v12 = vsub.f32 %v2193_v50, %v10958_v32  ;;  %v3181_v50 = vld [vmem:[%s12728_s3] sm:$0xff] }
  0x48   :  { %1717 = vmatmul.mubr.f32.vlgmr.msra.gmra.mrb[0].mxu1 %v1173_v39  ;;  %v9522_v39 = vpack.c.bf16 %v10758_v57, %v10755_v56  ;;  %v2189_v56 = vld [vmem:[%s12729_s4 + $0x110] sm:$0xff]  ;;  %v9540_v57 = vpack.c.bf16 %v1761_v55, %v1749_v30  ;;  %v2290_v18 = vsub.f32 %v10911_v34, %v2289_v53 }
  0x49   :  { %1286 = vmatmul.mubr.f32.vlgmr.msra.gmra.mrb[0].mxu0 %v10626_v21  ;;  %9515 = vmatpush1.bf16.msra.mxu1 %v9514_v62  ;;  %v2185_v62 = vld [vmem:[%s12729_s4 + $0xf0] sm:$0xff]  ;;  %v2692_v55 = vand.u32 4294901760, %v2189_v56 }
  0x4a   :  { %9475 = vmatpush1.bf16.msra.mxu0 %v9474_v15  ;;  %1372 = vmatprep.mubr.f32.mxu0 %v12762_v9  ;;  %v10984_v15 = vsub.f32 %v10934_v43, %v2686_v22  ;;  %v2688_v30 = vand.u32 4294901760, %v2185_v62  ;;  %v2291_v46 = vand.u32 4294901760, %v2290_v18 }
  0x4b   :  { %9477 = vmatprep.subr.bf16.mxu0 %v9476_v40  ;;  %9517 = vmatprep.subr.bf16.mxu1 %v9516_v19  ;;  %v11002_v19 = vpack.c.bf16 %v2199_v31, %v2195_v23  ;;  %v11040_v31 = vpack.c.bf16 %v2690_v1, %v2686_v22  ;;  %v3182_v22 = vld [vmem:[%s12729_s4 + $0x120] sm:$0xff] }
  0x4c   :  { %1827 = vmatprep.mubr.f32.mxu1 %v12762_v9  ;;  %v2768_v45 = vand.u32 4294901760, %v10984_v15  ;;  %v11010_v5 = vsub.f32 %v2185_v62, %v2688_v30  ;;  %v11045_v59 = vpack.c.bf16 %v2692_v55, %v2688_v30 }
  0x4d   :  { %9519 = vmatpush1.bf16.msra.mxu1 %v9518_v49  ;;  %v2279_v49 = vand.u32 4294901760, %v2278_v11  ;;  %v3184_v11 = vld [vmem:[%s12729_s4 + $0x130] sm:$0xff] }
  0x4e   :  { %9479 = vmatpush1.bf16.msra.mxu0 %v9478_v54  ;;  %9521 = vmatprep.subr.bf16.mxu1 %v9520_v63  ;;  %v11012_v54 = vsub.f32 %v2189_v56, %v2692_v55 }
  0x4f   :  { %9481 = vmatprep.subr.bf16.mxu0 %v10645_v3 }
  0x50   :  { %1829 = vmatmul.mubr.f32.vlgmr.msra.gmra.mrb[0].mxu1 %v10626_v21 }
  0x51   :  { %1375 = vmatmul.mubr.f32.vlgmr.msra.gmra.mrb[0].mxu0 %v10678_v7  ;;  %9523 = vmatpush1.bf16.msra.mxu1 %v9522_v39 }
  0x52   :  { %9483 = vmatpush1.bf16.msra.mxu0 %v10671_v20  ;;  %1453 = vmatprep.mubr.f32.mxu0 %v12762_v9 }
  0x53   :  { %9485 = vmatprep.subr.bf16.mxu0 %v10673_v28  ;;  %9525 = vmatprep.subr.bf16.mxu1 %v9524_v10  ;;  %v9556_v10 = vpack.c.bf16 %v2291_v46, %v2279_v49 }
  0x54   :  { %1915 = vmatprep.mubr.f32.mxu1 %v12762_v9 }
  0x55   :  { %9527 = vmatpush1.bf16.msra.mxu1 %v9526_v0  ;;  %v2786_v0 = vand.u32 4294901760, %v11012_v54 }
  0x56   :  { %9487 = vmatpush1.bf16.msra.mxu0 %v10697_v38  ;;  %9529 = vmatprep.subr.bf16.mxu1 %v10803_v61 }
  0x57   :  { %9489 = vmatprep.subr.bf16.mxu0 %v9488_v48  ;;  %v2787_v27 = vsub.f32 %v11012_v54, %v2786_v0 }
  0x58   :  { %1918 = vmatmul.mubr.f32.vlgmr.msra.gmra.mrb[0].mxu1 %v10678_v7  ;;  %v2201_v7 = vand.u32 4294901760, %v2187_v2 }
  0x59   :  { %1457 = vmatmul.mubr.f32.vlgmr.msra.gmra.mrb[0].mxu0 %v10732_v16  ;;  %9531 = vmatpush1.bf16.msra.mxu1 %v10818_v8 }
  0x5a   :  { %9491 = vmatpush1.bf16.msra.mxu0 %v9490_v14  ;;  %1551 = vmatprep.mubr.f32.mxu0 %v12762_v9  ;;  %v10963_v33 = vsub.f32 %v2187_v2, %v2201_v7 }
  0x5b   :  { %9493 = vmatprep.subr.bf16.mxu0 %v9492_v25  ;;  %9533 = vmatprep.subr.bf16.mxu1 %v10833_v13 }
  0x5c   :  { %1996 = vmatprep.mubr.f32.mxu1 %v12762_v9  ;;  %v2295_v40 = vand.u32 4294901760, %v10963_v33 }
  0x5d   :  { %9535 = vmatpush1.bf16.msra.mxu1 %v10842_v35 }
  0x5e   :  { %9495 = vmatpush1.bf16.msra.mxu0 %v9494_v42  ;;  %9537 = vmatprep.subr.bf16.mxu1 %v9536_v41  ;;  %v2296_v39 = vsub.f32 %v10963_v33, %v2295_v40  ;;  %v2788_v42 = vand.u32 4294901760, %v2787_v27  ;;  %v11218_v27 = vld [vmem:[%s12730_s5 + $0x60] sm:$0xff] }
  0x5f   :  { %9497 = vmatprep.subr.bf16.mxu0 %v10645_v3  ;;  %v10987_v3 = vsub.f32 %v10939_v44, %v2690_v1  ;;  %v9562_v44 = vpack.c.bf16 %v10963_v33, %v10961_v17 }
  0x60   :  { %2000 = vmatmul.mubr.f32.vlgmr.msra.gmra.mrb[0].mxu1 %v10732_v16  ;;  %v2283_v16 = vand.u32 4294901760, %v10961_v17  ;;  %v2297_v23 = vand.u32 4294901760, %v2296_v39 }
  0x61   :  { %1553 = vmatmul.mubr.f32.vlgmr.msra.gmra.mrb[0].mxu0 %v10626_v21  ;;  %9539 = vmatpush1.bf16.msra.mxu1 %v9538_v6  ;;  %v2780_v26 = vand.u32 4294901760, %v10987_v3  ;;  %v3185_v6 = vld [vmem:[%s12729_s4 + $0x138] sm:$0xff] }
  0x62   :  { %9499 = vmatpush1.bf16.msra.mxu0 %v10671_v20  ;;  %1631 = vmatprep.mubr.f32.mxu0 %v12762_v9  ;;  %v11008_v20 = vand.u32 4294901760, %v10991_v12  ;;  %v2284_v63 = vsub.f32 %v10961_v17, %v2283_v16  ;;  %v11117_v17 = vand.u32 4294901760, %v3182_v22  ;;  %v11121_v62 = vand.u32 4294901760, %v3185_v6 }
  0x63   :  { %9501 = vmatprep.subr.bf16.mxu0 %v10673_v28  ;;  %9541 = vmatprep.subr.bf16.mxu1 %v9540_v57  ;;  %v11015_v28 = vpack.c.bf16 %v2201_v7, %v2197_v4  ;;  %v2781_v60 = vsub.f32 %v10987_v3, %v2780_v26  ;;  %v9586_v4 = vpack.c.bf16 %v11012_v54, %v11010_v5 }
  0x64   :  { %2094 = vmatprep.mubr.f32.mxu1 %v12762_v9  ;;  %v2267_v47 = vsub.f32 %v10991_v12, %v11008_v20  ;;  %v2285_v48 = vand.u32 4294901760, %v2284_v63  ;;  %v9568_v7 = vpack.c.bf16 %v2289_v53, %v2277_v24  ;;  %v9592_v24 = vpack.c.bf16 %v2780_v26, %v2768_v45 }
  0x65   :  { %9543 = vmatpush1.bf16.msra.mxu1 %v9542_v58  ;;  %v2782_v25 = vand.u32 4294901760, %v2781_v60  ;;  %v3188_v53 = vsel %vm3186_vm3, %v3181_v50, 0  ;;  %v11128_v57 = vsub.f32 %v3182_v22, %v11117_v17 }
  0x66   :  { %9503 = vmatpush1.bf16.msra.mxu0 %v10697_v38  ;;  %9545 = vmatprep.subr.bf16.mxu1 %v10803_v61  ;;  %v2769_v38 = vsub.f32 %v10984_v15, %v2768_v45  ;;  %v2774_v61 = vand.u32 4294901760, %v11010_v5  ;;  %v9558_v36 = vpack.c.bf16 %v2297_v23, %v2285_v48  ;;  %v11108_v51 = vand.u32 4294901760, %v3188_v53  ;;  %v4129_v48 = vld [vmem:[%s12730_s5 + $0x40] sm:$0xff]  ;;  %v4130_v23 = vld [vmem:[%s12730_s5 + $0x50] sm:$0xff] }
  0x67   :  { %9553 = vmatprep.subr.bf16.mxu0 %v11002_v19  ;;  %v3276_v58 = vand.u32 4294901760, %v11128_v57 }
  0x68   :  { %2096 = vmatmul.mubr.f32.vlgmr.msra.gmra.mrb[0].mxu1 %v10626_v21  ;;  %v2770_v14 = vand.u32 4294901760, %v2769_v38  ;;  %v2775_v2 = vsub.f32 %v11010_v5, %v2774_v61  ;;  %v9594_v52 = vpack.c.bf16 %v2786_v0, %v2774_v61  ;;  %v3258_v56 = vsub.f32 %v3188_v53, %v11108_v51  ;;  %v4128_v38 = vld [vmem:[%s12730_s5 + $0x30] sm:$0xff] }
  0x69   :  { %1633 = vmatmul.mubr.f32.vlgmr.msra.gmra.mrb[0].mxu0 %v10626_v21  ;;  %9547 = vmatpush1.bf16.msra.mxu1 %v10818_v8  ;;  %v2268_v8 = vand.u32 4294901760, %v2267_v47  ;;  %v4151_v0 = vand.u32 4294901760, %v4128_v38 }
  0x6a   :  { %9555 = vmatpush1.bf16.msra.mxu0 %v11015_v28  ;;  %2263 = vmatprep.mubr.f32.mxu0 %v12762_v9  ;;  %v9580_v37 = vpack.c.bf16 %v2782_v25, %v2770_v14 }
  0x6b   :  { %9557 = vmatprep.subr.bf16.mxu0 %v9556_v10  ;;  %9549 = vmatprep.subr.bf16.mxu1 %v10833_v13  ;;  %v9560_v13 = vpack.c.bf16 %v10911_v34, %v10908_v29  ;;  %v3183_v29 = vld [vmem:[%s12729_s4 + $0x128] sm:$0xff]  ;;  %v9570_v34 = vpack.c.bf16 %v2295_v40, %v2283_v16  ;;  %v4127_v10 = vld [vmem:[%s12730_s5 + $0x20] sm:$0xff]  ;;  %s8175_s4 = sshll.u32 %s10362_s7, 4  ;;  %s8176_s4 = int_to_ptr.vmem [resolvable:$true] %s8175_s4 }
  0x6c   :  { %2174 = vmatprep.mubr.f32.mxu1 %v12762_v9  ;;  %v11087_v41 = vand.u32 4294901760, %v3183_v29  ;;  %v4148_v61 = vand.u32 4294901760, %v4127_v10  ;;  %s10332_s8 = scalar_lea.vmem %s8176_s4, 128  ;;  %p10337_p1 = scmp.lt.s32.totalorder %s8176_s4, %s8176_s4 }
  0x6d   :  { %9551 = vmatpush1.bf16.msra.mxu1 %v10842_v35  ;;  %v2776_v35 = vand.u32 4294901760, %v2775_v2  ;;  %v4157_v2 = vand.u32 4294901760, %v4130_v23  ;;  %p10333_p0 = scmp.ne.s32.totalorder %s8176_s4, %s10332_s8  ;;  %p10338_p2 = scmp.lt.s32.totalorder %s10332_s8, %s10332_s8 }
  0x6e   :  { %9577 = vmatprep.subr.bf16.mxu1 %v11040_v31  ;;  %v11106_v1 = vsub.f32 %v3183_v29, %v11087_v41  ;;  %v11208_v25 = vsub.f32 %v4127_v10, %v4148_v61  ;;  %v11245_v29 = vld [vmem:[%s12730_s5 + $0x80] sm:$0xff] }
  0x6f   :  { %v9582_v43 = vpack.c.bf16 %v2788_v42, %v2776_v35  ;;  %p10339_p3 = por %p10338_p2, %p10337_p1 }
  0x70   :  { %2176 = vmatmul.mubr.f32.vlgmr.msra.gmra.mrb[0].mxu1 %v10626_v21  ;;  %v9584_v21 = vpack.c.bf16 %v10987_v3, %v10984_v15  ;;  %v3270_v33 = vand.u32 4294901760, %v11106_v1  ;;  %v11138_v15 = vsub.f32 %v3185_v6, %v11121_v62  ;;  %v11140_v3 = vand.u32 4294901760, %v3258_v56 }
  0x71   :  { %2269 = vmatmul.mubr.f32.vlgmr.msra.gmra.mrb[0].mxu0 %v2268_v8  ;;  %9579 = vmatpush1.bf16.msra.mxu1 %v11045_v59  ;;  %v4249_v35 = vand.u32 4294901760, %v11208_v25  ;;  %p10340_p4 = pnand %p10339_p3, %p10333_p0 }
  0x72   :  { %9559 = vmatpush1.bf16.msra.mxu0 %v9558_v36  ;;  %2359 = vmatprep.mubr.f32.mxu0 %v12762_v9  ;;  %v3271_v18 = vsub.f32 %v11106_v1, %v3270_v33  ;;  %v3735_v55 = vand.u32 4294901760, %v11138_v15  ;;  %v3260_v16 = vsub.f32 %v3258_v56, %v11140_v3  ;;  %v11223_v36 = vld [vmem:[%s12730_s5 + $0x70] sm:$0xff] }
  0x73   :  { %9561 = vmatprep.subr.bf16.mxu0 %v9560_v13  ;;  %2754 = vmatprep.mubr.f32.mxu1 %v12762_v9  ;;  %v4250_v53 = vsub.f32 %v11208_v25, %v4249_v35 }
  0x74   :  { %9581 = vmatprep.subr.bf16.mxu1 %v9580_v37  ;;  %v3272_v30 = vand.u32 4294901760, %v3271_v18  ;;  %v3736_v49 = vsub.f32 %v11138_v15, %v3735_v55  ;;  %v3261_v46 = vand.u32 4294901760, %v3260_v16 }
  0x78   :  { %2760 = vmatmul.mubr.f32.vlgmr.msra.gmra.mrb[0].mxu1 %v2268_v8  ;;  %v11210_v8 = vsub.f32 %v4128_v38, %v4151_v0 }
  0x79   :  { %2361 = vmatmul.mubr.f32.vlgmr.msra.gmra.mrb[0].mxu0 %v10958_v32  ;;  %9583 = vmatpush1.bf16.msra.mxu1 %v9582_v43  ;;  %v12768_v43 = vmov 0.0|0.0  }
  0x7a   :  { %9563 = vmatpush1.bf16.msra.mxu0 %v9562_v44  ;;  %2439 = vmatprep.mubr.f32.mxu0 %v12762_v9  ;;  %v4256_v42 = vand.u32 4294901760, %v11210_v8 }
  0x7b   :  { %9565 = vmatprep.subr.bf16.mxu0 %v11002_v19  ;;  %2850 = vmatprep.mubr.f32.mxu1 %v12762_v9 }
  0x7c   :  { %9585 = vmatprep.subr.bf16.mxu1 %v9584_v21  ;;  %v11238_v21 = vsub.f32 %v4130_v23, %v4157_v2  ;;  %v4257_v22 = vsub.f32 %v11210_v8, %v4256_v42 }
  0x7e   :  { %v4258_v18 = vand.u32 4294901760, %v4257_v22 }
  0x80   :  { %2852 = vmatmul.mubr.f32.vlgmr.msra.gmra.mrb[0].mxu1 %v10958_v32 }
  0x81   :  { %2442 = vmatmul.mubr.f32.vlgmr.msra.gmra.mrb[0].mxu0 %v10991_v12  ;;  %9587 = vmatpush1.bf16.msra.mxu1 %v9586_v4  ;;  %v4160_v4 = vand.u32 4294901760, %v11218_v27 }
  0x82   :  { %9567 = vmatpush1.bf16.msra.mxu0 %v11015_v28  ;;  %2516 = vmatprep.mubr.f32.mxu0 %v12762_v9 }
  0x83   :  { %9569 = vmatprep.subr.bf16.mxu0 %v9568_v7  ;;  %2930 = vmatprep.mubr.f32.mxu1 %v12762_v9  ;;  %v4163_v7 = vand.u32 4294901760, %v11223_v36  ;;  %v11268_v6 = vsub.f32 %v11218_v27, %v4160_v4 }
  0x84   :  { %9589 = vmatprep.subr.bf16.mxu1 %v11040_v31 }
  0x88   :  { %2933 = vmatmul.mubr.f32.vlgmr.msra.gmra.mrb[0].mxu1 %v10991_v12  ;;  %v11142_v12 = vand.u32 4294901760, %v3184_v11 }
  0x89   :  { %2520 = vmatmul.mubr.f32.vlgmr.msra.gmra.mrb[0].mxu0 %v11008_v20  ;;  %9591 = vmatpush1.bf16.msra.mxu1 %v11045_v59 }
  0x8a   :  { %9571 = vmatpush1.bf16.msra.mxu0 %v9570_v34  ;;  %2602 = vmatprep.mubr.f32.mxu0 %v12762_v9  ;;  %v11151_v40 = vsub.f32 %v3184_v11, %v11142_v12  ;;  %v11250_v34 = vld [vmem:[%s12730_s5 + $0x90] sm:$0xff]  ;;  %v4251_v11 = vand.u32 4294901760, %v4250_v53 }
  0x8b   :  { %9573 = vmatprep.subr.bf16.mxu0 %v11002_v19  ;;  %3007 = vmatprep.mubr.f32.mxu1 %v12762_v9  ;;  %v3277_v19 = vsub.f32 %v11128_v57, %v3276_v58 }
  0x8c   :  { %9593 = vmatprep.subr.bf16.mxu1 %v9592_v24  ;;  %v3741_v45 = vand.u32 4294901760, %v11151_v40 }
  0x8d   :  { %v3278_v26 = vand.u32 4294901760, %v3277_v19 }
  0x8e   :  { %v3742_v5 = vsub.f32 %v11151_v40, %v3741_v45 }
  0x90   :  { %3011 = vmatmul.mubr.f32.vlgmr.msra.gmra.mrb[0].mxu1 %v11008_v20  ;;  %v3737_v20 = vand.u32 4294901760, %v3736_v49  ;;  %v3743_v54 = vand.u32 4294901760, %v3742_v5 }
  0x91   :  { %2604 = vmatmul.mubr.f32.vlgmr.msra.gmra.mrb[0].mxu0 %v10958_v32  ;;  %9595 = vmatpush1.bf16.msra.mxu1 %v9594_v52  ;;  %v4270_v52 = vand.u32 4294901760, %v11238_v21 }
  0x92   :  { %9575 = vmatpush1.bf16.msra.mxu0 %v11015_v28  ;;  %2678 = vmatprep.mubr.f32.mxu0 %v12762_v9  ;;  %v4126_v28 = vld [vmem:[%s12730_s5 + $0x10] sm:$0xff] }
  0x93   :  { %3191 = vmatprep.subr.mxu0 %v11087_v41  ;;  %3093 = vmatprep.mubr.f32.mxu1 %v12762_v9  ;;  %v4145_v39 = vand.u32 4294901760, %v4126_v28 }
  0x94   :  { %9597 = vmatprep.subr.bf16.mxu1 %v11040_v31 }
  0x95   :  { %v11197_v47 = vsub.f32 %v4126_v28, %v4145_v39 }
  0x97   :  { %v4242_v14 = vand.u32 4294901760, %v11197_v47 }
  0x98   :  { %3095 = vmatmul.mubr.f32.vlgmr.msra.gmra.mrb[0].mxu1 %v10958_v32 }
  0x99   :  { %2680 = vmatmul.mubr.f32.vlgmr.msra.gmra.mrb[0].mxu0 %v10958_v32  ;;  %9599 = vmatpush1.bf16.msra.mxu1 %v11045_v59  ;;  %v4154_v59 = vand.u32 4294901760, %v4129_v48  ;;  %v4243_v37 = vsub.f32 %v11197_v47, %v4242_v14 }
  0x9a   :  { %3193 = vmatpush1.msra.mxu0 %v11117_v17  ;;  %3256 = vmatprep.mubr.f32.mxu0 %v12762_v9 }
  0x9b   :  { %3273 = vmatprep.subr.mxu0 %v3272_v30  ;;  %3169 = vmatprep.mubr.f32.mxu1 %v12762_v9  ;;  %v11236_v44 = vsub.f32 %v4129_v48, %v4154_v59  ;;  %v4244_v50 = vand.u32 4294901760, %v4243_v37  ;;  %v11302_v16 = vpack.c.bf16 %v4157_v2, %v4154_v59  ;;  %v4138_v37 = vld [vmem:[%s12730_s5 + $0xd0] sm:$0xff] }
  0x9c   :  { %3656 = vmatprep.subr.mxu1 %v11121_v62  ;;  %v4181_v22 = vand.u32 4294901760, %v4138_v37 }
  0xa0   :  { %3171 = vmatmul.mubr.f32.vlgmr.msra.gmra.mrb[0].mxu1 %v10958_v32  ;;  %v4125_v32 = vld [vmem:[%s12730_s5] sm:$0xff] }
  0xa1   :  { %3262 = vmatmul.mubr.f32.vlgmr.msra.gmra.mrb[0].mxu0 %v3261_v46  ;;  %3658 = vmatpush1.msra.mxu1 %v11142_v12  ;;  %v4142_v63 = vand.u32 4294901760, %v4125_v32 }
  0xa2   :  { %3279 = vmatpush1.msra.mxu0 %v3278_v26  ;;  %3342 = vmatprep.mubr.f32.mxu0 %v12762_v9 }
  0xa3   :  { %3352 = vmatprep.subr.mxu0 %v11106_v1  ;;  %3721 = vmatprep.mubr.f32.mxu1 %v12762_v9  ;;  %v11195_v60 = vsub.f32 %v4125_v32, %v4142_v63  ;;  %v11252_v24 = vpack.c.bf16 %v4145_v39, %v4142_v63  ;;  %v4263_v1 = vand.u32 4294901760, %v11236_v44 }
  0xa4   :  { %3738 = vmatprep.subr.mxu1 %v3737_v20 }
  0xa5   :  { %v4235_v31 = vand.u32 4294901760, %v11195_v60 }
  0xa7   :  { %v4236_v13 = vsub.f32 %v11195_v60, %v4235_v31 }
  0xa8   :  { %3727 = vmatmul.mubr.f32.vlgmr.msra.gmra.mrb[0].mxu1 %v3261_v46 }
  0xa9   :  { %3344 = vmatmul.mubr.f32.vlgmr.msra.gmra.mrb[0].mxu0 %v11108_v51  ;;  %3744 = vmatpush1.msra.mxu1 %v3743_v54 }
  0xaa   :  { %3355 = vmatpush1.msra.mxu0 %v11128_v57  ;;  %3418 = vmatprep.mubr.f32.mxu0 %v12762_v9  ;;  %v11280_v57 = vpack.c.bf16 %v4151_v0, %v4148_v61  ;;  %v4135_v61 = vld [vmem:[%s12730_s5 + $0xa0] sm:$0xff]  ;;  %v4136_v0 = vld [vmem:[%s12730_s5 + $0xb0] sm:$0xff] }
  0xab   :  { %3428 = vmatprep.subr.mxu0 %v11087_v41  ;;  %3807 = vmatprep.mubr.f32.mxu1 %v12762_v9  ;;  %v4172_v48 = vand.u32 4294901760, %v4135_v61  ;;  %v4175_v23 = vand.u32 4294901760, %v4136_v0 }
  0xac   :  { %3817 = vmatprep.subr.mxu1 %v11138_v15  ;;  %v4264_v15 = vsub.f32 %v11236_v44, %v4263_v1 }
  0xad   :  { %v11333_v59 = vsub.f32 %v4135_v61, %v4172_v48  ;;  %v11335_v2 = vsub.f32 %v4136_v0, %v4175_v23 }
  0xae   :  { %v4265_v19 = vand.u32 4294901760, %v4264_v15  ;;  %v11353_v15 = vsub.f32 %v4138_v37, %v4181_v22 }
  0xb0   :  { %3809 = vmatmul.mubr.f32.vlgmr.msra.gmra.mrb[0].mxu1 %v11108_v51 }
  0xb1   :  { %3421 = vmatmul.mubr.f32.vlgmr.msra.gmra.mrb[0].mxu0 %v3258_v56  ;;  %3820 = vmatpush1.msra.mxu1 %v11151_v40  ;;  %v9628_v40 = vpack.c.bf16 %v4258_v18, %v4251_v11 }
  0xb2   :  { %3430 = vmatpush1.msra.mxu0 %v11117_v17  ;;  %3493 = vmatprep.mubr.f32.mxu0 %v12762_v9 }
  0xb3   :  { %3506 = vmatprep.subr.mxu0 %v3270_v33  ;;  %3883 = vmatprep.mubr.f32.mxu1 %v12762_v9  ;;  %v4166_v33 = vand.u32 4294901760, %v11245_v29 }
  0xb4   :  { %3893 = vmatprep.subr.mxu1 %v11121_v62 }
  0xb5   :  { %v11294_v30 = vsub.f32 %v11245_v29, %v4166_v33 }
  0xb7   :  { %v4291_v26 = vand.u32 4294901760, %v11294_v30 }
  0xb8   :  { %3886 = vmatmul.mubr.f32.vlgmr.msra.gmra.mrb[0].mxu1 %v3258_v56 }
  0xb9   :  { %3497 = vmatmul.mubr.f32.vlgmr.msra.gmra.mrb[0].mxu0 %v11140_v3  ;;  %3895 = vmatpush1.msra.mxu1 %v11142_v12  ;;  %v4292_v32 = vsub.f32 %v11294_v30, %v4291_v26 }
  0xba   :  { %3510 = vmatpush1.msra.mxu0 %v3276_v58  ;;  %3573 = vmatprep.mubr.f32.mxu0 %v12762_v9 }
  0xbb   :  { %3582 = vmatprep.subr.mxu0 %v11087_v41  ;;  %3958 = vmatprep.mubr.f32.mxu1 %v12762_v9  ;;  %v4237_v41 = vand.u32 4294901760, %v4236_v13  ;;  %v4293_v39 = vand.u32 4294901760, %v4292_v32  ;;  %v4137_v13 = vld [vmem:[%s12730_s5 + $0xc0] sm:$0xff] }
  0xbc   :  { %3971 = vmatprep.subr.mxu1 %v3735_v55  ;;  %v4178_v53 = vand.u32 4294901760, %v4137_v13 }
  0xbd   :  { %v9625_v56 = vpack.c.bf16 %v4244_v50, %v4237_v41  ;;  %v4305_v41 = vand.u32 4294901760, %v11333_v59  ;;  %v4312_v50 = vand.u32 4294901760, %v11335_v2 }
  0xbe   :  { %v11351_v18 = vsub.f32 %v4137_v13, %v4178_v53  ;;  %v11406_v37 = vpack.c.bf16 %v4181_v22, %v4178_v53 }
  0xbf   :  { %v4313_v11 = vsub.f32 %v11335_v2, %v4312_v50 }
  0xc0   :  { %3962 = vmatmul.mubr.f32.vlgmr.msra.gmra.mrb[0].mxu1 %v11140_v3  ;;  %v4271_v3 = vsub.f32 %v11238_v21, %v4270_v52  ;;  %v9667_v53 = vpack.c.bf16 %v11353_v15, %v11351_v18 }
  0xc1   :  { %3575 = vmatmul.mubr.f32.vlgmr.msra.gmra.mrb[0].mxu0 %v11108_v51  ;;  %3975 = vmatpush1.msra.mxu1 %v3741_v45 }
  0xc2   :  { %3584 = vmatpush1.msra.mxu0 %v11117_v17  ;;  %3647 = vmatprep.mubr.f32.mxu0 %v12762_v9  ;;  %v11273_v17 = vsub.f32 %v11223_v36, %v4163_v7  ;;  %v4272_v49 = vand.u32 4294901760, %v4271_v3  ;;  %v4139_v3 = vld [vmem:[%s12730_s5 + $0xe0] sm:$0xff] }
  0xc3   :  { %4038 = vmatprep.mubr.f32.mxu1 %v12762_v9  ;;  %4047 = vmatprep.subr.mxu1 %v11121_v62  ;;  %v4169_v62 = vand.u32 4294901760, %v11250_v34 }
  0xc4   :  { %9600 = vmatprep.subr.bf16.mxu0 %v12768_v43  ;;  %v4284_v58 = vand.u32 4294901760, %v11273_v17 }
  0xc5   :  { %v11299_v55 = vsub.f32 %v11250_v34, %v4169_v62  ;;  %v11384_v27 = vpack.c.bf16 %v4169_v62, %v4166_v33  ;;  %v11401_v33 = vpack.c.bf16 %v4175_v23, %v4172_v48  ;;  %v9664_v23 = vpack.c.bf16 %v11335_v2, %v11333_v59 }
  0xc6   :  { %v4285_v45 = vsub.f32 %v11273_v17, %v4284_v58 }
  0xc7   :  { %v4298_v20 = vand.u32 4294901760, %v11299_v55 }
  0xc8   :  { %4040 = vmatmul.mubr.f32.vlgmr.msra.gmra.mrb[0].mxu1 %v11108_v51  ;;  %v4286_v54 = vand.u32 4294901760, %v4285_v45  ;;  %v4326_v45 = vand.u32 4294901760, %v11353_v15 }
  0xc9   :  { %3649 = vmatmul.mubr.f32.vlgmr.msra.gmra.mrb[0].mxu0 %v11108_v51  ;;  %4049 = vmatpush1.msra.mxu1 %v11142_v12  ;;  %v4277_v12 = vand.u32 4294901760, %v11268_v6  ;;  %v4299_v28 = vsub.f32 %v11299_v55, %v4298_v20 }
  0xca   :  { %4112 = vmatprep.mubr.f32.mxu1 %v12762_v9  ;;  %9624 = vmatprep.subr.bf16.mxu1 %v12768_v43 }
  0xcb   :  { %9602 = vmatpush3.bf16.msra.mxu0 %v11252_v24  ;;  %v4278_v46 = vsub.f32 %v11268_v6, %v4277_v12  ;;  %v4300_v10 = vand.u32 4294901760, %v4299_v28  ;;  %8612 = vmatprep.mubr.msk.f32.mxu0 %vm10358_vm4, %v12762_v9 }
  0xcc   :  { %9603 = vmatprep.subr.bf16.mxu0 %v12768_v43 }
  0xcd   :  { %v4279_v5 = vand.u32 4294901760, %v4278_v46  ;;  %v9637_v38 = vpack.c.bf16 %v4300_v10, %v4293_v39  ;;  %v4319_v46 = vand.u32 4294901760, %v11351_v18 }
  0xcf   :  { %9605 = vmatpush3.bf16.msra.mxu0 %v11280_v57  ;;  %v9634_v63 = vpack.c.bf16 %v4286_v54, %v4279_v5  ;;  %v11367_v54 = vpack.c.bf16 %v4163_v7, %v4160_v4  ;;  %v4320_v28 = vsub.f32 %v11351_v18, %v4319_v46 }
  0xd0   :  { %4114 = vmatmul.mubr.f32.vlgmr.msra.gmra.mrb[0].mxu1 %v11108_v51  ;;  %9606 = vmatprep.subr.bf16.mxu0 %v12768_v43  ;;  %v9631_v51 = vpack.c.bf16 %v4272_v49, %v4265_v19  ;;  %v4314_v49 = vand.u32 4294901760, %v4313_v11 }
  0xd1   :  { %9626 = vmatpush3.bf16.msra.mxu1 %v9625_v56  ;;  %v4306_v56 = vsub.f32 %v11333_v59, %v4305_v41  ;;  %v4321_v36 = vand.u32 4294901760, %v4320_v28  ;;  %8647 = vmatprep.mubr.msk.f32.mxu1 %vm10358_vm4, %v12762_v9  ;;  %v9649_v28 = vpack.c.bf16 %v11197_v47, %v11195_v60  ;;  %v9703_v60 = vpack.c.bf16 %v4270_v52, %v4263_v1  ;;  %v4787_v52 = vld [vmem:[%s12730_s5 + $0x230] sm:$0xff] }
  0xd2   :  { %9627 = vmatprep.subr.bf16.mxu1 %v12768_v43  ;;  %v9706_v47 = vpack.c.bf16 %v4284_v58, %v4277_v12 }
  0xd3   :  { %9608 = vmatpush3.bf16.msra.mxu0 %v11302_v16  ;;  %v4307_v19 = vand.u32 4294901760, %v4306_v56 }
  0xd4   :  { %9609 = vmatprep.subr.bf16.mxu0 %v12768_v43 }
  0xd5   :  { %9629 = vmatpush3.bf16.msra.mxu1 %v9628_v40  ;;  %v4140_v40 = vld [vmem:[%s12730_s5 + $0xf0] sm:$0xff]  ;;  %v9640_v32 = vpack.c.bf16 %v4314_v49, %v4307_v19 }
  0xd6   :  { %9630 = vmatprep.subr.bf16.mxu1 %v12768_v43  ;;  %v4187_v5 = vand.u32 4294901760, %v4140_v40 }
  0xd7   :  { %9611 = vmatpush3.bf16.msra.mxu0 %v11367_v54 }
  0xd8   :  { %v11377_v10 = vsub.f32 %v4140_v40, %v4187_v5  ;;  %9612 = vmatprep.subr.bf16.mxu0 %v12768_v43 }
  0xd9   :  { %9632 = vmatpush3.bf16.msra.mxu1 %v9631_v51  ;;  %v4184_v51 = vand.u32 4294901760, %v4139_v3 }
  0xda   :  { %9633 = vmatprep.subr.bf16.mxu1 %v12768_v43 }
  0xdb   :  { %v11375_v39 = vsub.f32 %v4139_v3, %v4184_v51  ;;  %9614 = vmatpush3.bf16.msra.mxu0 %v11384_v27  ;;  %v11412_v48 = vpack.c.bf16 %v4187_v5, %v4184_v51 }
  0xdc   :  { %9615 = vmatprep.subr.bf16.mxu0 %v12768_v43 }
  0xdd   :  { %9635 = vmatpush3.bf16.msra.mxu1 %v9634_v63  ;;  %v4327_v63 = vsub.f32 %v11353_v15, %v4326_v45  ;;  %v4333_v7 = vand.u32 4294901760, %v11375_v39  ;;  %v9670_v22 = vpack.c.bf16 %v11377_v10, %v11375_v39 }
  0xde   :  { %9636 = vmatprep.subr.bf16.mxu1 %v12768_v43 }
  0xdf   :  { %v4328_v4 = vand.u32 4294901760, %v4327_v63  ;;  %v4334_v29 = vsub.f32 %v11375_v39, %v4333_v7  ;;  %9617 = vmatpush3.bf16.msra.mxu0 %v11401_v33 }
  0xe0   :  { %9618 = vmatprep.subr.bf16.mxu0 %v12768_v43 }
  0xe1   :  { %9638 = vmatpush3.bf16.msra.mxu1 %v9637_v38  ;;  %v4340_v38 = vand.u32 4294901760, %v11377_v10  ;;  %v9643_v61 = vpack.c.bf16 %v4328_v4, %v4321_v36  ;;  %v4335_v62 = vand.u32 4294901760, %v4334_v29  ;;  %v9652_v36 = vpack.c.bf16 %v11210_v8, %v11208_v25 }
  0xe2   :  { %9639 = vmatprep.subr.bf16.mxu1 %v12768_v43  ;;  %v9655_v4 = vpack.c.bf16 %v11238_v21, %v11236_v44  ;;  %v9661_v29 = vpack.c.bf16 %v11299_v55, %v11294_v30  ;;  %v9715_v25 = vpack.c.bf16 %v4326_v45, %v4319_v46  ;;  %v4786_v44 = vld [vmem:[%s12730_s5 + $0x220] sm:$0xff] }
  0xe3   :  { %v4341_v34 = vsub.f32 %v11377_v10, %v4340_v38  ;;  %9620 = vmatpush3.bf16.msra.mxu0 %v11406_v37  ;;  %v9718_v8 = vpack.c.bf16 %v4340_v38, %v4333_v7 }
  0xe4   :  { %9621 = vmatprep.subr.bf16.mxu0 %v12768_v43 }
  0xe5   :  { %9641 = vmatpush3.bf16.msra.mxu1 %v9640_v32  ;;  %v4342_v0 = vand.u32 4294901760, %v4341_v34  ;;  %v9697_v34 = vpack.c.bf16 %v4242_v14, %v4235_v31  ;;  %v9709_v31 = vpack.c.bf16 %v4298_v20, %v4291_v26  ;;  %v9712_v14 = vpack.c.bf16 %v4312_v50, %v4305_v41 }
  0xe6   :  { %9642 = vmatprep.subr.bf16.mxu1 %v12768_v43 }
  0xe7   :  { %v9646_v13 = vpack.c.bf16 %v4342_v0, %v4335_v62  ;;  %9623 = vmatpush3.bf16.msra.mxu0 %v11412_v48 }
  0xe8   :  { %9648 = vmatprep.subr.bf16.mxu0 %v12768_v43 }
  0xe9   :  { %9644 = vmatpush3.bf16.msra.mxu1 %v9643_v61  ;;  %v9658_v61 = vpack.c.bf16 %v11273_v17, %v11268_v6  ;;  %v4798_v6 = vand.u32 4294901760, %v4786_v44  ;;  %v4801_v17 = vand.u32 4294901760, %v4787_v52 }
  0xea   :  { %9645 = vmatprep.subr.bf16.mxu1 %v12768_v43 }
  0xeb   :  { %v4886_v30 = vsub.f32 %v4786_v44, %v4798_v6  ;;  %v4893_v55 = vsub.f32 %v4787_v52, %v4801_v17 }
  0xed   :  { %9647 = vmatpush3.bf16.msra.mxu1 %v9646_v13  ;;  %v4887_v18 = vand.u32 4294901760, %v4886_v30  ;;  %v4894_v15 = vand.u32 4294901760, %v4893_v55  ;;  %v9760_v38 = vpack.c.bf16 %v4893_v55, %v4886_v30 }
  0xee   :  { %9672 = vmatprep.subr.bf16.mxu1 %v12768_v43 }
  0xef   :  { %v4888_v45 = vsub.f32 %v4886_v30, %v4887_v18  ;;  %v9772_v62 = vpack.c.bf16 %v4894_v15, %v4887_v18  ;;  %v5308_v30 = vld [vmem:[%s12730_s5 + $0x258] sm:$0xff] }
  0xf1   :  { %v4889_v39 = vand.u32 4294901760, %v4888_v45 }
 0x19c   :  { %v3650_v56 = vpop.f32.mrb[0].mxu0 }
 0x19d   :  { %10317 = vtanh.f32 %v3650_v56  ;;  %v11422_v11 = vpop.f32.mrb[1].mxu0 }
 0x1a3   :  { %v11424_v3 = vpop.f32.mrb[0].mxu1 }
 0x1a4   :  { %v11426_v40 = vpop.f32.mrb[1].mxu1 }
 0x1a7   :  { %v10318_v19 = vpop.eup %10317 }
 0x1a8   :  { %v11428_v49 = vand.u32 4294901760, %v10318_v19 }
 0x1aa   :  { %8648 = vmatmul.mubr.f32.vlgmr.msra.gmra.mrb[2].mxu1 %v11428_v49  ;;  %v4223_v51 = vsub.f32 %v10318_v19, %v11428_v49 }
 0x1ab   :  { %9674 = vmatpush3.bf16.msra.mxu1 %v11252_v24  ;;  %8717 = vmatprep.mubr.msk.f32.mxu1 %vm10358_vm4, %v12762_v9 }
 0x1ac   :  { %9675 = vmatprep.subr.bf16.mxu1 %v12768_v43  ;;  %v4224_v5 = vand.u32 4294901760, %v4223_v51 }
 0x1ae   :  { %v4225_v32 = vsub.f32 %v4223_v51, %v4224_v5 }
 0x1af   :  { %9677 = vmatpush3.bf16.msra.mxu1 %v11280_v57 }
 0x1b0   :  { %9678 = vmatprep.subr.bf16.mxu1 %v12768_v43  ;;  %v4226_v63 = vand.u32 4294901760, %v4225_v32 }
 0x1b2   :  { %8613 = vmatmul.mubr.f32.vlgmr.msra.gmra.mrb[2].mxu0 %v4226_v63 }
 0x1b3   :  { %9650 = vmatpush3.bf16.msra.mxu0 %v9649_v28  ;;  %9680 = vmatpush3.bf16.msra.mxu1 %v11302_v16 }
 0x1b4   :  { %9651 = vmatprep.subr.bf16.mxu0 %v12768_v43  ;;  %9681 = vmatprep.subr.bf16.mxu1 %v12768_v43 }
 0x1b5   :  { %8682 = vmatprep.mubr.msk.f32.mxu0 %vm10358_vm4, %v12762_v9 }
 0x1b7   :  { %9653 = vmatpush3.bf16.msra.mxu0 %v9652_v36  ;;  %9683 = vmatpush3.bf16.msra.mxu1 %v11367_v54 }
 0x1b8   :  { %9654 = vmatprep.subr.bf16.mxu0 %v12768_v43  ;;  %9684 = vmatprep.subr.bf16.mxu1 %v12768_v43 }
 0x1bb   :  { %9656 = vmatpush3.bf16.msra.mxu0 %v9655_v4  ;;  %9686 = vmatpush3.bf16.msra.mxu1 %v11384_v27 }
 0x1bc   :  { %9657 = vmatprep.subr.bf16.mxu0 %v12768_v43  ;;  %9687 = vmatprep.subr.bf16.mxu1 %v12768_v43 }
 0x1bf   :  { %9659 = vmatpush3.bf16.msra.mxu0 %v9658_v61  ;;  %9689 = vmatpush3.bf16.msra.mxu1 %v11401_v33 }
 0x1c0   :  { %9660 = vmatprep.subr.bf16.mxu0 %v12768_v43  ;;  %9690 = vmatprep.subr.bf16.mxu1 %v12768_v43 }
 0x1c3   :  { %9662 = vmatpush3.bf16.msra.mxu0 %v9661_v29  ;;  %9692 = vmatpush3.bf16.msra.mxu1 %v11406_v37 }
 0x1c4   :  { %9663 = vmatprep.subr.bf16.mxu0 %v12768_v43  ;;  %9693 = vmatprep.subr.bf16.mxu1 %v12768_v43 }
 0x1c7   :  { %9665 = vmatpush3.bf16.msra.mxu0 %v9664_v23  ;;  %9695 = vmatpush3.bf16.msra.mxu1 %v11412_v48 }
 0x1c8   :  { %9666 = vmatprep.subr.bf16.mxu0 %v12768_v43  ;;  %9720 = vmatprep.subr.bf16.mxu1 %v12768_v43 }
 0x1ca   :  { %8718 = vmatmul.mubr.f32.vlgmr.msra.gmra.mrb[4].mxu1 %v4224_v5 }
 0x1cb   :  { %9668 = vmatpush3.bf16.msra.mxu0 %v9667_v53  ;;  %9722 = vmatpush3.bf16.msra.mxu1 %v11252_v24  ;;  %v9700_v24 = vpack.c.bf16 %v4256_v42, %v4249_v35  ;;  %v4784_v35 = vld [vmem:[%s12730_s5 + $0x200] sm:$0xff]  ;;  %v4785_v42 = vld [vmem:[%s12730_s5 + $0x210] sm:$0xff] }
 0x1cc   :  { %9669 = vmatprep.subr.bf16.mxu0 %v12768_v43  ;;  %9723 = vmatprep.subr.bf16.mxu1 %v12768_v43  ;;  %v4792_v21 = vand.u32 4294901760, %v4784_v35  ;;  %v4795_v1 = vand.u32 4294901760, %v4785_v42 }
 0x1cd   :  { %8787 = vmatprep.mubr.msk.f32.mxu1 %vm10358_vm4, %v12762_v9 }
 0x1ce   :  { %v4872_v12 = vsub.f32 %v4784_v35, %v4792_v21  ;;  %v4879_v58 = vsub.f32 %v4785_v42, %v4795_v1 }
 0x1cf   :  { %9671 = vmatpush3.bf16.msra.mxu0 %v9670_v22  ;;  %9725 = vmatpush3.bf16.msra.mxu1 %v11280_v57  ;;  %v11546_v57 = vpack.c.bf16 %v4795_v1, %v4792_v21 }
 0x1d0   :  { %9696 = vmatprep.subr.bf16.mxu0 %v12768_v43  ;;  %9726 = vmatprep.subr.bf16.mxu1 %v12768_v43  ;;  %v4873_v26 = vand.u32 4294901760, %v4872_v12  ;;  %v4880_v20 = vand.u32 4294901760, %v4879_v58  ;;  %v9757_v7 = vpack.c.bf16 %v4879_v58, %v4872_v12 }
 0x1d2   :  { %8683 = vmatmul.mubr.f32.vlgmr.msra.gmra.mrb[4].mxu0 %v4223_v51  ;;  %v4874_v59 = vsub.f32 %v4872_v12, %v4873_v26  ;;  %v4881_v2 = vsub.f32 %v4879_v58, %v4880_v20  ;;  %v5306_v58 = vld [vmem:[%s12730_s5 + $0x248] sm:$0xff] }
 0x1d3   :  { %9698 = vmatpush3.bf16.msra.mxu0 %v9697_v34  ;;  %9728 = vmatpush3.bf16.msra.mxu1 %v11302_v16  ;;  %v11549_v16 = vpack.c.bf16 %v4801_v17, %v4798_v6 }
 0x1d4   :  { %9699 = vmatprep.subr.bf16.mxu0 %v12768_v43  ;;  %9729 = vmatprep.subr.bf16.mxu1 %v12768_v43  ;;  %v4875_v41 = vand.u32 4294901760, %v4874_v59  ;;  %v4882_v50 = vand.u32 4294901760, %v4881_v2 }
 0x1d5   :  { %8752 = vmatprep.mubr.msk.f32.mxu0 %vm10358_vm4, %v12762_v9 }
 0x1d6   :  { %v9751_v46 = vpack.c.bf16 %v4882_v50, %v4875_v41 }
 0x1d7   :  { %9701 = vmatpush3.bf16.msra.mxu0 %v9700_v24  ;;  %9731 = vmatpush3.bf16.msra.mxu1 %v11367_v54  ;;  %v4895_v54 = vsub.f32 %v4893_v55, %v4894_v15  ;;  %v5318_v55 = vand.u32 4294901760, %v5306_v58 }
 0x1d8   :  { %9702 = vmatprep.subr.bf16.mxu0 %v12768_v43  ;;  %9732 = vmatprep.subr.bf16.mxu1 %v12768_v43 }
 0x1d9   :  { %v4896_v10 = vand.u32 4294901760, %v4895_v54  ;;  %v11606_v41 = vsub.f32 %v5306_v58, %v5318_v55  ;;  %v5310_v54 = vld [vmem:[%s12730_s5 + $0x268] sm:$0xff] }
 0x1db   :  { %9704 = vmatpush3.bf16.msra.mxu0 %v9703_v60  ;;  %9734 = vmatpush3.bf16.msra.mxu1 %v11384_v27  ;;  %v9754_v27 = vpack.c.bf16 %v4896_v10, %v4889_v39  ;;  %v5312_v39 = vld [vmem:[%s12730_s5 + $0x278] sm:$0xff]  ;;  %v5326_v10 = vand.u32 4294901760, %v5310_v54 }
 0x1dc   :  { %9705 = vmatprep.subr.bf16.mxu0 %v12768_v43  ;;  %9735 = vmatprep.subr.bf16.mxu1 %v12768_v43 }
 0x1df   :  { %9707 = vmatpush3.bf16.msra.mxu0 %v9706_v47  ;;  %9737 = vmatpush3.bf16.msra.mxu1 %v11401_v33  ;;  %v9769_v33 = vpack.c.bf16 %v4880_v20, %v4873_v26  ;;  %v5305_v26 = vld [vmem:[%s12730_s5 + $0x240] sm:$0xff]  ;;  %v5307_v20 = vld [vmem:[%s12730_s5 + $0x250] sm:$0xff] }
 0x1e0   :  { %9708 = vmatprep.subr.bf16.mxu0 %v12768_v43  ;;  %9738 = vmatprep.subr.bf16.mxu1 %v12768_v43  ;;  %v5320_v59 = vand.u32 4294901760, %v5305_v26 }
 0x1e3   :  { %9710 = vmatpush3.bf16.msra.mxu0 %v9709_v31  ;;  %9740 = vmatpush3.bf16.msra.mxu1 %v11406_v37 }
 0x1e4   :  { %9711 = vmatprep.subr.bf16.mxu0 %v12768_v43  ;;  %9741 = vmatprep.subr.bf16.mxu1 %v12768_v43 }
 0x1e7   :  { %9713 = vmatpush3.bf16.msra.mxu0 %v9712_v14  ;;  %9743 = vmatpush3.bf16.msra.mxu1 %v11412_v48 }
 0x1e8   :  { %9714 = vmatprep.subr.bf16.mxu0 %v12768_v43 }
 0x1ea   :  { %8788 = vmatmul.mubr.f32.vlgmr.msra.gmra.mrb[6].mxu1 %v11428_v49 }
 0x1eb   :  { %9716 = vmatpush3.bf16.msra.mxu0 %v9715_v25  ;;  %5390 = vmatprep.mubr.f32.mxu1 %v12762_v9 }
 0x1ec   :  { %9717 = vmatprep.subr.bf16.mxu0 %v12768_v43 }
 0x1ef   :  { %9719 = vmatpush3.bf16.msra.mxu0 %v9718_v8 }
 0x1f0   :  { %9744 = vmatprep.subr.bf16.mxu0 %v12768_v43 }
 0x1f2   :  { %8753 = vmatmul.mubr.f32.vlgmr.msra.gmra.mrb[6].mxu0 %v11428_v49 }
 0x1f3   :  { %8798 = vmatprep.mubr.msk.f32.mxu0 %vm10358_vm4, %v12762_v9  ;;  %9746 = vmatpush3.bf16.msra.mxu0 %v11546_v57 }
 0x1f4   :  { %9747 = vmatprep.subr.bf16.mxu0 %v12768_v43 }
 0x1f7   :  { %9749 = vmatpush3.bf16.msra.mxu0 %v11549_v16 }
 0x1f8   :  { %9750 = vmatprep.subr.bf16.mxu0 %v12768_v43 }
 0x27d   :  { %v4379_v0 = vpop.f32.mrb[2].mxu1 }
 0x27e   :  { %v8649_v13 = vpop.f32.mrb[3].mxu1 }
 0x285   :  { %v4228_v37 = vpop.f32.mrb[2].mxu0 }
 0x286   :  { %v4380_v48 = vadd.f32 %v4379_v0, %v4228_v37  ;;  %v8614_v23 = vpop.f32.mrb[3].mxu0 }
 0x29d   :  { %v4572_v53 = vpop.f32.mrb[4].mxu1 }
 0x29e   :  { %v8719_v22 = vpop.f32.mrb[5].mxu1 }
 0x2a5   :  { %v4483_v56 = vpop.f32.mrb[4].mxu0 }
 0x2a6   :  { %v4484_v19 = vadd.f32 %v4483_v56, %v4380_v48  ;;  %v8684_v49 = vpop.f32.mrb[5].mxu0  ;;  %v11637_v56 = vsub.f32 %v5310_v54, %v5326_v10  ;;  %v5868_v54 = vld [vmem:[%s12730_s5 + $0x100] sm:$0xff] }
 0x2a8   :  { %v4573_v51 = vadd.f32 %v4572_v53, %v4484_v19 }
 0x2bd   :  { %v4778_v5 = vpop.f32.mrb[6].mxu1 }
 0x2be   :  { %v8789_v32 = vpop.f32.mrb[7].mxu1 }
 0x2c5   :  { %v4691_v28 = vpop.f32.mrb[6].mxu0 }
 0x2c6   :  { %v4692_v63 = vadd.f32 %v4691_v28, %v4573_v51  ;;  %v8754_v36 = vpop.f32.mrb[7].mxu0 }
 0x2c8   :  { %v4779_v4 = vadd.f32 %v4778_v5, %v4692_v63 }
 0x2ca   :  { %v4782_v61 = vadd.f32 %v4779_v4, %v11426_v40  ;;  %v5428_v4 = vand.u32 4294901760, %v11637_v56 }
 0x2cc   :  { %10319 = vtanh.f32 %v4782_v61 }
 0x2d6   :  { %v10320_v29 = vpop.eup %10319 }
 0x2d7   :  { %v4789_v34 = vsel %vm1092_vm1, %v10320_v29, 0 }
 0x2d8   :  { %v4860_v24 = vand.u32 4294901760, %v4789_v34 }
 0x2da   :  { %v4861_v60 = vsub.f32 %v4789_v34, %v4860_v24 }
 0x2dc   :  { %v4862_v47 = vand.u32 4294901760, %v4861_v60 }
 0x2de   :  { %v4863_v31 = vsub.f32 %v4861_v60, %v4862_v47 }
 0x2e0   :  { %v4864_v14 = vand.u32 4294901760, %v4863_v31 }
 0x2e2   :  { %8799 = vmatmul.mubr.f32.vlgmr.msra.gmra.mrb[8].mxu0 %v4864_v14 }
 0x2e3   :  { %9752 = vmatpush3.bf16.msra.mxu0 %v9751_v46  ;;  %8809 = vmatprep.mubr.msk.f32.mxu0 %vm10358_vm4, %v12762_v9  ;;  %v11613_v46 = vsub.f32 %v5305_v26, %v5320_v59 }
 0x2e4   :  { %9753 = vmatprep.subr.bf16.mxu0 %v12768_v43 }
 0x2e5   :  { %v5410_v48 = vand.u32 4294901760, %v11613_v46 }
 0x2e7   :  { %9755 = vmatpush3.bf16.msra.mxu0 %v9754_v27  ;;  %v5330_v27 = vand.u32 4294901760, %v5312_v39  ;;  %v5411_v63 = vsub.f32 %v11613_v46, %v5410_v48 }
 0x2e8   :  { %9756 = vmatprep.subr.bf16.mxu0 %v12768_v43 }
 0x2e9   :  { %v11635_v22 = vpack.c.bf16 %v5330_v27, %v5326_v10  ;;  %v11639_v19 = vsub.f32 %v5312_v39, %v5330_v27  ;;  %v5412_v14 = vand.u32 4294901760, %v5411_v63  ;;  %v5871_v39 = vld [vmem:[%s12730_s5 + $0x130] sm:$0xff] }
 0x2ea   :  { %8810 = vmatmul.mubr.f32.vlgmr.msra.gmra.mrb[8].mxu0 %v4860_v24  ;;  %v5894_v27 = vand.u32 4294901760, %v5871_v39 }
 0x2eb   :  { %9758 = vmatpush3.bf16.msra.mxu0 %v9757_v7  ;;  %8820 = vmatprep.mubr.msk.f32.mxu0 %vm10358_vm4, %v12762_v9  ;;  %v5309_v7 = vld [vmem:[%s12730_s5 + $0x260] sm:$0xff]  ;;  %v5440_v34 = vand.u32 4294901760, %v11639_v19 }
 0x2ec   :  { %9759 = vmatprep.subr.bf16.mxu0 %v12768_v43  ;;  %v5328_v13 = vand.u32 4294901760, %v5309_v7 }
 0x2ee   :  { %v11643_v51 = vsub.f32 %v5309_v7, %v5328_v13 }
 0x2ef   :  { %9761 = vmatpush3.bf16.msra.mxu0 %v9760_v38  ;;  %v5311_v38 = vld [vmem:[%s12730_s5 + $0x270] sm:$0xff] }
 0x2f0   :  { %9762 = vmatprep.subr.bf16.mxu0 %v12768_v43  ;;  %v5332_v37 = vand.u32 4294901760, %v5311_v38 }
 0x2f2   :  { %8821 = vmatmul.mubr.f32.vlgmr.msra.gmra.mrb[8].mxu0 %v4861_v60  ;;  %v11641_v49 = vpack.c.bf16 %v5332_v37, %v5328_v13  ;;  %v11645_v5 = vsub.f32 %v5311_v38, %v5332_v37 }
 0x2f3   :  { %9764 = vmatpush3.bf16.msra.mxu0 %v11546_v57  ;;  %8831 = vmatprep.mubr.msk.f32.mxu0 %vm10358_vm4, %v12762_v9 }
 0x2f4   :  { %9765 = vmatprep.subr.bf16.mxu0 %v12768_v43  ;;  %v5446_v60 = vand.u32 4294901760, %v11645_v5  ;;  %v9802_v26 = vpack.c.bf16 %v11645_v5, %v11643_v51 }
 0x2f7   :  { %9767 = vmatpush3.bf16.msra.mxu0 %v11549_v16 }
 0x2f8   :  { %9768 = vmatprep.subr.bf16.mxu0 %v12768_v43 }
 0x2fa   :  { %8832 = vmatmul.mubr.f32.vlgmr.msra.gmra.mrb[8].mxu0 %v4862_v47 }
 0x2fb   :  { %9770 = vmatpush3.bf16.msra.mxu0 %v9769_v33  ;;  %8842 = vmatprep.mubr.msk.f32.mxu0 %vm10358_vm4, %v12762_v9  ;;  %v5404_v33 = vand.u32 4294901760, %v11606_v41 }
 0x2fc   :  { %9771 = vmatprep.subr.bf16.mxu0 %v12768_v43 }
 0x2fd   :  { %v5405_v32 = vsub.f32 %v11606_v41, %v5404_v33 }
 0x2ff   :  { %9773 = vmatpush3.bf16.msra.mxu0 %v9772_v62  ;;  %v5406_v29 = vand.u32 4294901760, %v5405_v32 }
 0x300   :  { %9774 = vmatprep.subr.bf16.mxu0 %v12768_v43 }
 0x302   :  { %8843 = vmatmul.mubr.f32.vlgmr.msra.gmra.mrb[8].mxu0 %v4860_v24 }
 0x303   :  { %9776 = vmatpush3.bf16.msra.mxu0 %v11546_v57  ;;  %8853 = vmatprep.mubr.msk.f32.mxu0 %vm10358_vm4, %v12762_v9 }
 0x304   :  { %9777 = vmatprep.subr.bf16.mxu0 %v12768_v43 }
 0x307   :  { %9779 = vmatpush3.bf16.msra.mxu0 %v11549_v16  ;;  %v5322_v16 = vand.u32 4294901760, %v5308_v30 }
 0x308   :  { %9828 = vmatprep.subr.bf16.mxu0 %v12768_v43 }
 0x309   :  { %v11604_v2 = vpack.c.bf16 %v5322_v16, %v5318_v55  ;;  %v11608_v50 = vsub.f32 %v5308_v30, %v5322_v16  ;;  %v9800_v16 = vpack.c.bf16 %v11639_v19, %v11637_v56 }
 0x30a   :  { %8854 = vmatmul.mubr.f32.vlgmr.msra.gmra.mrb[8].mxu0 %v4860_v24  ;;  %v5434_v24 = vand.u32 4294901760, %v11643_v51 }
 0x30b   :  { %8888 = vmatprep.mubr.msk.f32.mxu0 %vm10358_vm4, %v12762_v9  ;;  %9781 = vmatprep.subr.bf16.mxu1 %v11604_v2  ;;  %v5416_v62 = vand.u32 4294901760, %v11608_v50  ;;  %v9796_v30 = vpack.c.bf16 %v11608_v50, %v11606_v41  ;;  %v5869_v41 = vld [vmem:[%s12730_s5 + $0x110] sm:$0xff] }
 0x30d   :  { %v5417_v28 = vsub.f32 %v11608_v50, %v5416_v62  ;;  %v5870_v50 = vld [vmem:[%s12730_s5 + $0x120] sm:$0xff] }
 0x30e   :  { %v5891_v10 = vand.u32 4294901760, %v5870_v50 }
 0x30f   :  { %v5418_v31 = vand.u32 4294901760, %v5417_v28  ;;  %v5875_v28 = vld [vmem:[%s12730_s5 + $0x170] sm:$0xff] }
 0x310   :  { %v11694_v13 = vpack.c.bf16 %v5894_v27, %v5891_v10 }
 0x3dd   :  { %v5272_v25 = vpop.f32.mrb[8].mxu0 }
 0x3de   :  { %v5276_v8 = vadd.f32 %v5272_v25, %v11424_v3  ;;  %v8855_v35 = vpop.f32.mrb[9].mxu0  ;;  %v10331_v3 = vld [vmem:[%s12725_s0] sm:$0xff] }
 0x3df   :  { %v5441_v35 = vsub.f32 %v11639_v19, %v5440_v34 }
 0x3e0   :  { %5284 = vrot.lane.b32.xlu0 %v5276_v8, %s10359_s18  ;;  %v8183_v42 = vmul.f32 -1.442695, %v5276_v8 }
 0x3e2   :  { %10321 = vpow2.f32 %v8183_v42  ;;  %v5435_v42 = vsub.f32 %v11643_v51, %v5434_v24 }
 0x3ec   :  { %v10322_v44 = vpop.eup %10321 }
 0x3ed   :  { %v5280_v21 = vadd.f32 1.0, %v10322_v44  ;;  %v5447_v44 = vsub.f32 %v11645_v5, %v5446_v60 }
 0x3ef   :  { %10323 = vrcp.f32 %v5280_v21 }
 0x3f9   :  { %v11583_v1 = vpop.eup %10323 }
 0x3fa   :  { %v5294_v18 = vsub.f32 1.0, %v11583_v1 }
 0x452   :  { %v5285_v52 = vpop.permute.xlu0 %5284 }
 0x453   :  { %v5287_v6 = vmul.f32 %v11583_v1, %v5285_v52  ;;  %v9788_v52 = vpack.c.bf16 %v5418_v31, %v5406_v29  ;;  %v5877_v29 = vld [vmem:[%s12730_s5 + $0x190] sm:$0xff] }
 0x454   :  { %v5879_v31 = vld [vmem:[%s12730_s5 + $0x1b0] sm:$0xff] }
 0x455   :  { %5289 = vrot.lane.b32.xlu0 %v5287_v6, %s10360_s19 }
 0x4c7   :  { %v5290_v17 = vpop.permute.xlu0 %5289 }
 0x4c8   :  { %v5292_v57 = vadd.f32 %v5290_v17, %v5276_v8  ;;  %v5429_v8 = vsub.f32 %v11637_v56, %v5428_v4 }
 0x4ca   :  { %10325 = vtanh.f32 %v5292_v57  ;;  %v5430_v17 = vand.u32 4294901760, %v5429_v8  ;;  %v5442_v57 = vand.u32 4294901760, %v5441_v35  ;;  %v5880_v35 = vld [vmem:[%s12730_s5 + $0x1c0] sm:$0xff] }
 0x4d4   :  { %v10326_v12 = vpop.eup %10325 }
 0x4d5   :  { %5296 = vrot.lane.b32.xlu1 %v10326_v12, %s10361_s2  ;;  %v5436_v12 = vand.u32 4294901760, %v5435_v42  ;;  %v5881_v42 = vld [vmem:[%s12730_s5 + $0x1d0] sm:$0xff] }
 0x4d9   :  { %5300 = vrot.lane.b32.xlu1 %v10331_v3, %s10359_s18  ;;  %v5448_v3 = vand.u32 4294901760, %v5447_v44  ;;  %v5921_v44 = vand.u32 4294901760, %v5880_v35 }
 0x4db   :  { %v9794_v58 = vpack.c.bf16 %v5448_v3, %v5436_v12 }
 0x4dd   :  { %5864 = vrot.lane.b32.xlu1 %v11426_v40, %s10361_s2  ;;  %v5324_v40 = vand.u32 4294901760, %v5307_v20 }
 0x4df   :  { %v11611_v15 = vpack.c.bf16 %v5324_v40, %v5320_v59  ;;  %v11615_v45 = vsub.f32 %v5307_v20, %v5324_v40  ;;  %v9812_v20 = vpack.c.bf16 %v5416_v62, %v5404_v33  ;;  %v9816_v40 = vpack.c.bf16 %v5440_v34, %v5428_v4 }
 0x4e0   :  { %v11689_v62 = vsub.f32 %v5870_v50, %v5891_v10 }
 0x4e1   :  { %9783 = vmatpush1.bf16.msra.mxu1 %v11611_v15  ;;  %v5422_v23 = vand.u32 4294901760, %v11615_v45  ;;  %v9798_v55 = vpack.c.bf16 %v11615_v45, %v11613_v46  ;;  %v5885_v46 = vand.u32 4294901760, %v5868_v54 }
 0x4e2   :  { %9785 = vmatprep.subr.bf16.mxu1 %v11635_v22  ;;  %v12757_v10 = vand.u32 4294901760, %v11689_v62 }
 0x4e3   :  { %v5423_v36 = vsub.f32 %v11615_v45, %v5422_v23  ;;  %v9814_v59 = vpack.c.bf16 %v5422_v23, %v5410_v48  ;;  %v5888_v45 = vand.u32 4294901760, %v5869_v41  ;;  %v11685_v38 = vsub.f32 %v5868_v54, %v5885_v46 }
 0x4e5   :  { %9787 = vmatpush1.bf16.msra.mxu1 %v11641_v49  ;;  %v5424_v25 = vand.u32 4294901760, %v5423_v36  ;;  %v11683_v7 = vpack.c.bf16 %v5888_v45, %v5885_v46  ;;  %v11687_v33 = vsub.f32 %v5869_v41, %v5888_v45  ;;  %v5906_v36 = vand.u32 4294901760, %v5875_v28 }
 0x4e6   :  { %9789 = vmatprep.subr.bf16.mxu1 %v9788_v52 }
 0x4e7   :  { %v9790_v6 = vpack.c.bf16 %v5424_v25, %v5412_v14  ;;  %9830 = vmatpush3.bf16.msra.mxu0 %v11683_v7  ;;  %v5918_v25 = vand.u32 4294901760, %v5879_v31  ;;  %v12758_v54 = vand.u32 4294901760, %v11687_v33 }
 0x4e8   :  { %9831 = vmatprep.subr.bf16.mxu0 %v12768_v43 }
 0x4eb   :  { %9833 = vmatpush3.bf16.msra.mxu0 %v11694_v13 }
 0x4ec   :  { %9834 = vmatprep.subr.bf16.mxu0 %v12768_v43 }
 0x547   :  { %v5297_v0 = vpop.permute.xlu1 %5296 }
 0x548   :  { %v5299_v53 = vmul.f32 %v5297_v0, %v5294_v18  ;;  %v9818_v18 = vpack.c.bf16 %v5446_v60, %v5434_v24  ;;  %v11691_v0 = vsub.f32 %v5871_v39, %v5894_v27  ;;  %v5912_v24 = vand.u32 4294901760, %v5877_v29 }
 0x549   :  { %v5986_v39 = vsub.f32 %v11687_v33, %v12758_v54  ;;  %v12055_v54 = vld [vmem:[%s12730_s5 + $0x330] sm:$0xff] }
 0x54a   :  { %v12755_v27 = vand.u32 4294901760, %v11691_v0 }
 0x54b   :  { %v5301_v61 = vpop.permute.xlu1 %5300 }
 0x54c   :  { %v5303_v47 = vmul.f32 %v11583_v1, %v5301_v61  ;;  %v9792_v1 = vpack.c.bf16 %v5442_v57, %v5430_v17  ;;  %v5876_v61 = vld [vmem:[%s12730_s5 + $0x180] sm:$0xff]  ;;  %v5883_v17 = vld [vmem:[%s12730_s5 + $0x1f0] sm:$0xff] }
 0x54d   :  { %v5909_v34 = vand.u32 4294901760, %v5876_v61 }
 0x54e   :  { %v5304_v21 = vadd.f32 %v5303_v47, %v5299_v53  ;;  %v5878_v47 = vld [vmem:[%s12730_s5 + $0x1a0] sm:$0xff] }
 0x54f   :  { %v11760_v60 = vpack.c.bf16 %v5912_v24, %v5909_v34  ;;  %v5915_v14 = vand.u32 4294901760, %v5878_v47 }
 0x550   :  { %5314 = vrot.lane.b32.xlu0 %v5304_v21, %s10361_s2  ;;  %v5924_v21 = vand.u32 4294901760, %v5881_v42 }
 0x551   :  { %v11770_v8 = vpack.c.bf16 %v5918_v25, %v5915_v14 }
 0x552   :  { %v11780_v52 = vpack.c.bf16 %v5924_v21, %v5921_v44 }
 0x5c2   :  { %v5315_v37 = vpop.permute.xlu0 %5314 }
 0x5c3   :  { %v5316_v48 = vsel %vm1092_vm1, %v5315_v37, 0 }
 0x5c4   :  { %v11700_v23 = vand.u32 4294901760, %v5316_v48 }
 0x5c6   :  { %12815 = vst [vmem:[#allocation5_spill] sm:$0xff] %v11700_v23  ;;  %v11703_v53 = vsub.f32 %v5316_v48, %v11700_v23  ;;  %v5987_v48 = vand.u32 4294901760, %v5986_v39 }
 0x5c8   :  { %v11706_v56 = vand.u32 4294901760, %v11703_v53 }
 0x5ca   :  { %12816 = vst [vmem:[#allocation6_spill] sm:$0xff] %v11706_v56  ;;  %v5394_v19 = vsub.f32 %v11703_v53, %v11706_v56 }
 0x5cc   :  { %v11710_v51 = vand.u32 4294901760, %v5394_v19  ;;  %v5993_v19 = vsub.f32 %v11689_v62, %v12757_v10 }
 0x5ce   :  { %12817 = vst [vmem:[#allocation7_spill] sm:$0xff] %v11710_v51  ;;  %5396 = vmatmul.mubr.f32.vlgmr.msra.gmra.mrb[8].mxu1 %v11710_v51  ;;  %v12107_v51 = vld [vmem:[%s12730_s5 + $0x370] sm:$0xff] }
 0x5cf   :  { %9791 = vmatpush1.bf16.msra.mxu1 %v9790_v6  ;;  %5506 = vmatprep.mubr.f32.mxu1 %v12762_v9  ;;  %v5882_v6 = vld [vmem:[%s12730_s5 + $0x1e0] sm:$0xff] }
 0x5d0   :  { %9793 = vmatprep.subr.bf16.mxu1 %v9792_v1  ;;  %v11794_v1 = vsub.f32 %v5875_v28, %v5906_v36 }
 0x5d3   :  { %9795 = vmatpush1.bf16.msra.mxu1 %v9794_v58  ;;  %v11797_v58 = vsub.f32 %v5876_v61, %v5909_v34 }
 0x5d4   :  { %9797 = vmatprep.subr.bf16.mxu1 %v9796_v30  ;;  %v11799_v30 = vsub.f32 %v5877_v29, %v5912_v24  ;;  %v12748_v24 = vand.u32 4294901760, %v11794_v1 }
 0x5d6   :  { %5508 = vmatmul.mubr.f32.vlgmr.msra.gmra.mrb[8].mxu1 %v11700_v23 }
 0x5d7   :  { %9799 = vmatpush1.bf16.msra.mxu1 %v9798_v55  ;;  %5594 = vmatprep.mubr.f32.mxu1 %v12762_v9  ;;  %v11801_v55 = vsub.f32 %v5878_v47, %v5915_v14  ;;  %v6028_v14 = vsub.f32 %v11794_v1, %v12748_v24  ;;  %v12006_v24 = vld [vmem:[%s12730_s5 + $0x2f0] sm:$0xff] }
 0x5d8   :  { %9801 = vmatprep.subr.bf16.mxu1 %v9800_v16  ;;  %v11803_v16 = vsub.f32 %v5879_v31, %v5918_v25 }
 0x5d9   :  { %v12741_v39 = vand.u32 4294901760, %v11801_v55 }
 0x5db   :  { %9803 = vmatpush1.bf16.msra.mxu1 %v9802_v26  ;;  %v11806_v26 = vsub.f32 %v5880_v35, %v5921_v44  ;;  %v12743_v44 = vand.u32 4294901760, %v11797_v58 }
 0x5dc   :  { %9805 = vmatprep.subr.bf16.mxu1 %v11604_v2 }
 0x5de   :  { %5597 = vmatmul.mubr.f32.vlgmr.msra.gmra.mrb[8].mxu1 %v11703_v53 }
 0x5df   :  { %9807 = vmatpush1.bf16.msra.mxu1 %v11611_v15  ;;  %5675 = vmatprep.mubr.f32.mxu1 %v12762_v9 }
 0x5e0   :  { %9809 = vmatprep.subr.bf16.mxu1 %v11635_v22 }
 0x5e3   :  { %9811 = vmatpush1.bf16.msra.mxu1 %v11641_v49 }
 0x5e4   :  { %9813 = vmatprep.subr.bf16.mxu1 %v9812_v20  ;;  %v11808_v20 = vsub.f32 %v5881_v42, %v5924_v21  ;;  %v6029_v42 = vand.u32 4294901760, %v6028_v14  ;;  %v12742_v21 = vand.u32 4294901760, %v11799_v30 }
 0x5e6   :  { %5679 = vmatmul.mubr.f32.vlgmr.msra.gmra.mrb[8].mxu1 %v11706_v56 }
 0x5e7   :  { %9815 = vmatpush1.bf16.msra.mxu1 %v9814_v59  ;;  %5773 = vmatprep.mubr.f32.mxu1 %v12762_v9  ;;  %v5927_v59 = vand.u32 4294901760, %v5882_v6 }
 0x5e8   :  { %9817 = vmatprep.subr.bf16.mxu1 %v9816_v40  ;;  %v5930_v40 = vand.u32 4294901760, %v5883_v17 }
 0x5e9   :  { %v11814_v50 = vsub.f32 %v5882_v6, %v5927_v59 }
 0x5ea   :  { %v11812_v41 = vpack.c.bf16 %v5930_v40, %v5927_v59  ;;  %v11816_v46 = vsub.f32 %v5883_v17, %v5930_v40  ;;  %v6035_v17 = vsub.f32 %v11797_v58, %v12743_v44  ;;  %v6042_v59 = vsub.f32 %v11799_v30, %v12742_v21 }
 0x5eb   :  { %9819 = vmatpush1.bf16.msra.mxu1 %v9818_v18  ;;  %v12760_v18 = vand.u32 4294901760, %v11685_v38 }
 0x5ec   :  { %9821 = vmatprep.subr.bf16.mxu1 %v11604_v2  ;;  %v5872_v2 = vld [vmem:[%s12730_s5 + $0x140] sm:$0xff]  ;;  %v6036_v40 = vand.u32 4294901760, %v6035_v17  ;;  %v12736_v17 = vand.u32 4294901760, %v11816_v46 }
 0x5ed   :  { %v5897_v5 = vand.u32 4294901760, %v5872_v2  ;;  %v5979_v45 = vsub.f32 %v11685_v38, %v12760_v18  ;;  %v12765_v18 = vand.u32 4294901760, %v12055_v54 }
 0x5ee   :  { %5775 = vmatmul.mubr.f32.vlgmr.msra.gmra.mrb[8].mxu1 %v11700_v23 }
 0x5ef   :  { %9823 = vmatpush1.bf16.msra.mxu1 %v11611_v15  ;;  %5853 = vmatprep.mubr.f32.mxu1 %v12762_v9  ;;  %v5873_v15 = vld [vmem:[%s12730_s5 + $0x150] sm:$0xff]  ;;  %v11788_v57 = vsub.f32 %v5872_v2, %v5897_v5  ;;  %v5980_v37 = vand.u32 4294901760, %v5979_v45  ;;  %v6000_v2 = vsub.f32 %v11691_v0, %v12755_v27  ;;  %v6043_v45 = vand.u32 4294901760, %v6042_v59 }
 0x5f0   :  { %9825 = vmatprep.subr.bf16.mxu1 %v11635_v22  ;;  %v5900_v32 = vand.u32 4294901760, %v5873_v15 }
 0x5f2   :  { %v11740_v22 = vpack.c.bf16 %v5900_v32, %v5897_v5  ;;  %v11790_v12 = vsub.f32 %v5873_v15, %v5900_v32  ;;  %v11834_v15 = vpack.c.bf16 %v5987_v48, %v5980_v37  ;;  %v5994_v5 = vand.u32 4294901760, %v5993_v19 }
 0x5f3   :  { %9827 = vmatpush1.bf16.msra.mxu1 %v11641_v49  ;;  %v5874_v49 = vld [vmem:[%s12730_s5 + $0x160] sm:$0xff]  ;;  %v6001_v32 = vand.u32 4294901760, %v6000_v2  ;;  %v12740_v37 = vand.u32 4294901760, %v11803_v16  ;;  %v9865_v48 = vpack.c.bf16 %v6043_v45, %v6036_v40  ;;  %v6049_v19 = vsub.f32 %v11801_v55, %v12741_v39 }
 0x5f4   :  { %9972 = vmatprep.subr.bf16.mxu1 %v12768_v43  ;;  %9836 = vmatpush3.bf16.msra.mxu0 %v11740_v22  ;;  %v5903_v63 = vand.u32 4294901760, %v5874_v49  ;;  %v12752_v28 = vand.u32 4294901760, %v11790_v12  ;;  %v6084_v45 = vsub.f32 %v11816_v46, %v12736_v17 }
 0x5f5   :  { %9837 = vmatprep.subr.bf16.mxu0 %v12768_v43  ;;  %v6056_v2 = vsub.f32 %v11803_v16, %v12740_v37 }
 0x5f6   :  { %5855 = vmatmul.mubr.f32.vlgmr.msra.gmra.mrb[8].mxu1 %v11700_v23  ;;  %v11750_v4 = vpack.c.bf16 %v5906_v36, %v5903_v63  ;;  %v11792_v3 = vsub.f32 %v5874_v49, %v5903_v63  ;;  %v12753_v49 = vand.u32 4294901760, %v11788_v57  ;;  %v9856_v63 = vpack.c.bf16 %v6001_v32, %v5994_v5 }
 0x5f7   :  { %9074 = vmatprep.mubr.msk.f32.mxu1 %vm10358_vm4, %v12762_v9  ;;  %v6014_v61 = vsub.f32 %v11790_v12, %v12752_v28  ;;  %v6050_v5 = vand.u32 4294901760, %v6049_v19  ;;  %v6057_v32 = vand.u32 4294901760, %v6056_v2  ;;  %v6085_v2 = vand.u32 4294901760, %v6084_v45 }
 0x5f8   :  { %9839 = vmatpush3.bf16.msra.mxu0 %v11750_v4  ;;  %v6007_v36 = vsub.f32 %v11788_v57, %v12753_v49  ;;  %v12749_v34 = vand.u32 4294901760, %v11792_v3  ;;  %v12029_v49 = vld [vmem:[%s12730_s5 + $0x310] sm:$0xff] }
 0x5f9   :  { %9840 = vmatprep.subr.bf16.mxu0 %v12768_v43  ;;  %v6015_v47 = vand.u32 4294901760, %v6014_v61  ;;  %v12738_v61 = vand.u32 4294901760, %v11808_v20  ;;  %v12761_v27 = vand.u32 4294901760, %v12029_v49 }
 0x5fa   :  { %v6008_v29 = vand.u32 4294901760, %v6007_v36  ;;  %v6021_v31 = vsub.f32 %v11792_v3, %v12749_v34  ;;  %v12739_v36 = vand.u32 4294901760, %v11806_v26 }
 0x5fb   :  { %v12045_v10 = vsub.f32 %v12029_v49, %v12761_v27 }
 0x5fc   :  { %9842 = vmatpush3.bf16.msra.mxu0 %v11760_v60  ;;  %v9859_v25 = vpack.c.bf16 %v6015_v47, %v6008_v29  ;;  %v6022_v35 = vand.u32 4294901760, %v6021_v31  ;;  %v9868_v29 = vpack.c.bf16 %v6057_v32, %v6050_v5  ;;  %v6063_v47 = vsub.f32 %v11806_v26, %v12739_v36 }
 0x5fd   :  { %9843 = vmatprep.subr.bf16.mxu0 %v12768_v43  ;;  %v6070_v31 = vsub.f32 %v11808_v20, %v12738_v61  ;;  %v9877_v32 = vpack.c.bf16 %v11687_v33, %v11685_v38 }
 0x5fe   :  { %v9862_v6 = vpack.c.bf16 %v6029_v42, %v6022_v35  ;;  %v6064_v14 = vand.u32 4294901760, %v6063_v47  ;;  %v12737_v42 = vand.u32 4294901760, %v11814_v50  ;;  %v9880_v47 = vpack.c.bf16 %v11691_v0, %v11689_v62 }
 0x5ff   :  { %v6071_v35 = vand.u32 4294901760, %v6070_v31  ;;  %v9883_v31 = vpack.c.bf16 %v11790_v12, %v11788_v57 }
 0x600   :  { %9845 = vmatpush3.bf16.msra.mxu0 %v11770_v8  ;;  %v6077_v40 = vsub.f32 %v11814_v50, %v12737_v42 }
 0x601   :  { %9846 = vmatprep.subr.bf16.mxu0 %v12768_v43  ;;  %v9871_v59 = vpack.c.bf16 %v6071_v35, %v6064_v14  ;;  %v9886_v14 = vpack.c.bf16 %v11794_v1, %v11792_v3  ;;  %v9889_v35 = vpack.c.bf16 %v11799_v30, %v11797_v58 }
 0x602   :  { %v6078_v19 = vand.u32 4294901760, %v6077_v40  ;;  %v9892_v40 = vpack.c.bf16 %v11803_v16, %v11801_v55 }
 0x604   :  { %9848 = vmatpush3.bf16.msra.mxu0 %v11780_v52  ;;  %v9874_v5 = vpack.c.bf16 %v6085_v2, %v6078_v19  ;;  %v12081_v19 = vld [vmem:[%s12730_s5 + $0x350] sm:$0xff] }
 0x605   :  { %9849 = vmatprep.subr.bf16.mxu0 %v12768_v43  ;;  %v12772_v45 = vand.u32 4294901760, %v12081_v19 }
 0x607   :  { %v12097_v56 = vsub.f32 %v12081_v19, %v12772_v45  ;;  %v12824_v45 = vmov 0.0|0.0  }
 0x608   :  { %9851 = vmatpush3.bf16.msra.mxu0 %v11812_v41 }
 0x609   :  { %9852 = vmatprep.subr.bf16.mxu0 %v12768_v43  ;;  %12822 = vst [vmem:[#allocation12_spill] sm:$0xff] %v12097_v56 }
 0x6c9   :  { %v5856_v2 = vpop.f32.mrb[8].mxu1 }
 0x6ca   :  { %v5861_v17 = vadd.f32 %v5856_v2, %v11422_v11  ;;  %v11901_v42 = vpop.f32.mrb[9].mxu1  ;;  %v11929_v11 = vld [vmem:[%s12730_s5 + $0x280] sm:$0xff]  ;;  %v11983_v2 = vld [vmem:[%s12730_s5 + $0x2d0] sm:$0xff] }
 0x6cb   :  { %12818 = vst [vmem:[#allocation8_spill] sm:$0xff] %v11901_v42 }
 0x6cc   :  { %10327 = vtanh.f32 %v5861_v17 }
 0x6d6   :  { %v10328_v61 = vpop.eup %10327 }
 0x6d7   :  { %v11903_v36 = vand.u32 4294901760, %v10328_v61 }
 0x6d9   :  { %v11906_v37 = vsub.f32 %v10328_v61, %v11903_v36  ;;  %v11958_v61 = vld [vmem:[%s12730_s5 + $0x2b0] sm:$0xff] }
 0x6da   :  { %v12746_v17 = vand.u32 4294901760, %v11958_v61 }
 0x6db   :  { %12819 = vst [vmem:[#allocation9_spill] sm:$0xff] %v11906_v37  ;;  %v11909_v39 = vand.u32 4294901760, %v11906_v37 }
 0x6dd   :  { %v5968_v21 = vsub.f32 %v11906_v37, %v11909_v39 }
 0x6df   :  { %v11913_v44 = vand.u32 4294901760, %v5968_v21 }
 0x6e1   :  { %12820 = vst [vmem:[#allocation10_spill] sm:$0xff] %v11913_v44  ;;  %8889 = vmatmul.mubr.f32.vlgmr.msra.gmra.mrb[10].mxu0 %v11913_v44  ;;  %v12775_v44 = vand.u32 4294901760, %v12107_v51 }
 0x6e2   :  { %9854 = vmatpush3.bf16.msra.mxu0 %v11834_v15  ;;  %8923 = vmatprep.mubr.msk.f32.mxu0 %vm10358_vm4, %v12762_v9  ;;  %v11934_v15 = vld [vmem:[%s12730_s5 + $0x290] sm:$0xff] }
 0x6e3   :  { %9855 = vmatprep.subr.bf16.mxu0 %v12768_v43  ;;  %v12123_v56 = vsub.f32 %v12107_v51, %v12775_v44  ;;  %v12830_v44 = vand.u32 4294901760, %v11687_v33  ;;  %v12834_v33 = vand.u32 4294901760, %v11790_v12  ;;  %v12840_v12 = vand.u32 4294901760, %v11803_v16 }
 0x6e5   :  { %12826 = vst [vmem:[#allocation14_spill] sm:$0xff] %v12123_v56  ;;  %v12832_v56 = vand.u32 4294901760, %v11691_v0 }
 0x6e6   :  { %9857 = vmatpush3.bf16.msra.mxu0 %v9856_v63  ;;  %v12747_v63 = vand.u32 4294901760, %v11929_v11 }
 0x6e7   :  { %9858 = vmatprep.subr.bf16.mxu0 %v12768_v43 }
 0x6e8   :  { %v11943_v21 = vsub.f32 %v11929_v11, %v12747_v63 }
 0x6ea   :  { %9860 = vmatpush3.bf16.msra.mxu0 %v9859_v25  ;;  %v12744_v25 = vand.u32 4294901760, %v11934_v15 }
 0x6eb   :  { %9861 = vmatprep.subr.bf16.mxu0 %v12768_v43 }
 0x6ee   :  { %9863 = vmatpush3.bf16.msra.mxu0 %v9862_v6  ;;  %v11948_v6 = vsub.f32 %v11934_v15, %v12744_v25 }
 0x6ef   :  { %9864 = vmatprep.subr.bf16.mxu0 %v12768_v43 }
 0x6f2   :  { %9866 = vmatpush3.bf16.msra.mxu0 %v9865_v48  ;;  %v11953_v48 = vld [vmem:[%s12730_s5 + $0x2a0] sm:$0xff] }
 0x6f3   :  { %9867 = vmatprep.subr.bf16.mxu0 %v12768_v43 }
 0x6f6   :  { %9869 = vmatpush3.bf16.msra.mxu0 %v9868_v29  ;;  %v12745_v29 = vand.u32 4294901760, %v11953_v48 }
 0x6f7   :  { %9870 = vmatprep.subr.bf16.mxu0 %v12768_v43 }
 0x6fa   :  { %9872 = vmatpush3.bf16.msra.mxu0 %v9871_v59  ;;  %v11968_v59 = vsub.f32 %v11953_v48, %v12745_v29  ;;  %v12751_v29 = vand.u32 4294901760, %v11983_v2 }
 0x6fb   :  { %9873 = vmatprep.subr.bf16.mxu0 %v12768_v43 }
 0x6fc   :  { %v11996_v63 = vsub.f32 %v11983_v2, %v12751_v29 }
 0x6fe   :  { %9875 = vmatpush3.bf16.msra.mxu0 %v9874_v5  ;;  %v11973_v5 = vsub.f32 %v11958_v61, %v12746_v17 }
 0x6ff   :  { %9876 = vmatprep.subr.bf16.mxu0 %v12768_v43 }
 0x701   :  { %8924 = vmatmul.mubr.f32.vlgmr.msra.gmra.mrb[10].mxu0 %v11903_v36 }
 0x702   :  { %9878 = vmatpush3.bf16.msra.mxu0 %v9877_v32  ;;  %8958 = vmatprep.mubr.msk.f32.mxu0 %vm10358_vm4, %v12762_v9  ;;  %v11978_v32 = vld [vmem:[%s12730_s5 + $0x2c0] sm:$0xff]  ;;  %v12071_v9 = vsub.f32 %v12055_v54, %v12765_v18 }
 0x703   :  { %9879 = vmatprep.subr.bf16.mxu0 %v12768_v43  ;;  %v12750_v25 = vand.u32 4294901760, %v11978_v32 }
 0x705   :  { %v11991_v17 = vsub.f32 %v11978_v32, %v12750_v25  ;;  %v12756_v25 = vand.u32 4294901760, %v12006_v24 }
 0x706   :  { %9881 = vmatpush3.bf16.msra.mxu0 %v9880_v47  ;;  %v12001_v47 = vld [vmem:[%s12730_s5 + $0x2e0] sm:$0xff] }
 0x707   :  { %9882 = vmatprep.subr.bf16.mxu0 %v12768_v43  ;;  %v12754_v34 = vand.u32 4294901760, %v12001_v47  ;;  %v12019_v28 = vsub.f32 %v12006_v24, %v12756_v25 }
 0x709   :  { %v12014_v29 = vsub.f32 %v12001_v47, %v12754_v34 }
 0x70a   :  { %9884 = vmatpush3.bf16.msra.mxu0 %v9883_v31  ;;  %v12024_v31 = vld [vmem:[%s12730_s5 + $0x300] sm:$0xff] }
 0x70b   :  { %9885 = vmatprep.subr.bf16.mxu0 %v12768_v43  ;;  %v12759_v34 = vand.u32 4294901760, %v12024_v31 }
 0x70d   :  { %v12040_v25 = vsub.f32 %v12024_v31, %v12759_v34 }
 0x70e   :  { %9887 = vmatpush3.bf16.msra.mxu0 %v9886_v14  ;;  %v12050_v14 = vld [vmem:[%s12730_s5 + $0x320] sm:$0xff] }
 0x70f   :  { %9888 = vmatprep.subr.bf16.mxu0 %v12768_v43  ;;  %v12764_v34 = vand.u32 4294901760, %v12050_v14 }
 0x711   :  { %v12066_v27 = vsub.f32 %v12050_v14, %v12764_v34 }
 0x712   :  { %9890 = vmatpush3.bf16.msra.mxu0 %v9889_v35  ;;  %v12076_v35 = vld [vmem:[%s12730_s5 + $0x340] sm:$0xff] }
 0x713   :  { %9891 = vmatprep.subr.bf16.mxu0 %v12768_v43  ;;  %v12770_v34 = vand.u32 4294901760, %v12076_v35 }
 0x715   :  { %v12092_v18 = vsub.f32 %v12076_v35, %v12770_v34 }
 0x716   :  { %9893 = vmatpush3.bf16.msra.mxu0 %v9892_v40  ;;  %v12102_v40 = vld [vmem:[%s12730_s5 + $0x360] sm:$0xff] }
 0x717   :  { %9894 = vmatprep.subr.bf16.mxu0 %v12768_v43  ;;  %12821 = vst [vmem:[#allocation11_spill] sm:$0xff] %v12092_v18  ;;  %v12823_v43 = vpack.c.bf16 %v11808_v20, %v11806_v26  ;;  %v12776_v34 = vand.u32 4294901760, %v12102_v40  ;;  %v12827_v18 = vpack.c.bf16 %v11816_v46, %v11814_v50 }
 0x719   :  { %v12118_v42 = vsub.f32 %v12102_v40, %v12776_v34 }
 0x71a   :  { %9896 = vmatpush3.bf16.msra.mxu0 %v12823_v43  ;;  %v12828_v43 = vmov 0.0  }
 0x71b   :  { %9897 = vmatprep.subr.bf16.mxu0 %v12824_v45  ;;  %12825 = vst [vmem:[#allocation13_spill] sm:$0xff] %v12118_v42 }
 0x71e   :  { %9899 = vmatpush3.bf16.msra.mxu0 %v12827_v18  ;;  %v12829_v18 = vand.u32 4294901760, %v11685_v38  ;;  %v12833_v38 = vand.u32 4294901760, %v11788_v57  ;;  %v12839_v57 = vand.u32 4294901760, %v11801_v55  ;;  %v12850_v55 = vand.u32 4294901760, %v11983_v2 }
 0x71f   :  { %9900 = vmatprep.subr.bf16.mxu0 %v12824_v45 }
 0x720   :  { %v9925_v34 = vpack.c.bf16 %v12830_v44, %v12829_v18  ;;  %v9931_v44 = vpack.c.bf16 %v12834_v33, %v12833_v38  ;;  %v9940_v18 = vpack.c.bf16 %v12840_v12, %v12839_v57 }
 0x721   :  { %8959 = vmatmul.mubr.f32.vlgmr.msra.gmra.mrb[10].mxu0 %v11906_v37  ;;  %v12831_v37 = vand.u32 4294901760, %v11689_v62  ;;  %v12836_v62 = vand.u32 4294901760, %v11794_v1  ;;  %v12842_v1 = vand.u32 4294901760, %v11808_v20  ;;  %v12852_v20 = vand.u32 4294901760, %v12006_v24 }
 0x722   :  { %9902 = vmatpush3.bf16.msra.mxu0 %v11683_v7  ;;  %8993 = vmatprep.mubr.msk.f32.mxu0 %vm10358_vm4, %v12828_v43  ;;  %v12856_v24 = vand.u32 4294901760, %v12055_v54  ;;  %v12858_v54 = vand.u32 4294901760, %v12081_v19  ;;  %v12860_v19 = vand.u32 4294901760, %v12102_v40 }
 0x723   :  { %9903 = vmatprep.subr.bf16.mxu0 %v12824_v45  ;;  %v9928_v42 = vpack.c.bf16 %v12832_v56, %v12831_v37  ;;  %v12837_v56 = vand.u32 4294901760, %v11797_v58  ;;  %v12838_v37 = vand.u32 4294901760, %v11799_v30  ;;  %v12843_v58 = vand.u32 4294901760, %v11814_v50 }
 0x724   :  { %v12844_v30 = vand.u32 4294901760, %v11816_v46  ;;  %v12853_v50 = vand.u32 4294901760, %v12024_v31  ;;  %v12854_v46 = vand.u32 4294901760, %v12029_v49  ;;  %v12267_v49 = vld [vmem:[%s12730_s5 + $0x3d0] sm:$0xff] }
 0x725   :  { %v12786_v31 = vand.u32 4294901760, %v12267_v49 }
 0x726   :  { %9905 = vmatpush3.bf16.msra.mxu0 %v11694_v13  ;;  %v9946_v33 = vpack.c.bf16 %v12844_v30, %v12843_v58  ;;  %v6543_v30 = vld [vmem:[%s12730_s5 + $0x380] sm:$0xff] }
 0x727   :  { %9906 = vmatprep.subr.bf16.mxu0 %v12824_v45 }
 0x72a   :  { %9908 = vmatpush3.bf16.msra.mxu0 %v11740_v22 }
 0x72b   :  { %9909 = vmatprep.subr.bf16.mxu0 %v12824_v45 }
 0x72e   :  { %9911 = vmatpush3.bf16.msra.mxu0 %v11750_v4 }
 0x72f   :  { %9912 = vmatprep.subr.bf16.mxu0 %v12824_v45 }
 0x732   :  { %9914 = vmatpush3.bf16.msra.mxu0 %v11760_v60 }
 0x733   :  { %9915 = vmatprep.subr.bf16.mxu0 %v12824_v45 }
 0x736   :  { %9917 = vmatpush3.bf16.msra.mxu0 %v11770_v8 }
 0x737   :  { %9918 = vmatprep.subr.bf16.mxu0 %v12824_v45 }
 0x73a   :  { %9920 = vmatpush3.bf16.msra.mxu0 %v11780_v52 }
 0x73b   :  { %9921 = vmatprep.subr.bf16.mxu0 %v12824_v45 }
 0x73e   :  { %9923 = vmatpush3.bf16.msra.mxu0 %v11812_v41 }
 0x73f   :  { %9924 = vmatprep.subr.bf16.mxu0 %v12824_v45 }
 0x741   :  { %8994 = vmatmul.mubr.f32.vlgmr.msra.gmra.mrb[10].mxu0 %v11909_v39 }
 0x742   :  { %9926 = vmatpush3.bf16.msra.mxu0 %v9925_v34  ;;  %9028 = vmatprep.mubr.msk.f32.mxu0 %vm10358_vm4, %v12828_v43  ;;  %v12835_v34 = vand.u32 4294901760, %v11792_v3  ;;  %v12841_v3 = vand.u32 4294901760, %v11806_v26  ;;  %v12851_v26 = vand.u32 4294901760, %v12001_v47 }
 0x743   :  { %9927 = vmatprep.subr.bf16.mxu0 %v12824_v45 }
 0x744   :  { %v9934_v0 = vpack.c.bf16 %v12836_v62, %v12835_v34  ;;  %v9943_v38 = vpack.c.bf16 %v12842_v1, %v12841_v3 }
 0x746   :  { %9929 = vmatpush3.bf16.msra.mxu0 %v9928_v42  ;;  %v9937_v42 = vpack.c.bf16 %v12838_v37, %v12837_v56 }
 0x747   :  { %9930 = vmatprep.subr.bf16.mxu0 %v12824_v45 }
 0x74a   :  { %9932 = vmatpush3.bf16.msra.mxu0 %v9931_v44  ;;  %v12287_v44 = vld [vmem:[%s12730_s5 + $0x3f0] sm:$0xff] }
 0x74b   :  { %9933 = vmatprep.subr.bf16.mxu0 %v12824_v45  ;;  %12859 = vst [vmem:[#allocation15_spill] sm:$0xff] %v12287_v44  ;;  %v12782_v40 = vand.u32 4294901760, %v12287_v44 }
 0x74e   :  { %9935 = vmatpush3.bf16.msra.mxu0 %v9934_v0  ;;  %v12304_v0 = vsub.f32 %v12267_v49, %v12786_v31 }
 0x74f   :  { %9936 = vmatprep.subr.bf16.mxu0 %v12824_v45 }
 0x752   :  { %9938 = vmatpush3.bf16.msra.mxu0 %v9937_v42  ;;  %v12320_v42 = vsub.f32 %v12287_v44, %v12782_v40  ;;  %v12790_v40 = vand.u32 4294901760, %v11991_v17 }
 0x753   :  { %9939 = vmatprep.subr.bf16.mxu0 %v12824_v45 }
 0x754   :  { %12863 = vst [vmem:[#allocation17_spill] sm:$0xff] %v12320_v42 }
 0x756   :  { %9941 = vmatpush3.bf16.msra.mxu0 %v9940_v18  ;;  %v12784_v18 = vand.u32 4294901760, %v12304_v0 }
 0x757   :  { %9942 = vmatprep.subr.bf16.mxu0 %v12824_v45 }
 0x75a   :  { %9944 = vmatpush3.bf16.msra.mxu0 %v9943_v38  ;;  %v12780_v38 = vand.u32 4294901760, %v12320_v42 }
 0x75b   :  { %9945 = vmatprep.subr.bf16.mxu0 %v12824_v45 }
 0x75e   :  { %9947 = vmatpush3.bf16.msra.mxu0 %v9946_v33  ;;  %v6551_v33 = vand.u32 4294901760, %v6543_v30 }
 0x75f   :  { %9948 = vmatprep.subr.bf16.mxu0 %v12824_v45 }
 0x761   :  { %9029 = vmatmul.mubr.f32.vlgmr.msra.gmra.mrb[10].mxu0 %v11903_v36 }
 0x762   :  { %9950 = vmatpush3.bf16.msra.mxu0 %v11683_v7  ;;  %9063 = vmatprep.mubr.msk.f32.mxu0 %vm10358_vm4, %v12828_v43  ;;  %v12845_v7 = vand.u32 4294901760, %v11929_v11  ;;  %v12248_v11 = vpack.c.bf16 %v12854_v46, %v12853_v50 }
 0x763   :  { %9951 = vmatprep.subr.bf16.mxu0 %v12824_v45 }
 0x766   :  { %9953 = vmatpush3.bf16.msra.mxu0 %v11694_v13  ;;  %v12846_v13 = vand.u32 4294901760, %v11934_v15  ;;  %v12855_v15 = vand.u32 4294901760, %v12050_v14  ;;  %v12282_v14 = vld [vmem:[%s12730_s5 + $0x3e0] sm:$0xff] }
 0x767   :  { %9954 = vmatprep.subr.bf16.mxu0 %v12824_v45  ;;  %v12783_v56 = vand.u32 4294901760, %v12282_v14 }
 0x769   :  { %v12315_v37 = vsub.f32 %v12282_v14, %v12783_v56 }
 0x76a   :  { %9956 = vmatpush3.bf16.msra.mxu0 %v11740_v22  ;;  %v12213_v22 = vpack.c.bf16 %v12846_v13, %v12845_v7 }
 0x76b   :  { %9957 = vmatprep.subr.bf16.mxu0 %v12824_v45  ;;  %12862 = vst [vmem:[#allocation16_spill] sm:$0xff] %v12315_v37  ;;  %v10168_v57 = vpack.c.bf16 %v12320_v42, %v12315_v37  ;;  %v12781_v1 = vand.u32 4294901760, %v12315_v37 }
 0x76d   :  { %v10180_v58 = vpack.c.bf16 %v12780_v38, %v12781_v1 }
 0x76e   :  { %9959 = vmatpush3.bf16.msra.mxu0 %v11750_v4  ;;  %v12847_v4 = vand.u32 4294901760, %v11953_v48  ;;  %v12256_v48 = vpack.c.bf16 %v12856_v24, %v12855_v15 }
 0x76f   :  { %9960 = vmatprep.subr.bf16.mxu0 %v12824_v45 }
 0x772   :  { %9962 = vmatpush3.bf16.msra.mxu0 %v11760_v60  ;;  %v12848_v60 = vand.u32 4294901760, %v11958_v61  ;;  %v12262_v61 = vld [vmem:[%s12730_s5 + $0x3c0] sm:$0xff] }
 0x773   :  { %9963 = vmatprep.subr.bf16.mxu0 %v12824_v45  ;;  %v12787_v47 = vand.u32 4294901760, %v12262_v61 }
 0x775   :  { %v12299_v62 = vsub.f32 %v12262_v61, %v12787_v47 }
 0x776   :  { %9965 = vmatpush3.bf16.msra.mxu0 %v11770_v8  ;;  %v12222_v8 = vpack.c.bf16 %v12848_v60, %v12847_v4  ;;  %v12355_v4 = vsub.f32 %v6543_v30, %v6551_v33 }
 0x777   :  { %9966 = vmatprep.subr.bf16.mxu0 %v12824_v45  ;;  %v12785_v12 = vand.u32 4294901760, %v12299_v62 }
 0x778   :  { %v6632_v50 = vand.u32 4294901760, %v12355_v4 }
 0x779   :  { %v10177_v3 = vpack.c.bf16 %v12784_v18, %v12785_v12  ;;  %v12789_v12 = vand.u32 4294901760, %v12014_v29 }
 0x77a   :  { %9968 = vmatpush3.bf16.msra.mxu0 %v11780_v52  ;;  %v12849_v52 = vand.u32 4294901760, %v11978_v32  ;;  %v12857_v32 = vand.u32 4294901760, %v12076_v35  ;;  %v12861_v35 = vand.u32 4294901760, %v12107_v51  ;;  %v10165_v51 = vpack.c.bf16 %v12304_v0, %v12299_v62 }
 0x77b   :  { %9969 = vmatprep.subr.bf16.mxu0 %v12824_v45 }
 0x77c   :  { %v12232_v16 = vpack.c.bf16 %v12850_v55, %v12849_v52  ;;  %v12274_v2 = vpack.c.bf16 %v12858_v54, %v12857_v32  ;;  %v12293_v34 = vpack.c.bf16 %v12861_v35, %v12860_v19  ;;  %v6545_v52 = vld [vmem:[%s12730_s5 + $0x3a0] sm:$0xff]  ;;  %v6546_v55 = vld [vmem:[%s12730_s5 + $0x3b0] sm:$0xff]  ;;  %v6633_v54 = vsub.f32 %v12355_v4, %v6632_v50 }
 0x77e   :  { %9971 = vmatpush3.bf16.msra.mxu0 %v11812_v41  ;;  %v12240_v41 = vpack.c.bf16 %v12852_v20, %v12851_v26  ;;  %v6557_v26 = vand.u32 4294901760, %v6545_v52  ;;  %v6560_v20 = vand.u32 4294901760, %v6546_v55  ;;  %v6634_v35 = vand.u32 4294901760, %v6633_v54 }
 0x77f   :  { %10128 = vmatprep.subr.bf16.mxu0 %v12824_v45 }
 0x780   :  { %v12369_v15 = vpack.c.bf16 %v6560_v20, %v6557_v26  ;;  %v12371_v24 = vsub.f32 %v6545_v52, %v6557_v26  ;;  %v12373_v32 = vsub.f32 %v6546_v55, %v6560_v20  ;;  %v12866_v26 = vld [vmem:[#allocation13_spill] sm:$0xff] }
 0x781   :  { %9064 = vmatmul.mubr.f32.vlgmr.msra.gmra.mrb[10].mxu0 %v11903_v36 }
 0x782   :  { %10130 = vmatpush3.bf16.msra.mxu0 %v12213_v22  ;;  %9339 = vmatprep.mubr.msk.f32.mxu0 %vm10358_vm4, %v12828_v43 }
 0x783   :  { %10131 = vmatprep.subr.bf16.mxu0 %v12824_v45 }
 0x786   :  { %10133 = vmatpush3.bf16.msra.mxu0 %v12222_v8 }
 0x787   :  { %10134 = vmatprep.subr.bf16.mxu0 %v12824_v45 }
 0x78a   :  { %10136 = vmatpush3.bf16.msra.mxu0 %v12232_v16 }
 0x78b   :  { %10137 = vmatprep.subr.bf16.mxu0 %v12824_v45 }
 0x78e   :  { %10139 = vmatpush3.bf16.msra.mxu0 %v12240_v41 }
 0x78f   :  { %10140 = vmatprep.subr.bf16.mxu0 %v12824_v45 }
 0x792   :  { %10142 = vmatpush3.bf16.msra.mxu0 %v12248_v11 }
 0x793   :  { %10143 = vmatprep.subr.bf16.mxu0 %v12824_v45 }
 0x796   :  { %10145 = vmatpush3.bf16.msra.mxu0 %v12256_v48 }
 0x797   :  { %10146 = vmatprep.subr.bf16.mxu0 %v12824_v45 }
 0x79a   :  { %10148 = vmatpush3.bf16.msra.mxu0 %v12274_v2 }
 0x79b   :  { %10149 = vmatprep.subr.bf16.mxu0 %v12824_v45 }
 0x79e   :  { %10151 = vmatpush3.bf16.msra.mxu0 %v12293_v34 }
 0x79f   :  { %10164 = vmatprep.subr.bf16.mxu0 %v12824_v45 }
 0x7a1   :  { %9340 = vmatmul.mubr.f32.vlgmr.msra.gmra.mrb[12].mxu0 %v11903_v36 }
 0x7a2   :  { %10166 = vmatpush3.bf16.msra.mxu0 %v10165_v51  ;;  %9372 = vmatprep.mubr.msk.f32.mxu0 %vm10358_vm4, %v12828_v43 }
 0x7a3   :  { %10167 = vmatprep.subr.bf16.mxu0 %v12824_v45 }
 0x7a6   :  { %10169 = vmatpush3.bf16.msra.mxu0 %v10168_v57  ;;  %v6646_v57 = vand.u32 4294901760, %v12371_v24 }
 0x7a7   :  { %10176 = vmatprep.subr.bf16.mxu0 %v12824_v45 }
 0x7a8   :  { %v6647_v30 = vsub.f32 %v12371_v24, %v6646_v57 }
 0x7a9   :  { %9373 = vmatmul.mubr.f32.vlgmr.msra.gmra.mrb[14].mxu0 %v11703_v53  ;;  %v6544_v53 = vld [vmem:[%s12730_s5 + $0x390] sm:$0xff] }
 0x7aa   :  { %10178 = vmatpush3.bf16.msra.mxu0 %v10177_v3  ;;  %9394 = vmatprep.mubr.msk.f32.mxu0 %vm10358_vm4, %v12828_v43  ;;  %v6554_v7 = vand.u32 4294901760, %v6544_v53  ;;  %v6653_v3 = vand.u32 4294901760, %v12373_v32 }
 0x7ab   :  { %10179 = vmatprep.subr.bf16.mxu0 %v12824_v45 }
 0x7ac   :  { %v12353_v13 = vpack.c.bf16 %v6554_v7, %v6551_v33  ;;  %v12357_v60 = vsub.f32 %v6544_v53, %v6554_v7  ;;  %v6654_v53 = vsub.f32 %v12373_v32, %v6653_v3  ;;  %v6648_v33 = vand.u32 4294901760, %v6647_v30 }
 0x7ad   :  { %v12393_v54 = vpack.c.bf16 %v6653_v3, %v6646_v57 }
 0x7ae   :  { %10181 = vmatpush3.bf16.msra.mxu0 %v10180_v58  ;;  %9974 = vmatpush3.bf16.msra.mxu1 %v12353_v13  ;;  %v6639_v46 = vand.u32 4294901760, %v12357_v60  ;;  %v6655_v7 = vand.u32 4294901760, %v6654_v53 }
 0x7af   :  { %9975 = vmatprep.subr.bf16.mxu1 %v12824_v45 }
 0x7b0   :  { %v6640_v19 = vsub.f32 %v12357_v60, %v6639_v46  ;;  %v12385_v52 = vpack.c.bf16 %v6655_v7, %v6648_v33  ;;  %v12391_v20 = vpack.c.bf16 %v6639_v46, %v6632_v50  ;;  %v12794_v7 = vand.u32 4294901760, %v11968_v59 }
 0x7b1   :  { %9395 = vmatmul.mubr.f32.vlgmr.msra.gmra.mrb[16].mxu0 %v11700_v23  ;;  %v12793_v50 = vand.u32 4294901760, %v11973_v5 }
 0x7b2   :  { %9977 = vmatpush3.bf16.msra.mxu1 %v12369_v15  ;;  %v6641_v51 = vand.u32 4294901760, %v6640_v19  ;;  %v12798_v19 = vand.u32 4294901760, %v11943_v21  ;;  %v7144_v57 = vsub.f32 %v11968_v59, %v12794_v7  ;;  %v12864_v7 = vld [vmem:[#allocation11_spill] sm:$0xff] }
 0x7b3   :  { %9978 = vmatprep.subr.bf16.mxu1 %v12824_v45  ;;  %v7151_v3 = vsub.f32 %v11973_v5, %v12793_v50 }
 0x7b4   :  { %v12381_v58 = vpack.c.bf16 %v6641_v51, %v6634_v35  ;;  %v12796_v35 = vand.u32 4294901760, %v11948_v6  ;;  %v7130_v51 = vsub.f32 %v11943_v21, %v12798_v19  ;;  %v7145_v38 = vand.u32 4294901760, %v7144_v57 }
 0x7b5   :  { %v7152_v1 = vand.u32 4294901760, %v7151_v3  ;;  %v12791_v57 = vand.u32 4294901760, %v12019_v28 }
 0x7b6   :  { %v7137_v30 = vsub.f32 %v11948_v6, %v12796_v35  ;;  %v7131_v53 = vand.u32 4294901760, %v7130_v51  ;;  %v12788_v51 = vand.u32 4294901760, %v11996_v63 }
 0x7b8   :  { %v7138_v33 = vand.u32 4294901760, %v7137_v30  ;;  %v12415_v30 = vpack.c.bf16 %v7152_v1, %v7145_v38  ;;  %v7172_v1 = vsub.f32 %v12014_v29, %v12789_v12  ;;  %v7179_v38 = vsub.f32 %v12019_v28, %v12791_v57 }
 0x7b9   :  { %v12797_v57 = vand.u32 4294901760, %v12066_v27 }
 0x7ba   :  { %v12405_v46 = vpack.c.bf16 %v7138_v33, %v7131_v53  ;;  %v7158_v53 = vsub.f32 %v11991_v17, %v12790_v40  ;;  %v7165_v33 = vsub.f32 %v11996_v63, %v12788_v51  ;;  %v7173_v31 = vand.u32 4294901760, %v7172_v1 }
 0x7bb   :  { %v7180_v47 = vand.u32 4294901760, %v7179_v38  ;;  %v12792_v51 = vand.u32 4294901760, %v12040_v25  ;;  %v12799_v1 = vand.u32 4294901760, %v12071_v9 }
 0x7bc   :  { %v7159_v56 = vand.u32 4294901760, %v7158_v53  ;;  %v7166_v18 = vand.u32 4294901760, %v7165_v33  ;;  %v12795_v53 = vand.u32 4294901760, %v12045_v10 }
 0x7bd   :  { %v12435_v33 = vpack.c.bf16 %v7180_v47, %v7173_v31  ;;  %v7200_v47 = vsub.f32 %v12066_v27, %v12797_v57  ;;  %v7207_v31 = vsub.f32 %v12071_v9, %v12799_v1  ;;  %v12809_v1 = vand.u32 4294901760, %v12866_v26 }
 0x7be   :  { %v12425_v3 = vpack.c.bf16 %v7166_v18, %v7159_v56  ;;  %v7186_v56 = vsub.f32 %v12040_v25, %v12792_v51  ;;  %v7193_v18 = vsub.f32 %v12045_v10, %v12795_v53  ;;  %v12800_v53 = vand.u32 4294901760, %v12864_v7 }
 0x7bf   :  { %v7201_v51 = vand.u32 4294901760, %v7200_v47  ;;  %v7208_v50 = vand.u32 4294901760, %v7207_v31  ;;  %v12867_v47 = vld [vmem:[#allocation14_spill] sm:$0xff] }
 0x7c0   :  { %v7187_v12 = vand.u32 4294901760, %v7186_v56  ;;  %v7194_v40 = vand.u32 4294901760, %v7193_v18  ;;  %v12865_v56 = vld [vmem:[#allocation12_spill] sm:$0xff]  ;;  %v12810_v31 = vand.u32 4294901760, %v12867_v47 }
 0x7c1   :  { %v12805_v18 = vand.u32 4294901760, %v12865_v56  ;;  %v12455_v35 = vpack.c.bf16 %v7208_v50, %v7201_v51  ;;  %v7228_v50 = vsub.f32 %v12866_v26, %v12809_v1  ;;  %v10060_v1 = vpack.c.bf16 %v11973_v5, %v11968_v59 }
 0x7c2   :  { %v12445_v38 = vpack.c.bf16 %v7194_v40, %v7187_v12  ;;  %v7214_v40 = vsub.f32 %v12864_v7, %v12800_v53  ;;  %v7235_v51 = vsub.f32 %v12867_v47, %v12810_v31  ;;  %v10075_v31 = vpack.c.bf16 %v12865_v56, %v12864_v7 }
 0x7c3   :  { %v7221_v12 = vsub.f32 %v12865_v56, %v12805_v18  ;;  %v7229_v53 = vand.u32 4294901760, %v7228_v50 }
 0x7c4   :  { %v7215_v57 = vand.u32 4294901760, %v7214_v40  ;;  %v7236_v23 = vand.u32 4294901760, %v7235_v51  ;;  %v5865_v40 = vpop.permute.xlu1 %5864 }
 0x7c5   :  { %v7222_v19 = vand.u32 4294901760, %v7221_v12  ;;  %v12868_v12 = vld [vmem:[#allocation8_spill] sm:$0xff] }
 0x7c6   :  { %v12473_v42 = vpack.c.bf16 %v7236_v23, %v7229_v53  ;;  %v5867_v18 = vadd.f32 %v5865_v40, %v12868_v12  ;;  %v10066_v23 = vpack.c.bf16 %v12019_v28, %v12014_v29  ;;  %v10069_v40 = vpack.c.bf16 %v12045_v10, %v12040_v25 }
 0x7c7   :  { %v12465_v55 = vpack.c.bf16 %v7222_v19, %v7215_v57  ;;  %v10057_v19 = vpack.c.bf16 %v11948_v6, %v11943_v21 }
 0x854   :  { %v6521_v37 = vpop.f32.mrb[10].mxu0 }
 0x855   :  { %v6525_v57 = vadd.f32 %v6521_v37, %v5867_v18  ;;  %v9065_v44 = vpop.f32.mrb[11].mxu0 }
 0x856   :  { %v10072_v44 = vpack.c.bf16 %v12071_v9, %v12066_v27 }
 0x857   :  { %10329 = vtanh.f32 %v6525_v57 }
 0x861   :  { %v10330_v53 = vpop.eup %10329 }
 0x862   :  { %v6548_v50 = vsel %vm1092_vm1, %v10330_v53, 0 }
 0x863   :  { %v6619_v51 = vand.u32 4294901760, %v6548_v50 }
 0x865   :  { %v6620_v12 = vsub.f32 %v6548_v50, %v6619_v51 }
 0x867   :  { %v6621_v37 = vand.u32 4294901760, %v6620_v12 }
 0x869   :  { %v6622_v18 = vsub.f32 %v6620_v12, %v6621_v37 }
 0x86b   :  { %v6623_v57 = vand.u32 4294901760, %v6622_v18 }
 0x86d   :  { %9075 = vmatmul.mubr.f32.vlgmr.msra.gmra.mrb[10].mxu1 %v6623_v57  ;;  %v12869_v57 = vpack.c.bf16 %v12357_v60, %v12355_v4 }
 0x86e   :  { %9980 = vmatpush3.bf16.msra.mxu1 %v12381_v58  ;;  %9085 = vmatprep.mubr.msk.f32.mxu1 %vm10358_vm4, %v12828_v43  ;;  %v12870_v58 = vpack.c.bf16 %v12373_v32, %v12371_v24  ;;  %v12874_v24 = vld [vmem:[#allocation9_spill] sm:$0xff]  ;;  %v12884_v32 = vand.u32 4294901760, %v12045_v10  ;;  %v12889_v10 = vand.u32 4294901760, %v12866_v26 }
 0x86f   :  { %9981 = vmatprep.subr.bf16.mxu1 %v12824_v45 }
 0x872   :  { %9983 = vmatpush3.bf16.msra.mxu1 %v12385_v52 }
 0x873   :  { %9984 = vmatprep.subr.bf16.mxu1 %v12824_v45 }
 0x874   :  { %v12499_v50 = vpop.f32.mrb[12].mxu0 }
 0x875   :  { %9086 = vmatmul.mubr.f32.vlgmr.msra.gmra.mrb[12].mxu1 %v6619_v51  ;;  %v9341_v18 = vpop.f32.mrb[13].mxu0 }
 0x876   :  { %9986 = vmatpush3.bf16.msra.mxu1 %v12869_v57  ;;  %9096 = vmatprep.mubr.msk.f32.mxu1 %vm10358_vm4, %v12828_v43 }
 0x877   :  { %9987 = vmatprep.subr.bf16.mxu1 %v12824_v45 }
 0x87a   :  { %9989 = vmatpush3.bf16.msra.mxu1 %v12870_v58 }
 0x87b   :  { %9990 = vmatprep.subr.bf16.mxu1 %v12824_v45 }
 0x87c   :  { %v12511_v52 = vpop.f32.mrb[14].mxu0 }
 0x87d   :  { %9097 = vmatmul.mubr.f32.vlgmr.msra.gmra.mrb[14].mxu1 %v6620_v12  ;;  %v9374_v53 = vpop.f32.mrb[15].mxu0 }
 0x87e   :  { %9992 = vmatpush3.bf16.msra.mxu1 %v12353_v13  ;;  %9107 = vmatprep.mubr.msk.f32.mxu1 %vm10358_vm4, %v12828_v43  ;;  %v12903_v53 = vld [vmem:[#allocation5_spill] sm:$0xff] }
 0x87f   :  { %9993 = vmatprep.subr.bf16.mxu1 %v12824_v45 }
 0x882   :  { %9995 = vmatpush3.bf16.msra.mxu1 %v12369_v15 }
 0x883   :  { %9996 = vmatprep.subr.bf16.mxu1 %v12824_v45 }
 0x884   :  { %v12519_v4 = vpop.f32.mrb[16].mxu0 }
 0x885   :  { %9108 = vmatmul.mubr.f32.vlgmr.msra.gmra.mrb[16].mxu1 %v6621_v37  ;;  %v9396_v60 = vpop.f32.mrb[17].mxu0 }
 0x886   :  { %9998 = vmatpush3.bf16.msra.mxu1 %v12391_v20  ;;  %9118 = vmatprep.mubr.msk.f32.mxu1 %vm10358_vm4, %v12828_v43  ;;  %v12904_v60 = vld [vmem:[#allocation6_spill] sm:$0xff] }
 0x887   :  { %9999 = vmatprep.subr.bf16.mxu1 %v12824_v45 }
 0x88a   :  { %10001 = vmatpush3.bf16.msra.mxu1 %v12393_v54 }
 0x88b   :  { %10002 = vmatprep.subr.bf16.mxu1 %v12824_v45 }
 0x88d   :  { %9119 = vmatmul.mubr.f32.vlgmr.msra.gmra.mrb[18].mxu1 %v6619_v51 }
 0x88e   :  { %10004 = vmatpush3.bf16.msra.mxu1 %v12353_v13  ;;  %9129 = vmatprep.mubr.msk.f32.mxu1 %vm10358_vm4, %v12828_v43  ;;  %v12871_v13 = vld [vmem:[#allocation10_spill] sm:$0xff] }
 0x88f   :  { %10005 = vmatprep.subr.bf16.mxu1 %v12824_v45 }
 0x892   :  { %10007 = vmatpush3.bf16.msra.mxu1 %v12369_v15  ;;  %v12873_v15 = vpack.c.bf16 %v12867_v47, %v12866_v26  ;;  %v12895_v26 = vand.u32 4294901760, %v12282_v14 }
 0x893   :  { %10008 = vmatprep.subr.bf16.mxu1 %v12824_v45 }
 0x895   :  { %9130 = vmatmul.mubr.f32.vlgmr.msra.gmra.mrb[20].mxu1 %v6619_v51 }
 0x896   :  { %10010 = vmatpush3.bf16.msra.mxu1 %v12213_v22  ;;  %9164 = vmatprep.mubr.msk.f32.mxu1 %vm10358_vm4, %v12828_v43 }
 0x897   :  { %10011 = vmatprep.subr.bf16.mxu1 %v12824_v45 }
 0x89a   :  { %10013 = vmatpush3.bf16.msra.mxu1 %v12222_v8 }
 0x89b   :  { %10014 = vmatprep.subr.bf16.mxu1 %v12824_v45 }
 0x89e   :  { %10016 = vmatpush3.bf16.msra.mxu1 %v12232_v16 }
 0x89f   :  { %10017 = vmatprep.subr.bf16.mxu1 %v12824_v45 }
 0x8a2   :  { %10019 = vmatpush3.bf16.msra.mxu1 %v12240_v41 }
 0x8a3   :  { %10020 = vmatprep.subr.bf16.mxu1 %v12824_v45 }
 0x8a6   :  { %10022 = vmatpush3.bf16.msra.mxu1 %v12248_v11 }
 0x8a7   :  { %10023 = vmatprep.subr.bf16.mxu1 %v12824_v45 }
 0x8aa   :  { %10025 = vmatpush3.bf16.msra.mxu1 %v12256_v48 }
 0x8ab   :  { %10026 = vmatprep.subr.bf16.mxu1 %v12824_v45 }
 0x8ae   :  { %10028 = vmatpush3.bf16.msra.mxu1 %v12274_v2 }
 0x8af   :  { %10029 = vmatprep.subr.bf16.mxu1 %v12824_v45 }
 0x8b2   :  { %10031 = vmatpush3.bf16.msra.mxu1 %v12293_v34 }
 0x8b3   :  { %10032 = vmatprep.subr.bf16.mxu1 %v12824_v45 }
 0x8b5   :  { %9165 = vmatmul.mubr.f32.vlgmr.msra.gmra.mrb[22].mxu1 %v12871_v13 }
 0x8b6   :  { %10034 = vmatpush3.bf16.msra.mxu1 %v12405_v46  ;;  %9199 = vmatprep.mubr.msk.f32.mxu1 %vm10358_vm4, %v12828_v43 }
 0x8b7   :  { %10035 = vmatprep.subr.bf16.mxu1 %v12824_v45 }
 0x8ba   :  { %10037 = vmatpush3.bf16.msra.mxu1 %v12415_v30 }
 0x8bb   :  { %10038 = vmatprep.subr.bf16.mxu1 %v12824_v45 }
 0x8be   :  { %10040 = vmatpush3.bf16.msra.mxu1 %v12425_v3  ;;  %v12894_v3 = vand.u32 4294901760, %v12304_v0 }
 0x8bf   :  { %10041 = vmatprep.subr.bf16.mxu1 %v12824_v45 }
 0x8c2   :  { %10043 = vmatpush3.bf16.msra.mxu1 %v12435_v33  ;;  %v7770_v33 = vsub.f32 %v12304_v0, %v12894_v3  ;;  %v12900_v0 = vld [vmem:[#allocation17_spill] sm:$0xff] }
 0x8c3   :  { %10044 = vmatprep.subr.bf16.mxu1 %v12824_v45 }
 0x8c6   :  { %10046 = vmatpush3.bf16.msra.mxu1 %v12445_v38 }
 0x8c7   :  { %10047 = vmatprep.subr.bf16.mxu1 %v12824_v45 }
 0x8ca   :  { %10049 = vmatpush3.bf16.msra.mxu1 %v12455_v35 }
 0x8cb   :  { %10050 = vmatprep.subr.bf16.mxu1 %v12824_v45 }
 0x8ce   :  { %10052 = vmatpush3.bf16.msra.mxu1 %v12465_v55 }
 0x8cf   :  { %10053 = vmatprep.subr.bf16.mxu1 %v12824_v45 }
 0x8d2   :  { %10055 = vmatpush3.bf16.msra.mxu1 %v12473_v42  ;;  %v12872_v42 = vpack.c.bf16 %v11996_v63, %v11991_v17 }
 0x8d3   :  { %10056 = vmatprep.subr.bf16.mxu1 %v12824_v45 }
 0x8d5   :  { %9200 = vmatmul.mubr.f32.vlgmr.msra.gmra.mrb[24].mxu1 %v11903_v36 }
 0x8d6   :  { %10058 = vmatpush3.bf16.msra.mxu1 %v10057_v19  ;;  %9234 = vmatprep.mubr.msk.f32.mxu1 %vm10358_vm4, %v12828_v43  ;;  %v12901_v19 = vand.u32 4294901760, %v12900_v0 }
 0x8d7   :  { %10059 = vmatprep.subr.bf16.mxu1 %v12824_v45 }
 0x8da   :  { %10061 = vmatpush3.bf16.msra.mxu1 %v10060_v1  ;;  %v12896_v1 = vld [vmem:[#allocation15_spill] sm:$0xff] }
 0x8db   :  { %10062 = vmatprep.subr.bf16.mxu1 %v12824_v45  ;;  %v12897_v38 = vand.u32 4294901760, %v12896_v1 }
 0x8de   :  { %10064 = vmatpush3.bf16.msra.mxu1 %v12872_v42 }
 0x8df   :  { %10065 = vmatprep.subr.bf16.mxu1 %v12824_v45 }
 0x8e2   :  { %10067 = vmatpush3.bf16.msra.mxu1 %v10066_v23  ;;  %v7784_v23 = vsub.f32 %v12900_v0, %v12901_v19 }
 0x8e3   :  { %10068 = vmatprep.subr.bf16.mxu1 %v12824_v45 }
 0x8e4   :  { %v7785_v51 = vand.u32 4294901760, %v7784_v23 }
 0x8e6   :  { %10070 = vmatpush3.bf16.msra.mxu1 %v10069_v40  ;;  %v12902_v40 = vld [vmem:[#allocation7_spill] sm:$0xff] }
 0x8e7   :  { %10071 = vmatprep.subr.bf16.mxu1 %v12824_v45 }
 0x8ea   :  { %10073 = vmatpush3.bf16.msra.mxu1 %v10072_v44 }
 0x8eb   :  { %10074 = vmatprep.subr.bf16.mxu1 %v12824_v45 }
 0x8ee   :  { %10076 = vmatpush3.bf16.msra.mxu1 %v10075_v31 }
 0x8ef   :  { %10077 = vmatprep.subr.bf16.mxu1 %v12824_v45 }
 0x8f2   :  { %10079 = vmatpush3.bf16.msra.mxu1 %v12873_v15 }
 0x8f3   :  { %10080 = vmatprep.subr.bf16.mxu1 %v12824_v45 }
 0x8f5   :  { %9235 = vmatmul.mubr.f32.vlgmr.msra.gmra.mrb[26].mxu1 %v12874_v24 }
 0x8f6   :  { %10082 = vmatpush3.bf16.msra.mxu1 %v12213_v22  ;;  %9269 = vmatprep.mubr.msk.f32.mxu1 %vm10358_vm4, %v12828_v43  ;;  %v12875_v22 = vand.u32 4294901760, %v11943_v21  ;;  %v12879_v21 = vand.u32 4294901760, %v11991_v17  ;;  %v12886_v17 = vand.u32 4294901760, %v12071_v9  ;;  %v12891_v9 = vand.u32 4294901760, %v12262_v61 }
 0x8f7   :  { %10083 = vmatprep.subr.bf16.mxu1 %v12824_v45  ;;  %v10156_v61 = vpack.c.bf16 %v12897_v38, %v12895_v26 }
 0x8fa   :  { %10085 = vmatpush3.bf16.msra.mxu1 %v12222_v8  ;;  %v12876_v8 = vand.u32 4294901760, %v11948_v6  ;;  %v12880_v6 = vand.u32 4294901760, %v11996_v63  ;;  %v12885_v63 = vand.u32 4294901760, %v12066_v27  ;;  %v12892_v27 = vand.u32 4294901760, %v12267_v49 }
 0x8fb   :  { %10086 = vmatprep.subr.bf16.mxu1 %v12824_v45 }
 0x8fc   :  { %v10120_v20 = vpack.c.bf16 %v12886_v17, %v12885_v63  ;;  %v10153_v46 = vpack.c.bf16 %v12892_v27, %v12891_v9 }
 0x8fe   :  { %10088 = vmatpush3.bf16.msra.mxu1 %v12232_v16  ;;  %v10105_v16 = vpack.c.bf16 %v12876_v8, %v12875_v22 }
 0x8ff   :  { %10089 = vmatprep.subr.bf16.mxu1 %v12824_v45 }
 0x902   :  { %10091 = vmatpush3.bf16.msra.mxu1 %v12240_v41  ;;  %v12877_v41 = vand.u32 4294901760, %v11968_v59  ;;  %v12882_v59 = vand.u32 4294901760, %v12019_v28  ;;  %v12887_v28 = vand.u32 4294901760, %v12864_v7  ;;  %v12893_v7 = vand.u32 4294901760, %v12299_v62 }
 0x903   :  { %10092 = vmatprep.subr.bf16.mxu1 %v12824_v45 }
 0x904   :  { %v7763_v30 = vsub.f32 %v12299_v62, %v12893_v7  ;;  %v12898_v62 = vld [vmem:[#allocation16_spill] sm:$0xff] }
 0x906   :  { %10094 = vmatpush3.bf16.msra.mxu1 %v12248_v11  ;;  %v12878_v11 = vand.u32 4294901760, %v11973_v5  ;;  %v7764_v49 = vand.u32 4294901760, %v7763_v30 }
 0x907   :  { %10095 = vmatprep.subr.bf16.mxu1 %v12824_v45 }
 0x90a   :  { %10097 = vmatpush3.bf16.msra.mxu1 %v12256_v48  ;;  %v10108_v48 = vpack.c.bf16 %v12878_v11, %v12877_v41 }
 0x90b   :  { %10098 = vmatprep.subr.bf16.mxu1 %v12824_v45 }
 0x90e   :  { %10100 = vmatpush3.bf16.msra.mxu1 %v12274_v2  ;;  %v10111_v2 = vpack.c.bf16 %v12880_v6, %v12879_v21 }
 0x90f   :  { %10101 = vmatprep.subr.bf16.mxu1 %v12824_v45 }
 0x912   :  { %10103 = vmatpush3.bf16.msra.mxu1 %v12293_v34  ;;  %v12883_v34 = vand.u32 4294901760, %v12040_v25  ;;  %v12890_v25 = vand.u32 4294901760, %v12867_v47  ;;  %v12899_v47 = vand.u32 4294901760, %v12898_v62 }
 0x913   :  { %10104 = vmatprep.subr.bf16.mxu1 %v12824_v45 }
 0x914   :  { %v10117_v55 = vpack.c.bf16 %v12884_v32, %v12883_v34  ;;  %v10126_v35 = vpack.c.bf16 %v12890_v25, %v12889_v10  ;;  %v7777_v31 = vsub.f32 %v12898_v62, %v12899_v47 }
 0x915   :  { %9270 = vmatmul.mubr.f32.vlgmr.msra.gmra.mrb[28].mxu1 %v11909_v39  ;;  %v12881_v39 = vand.u32 4294901760, %v12014_v29  ;;  %v12888_v29 = vand.u32 4294901760, %v12865_v56  ;;  %v7771_v56 = vand.u32 4294901760, %v7770_v33 }
 0x916   :  { %10106 = vmatpush3.bf16.msra.mxu1 %v10105_v16  ;;  %9304 = vmatprep.mubr.msk.f32.mxu1 %vm10358_vm4, %v12828_v43  ;;  %v7778_v14 = vand.u32 4294901760, %v7777_v31 }
 0x917   :  { %10107 = vmatprep.subr.bf16.mxu1 %v12824_v45  ;;  %v10114_v5 = vpack.c.bf16 %v12882_v59, %v12881_v39  ;;  %v10123_v54 = vpack.c.bf16 %v12888_v29, %v12887_v28 }
 0x918   :  { %v10162_v12 = vpack.c.bf16 %v7785_v51, %v7778_v14 }
 0x91a   :  { %10109 = vmatpush3.bf16.msra.mxu1 %v10108_v48 }
 0x91b   :  { %10110 = vmatprep.subr.bf16.mxu1 %v12824_v45 }
 0x91e   :  { %10112 = vmatpush3.bf16.msra.mxu1 %v10111_v2 }
 0x91f   :  { %10113 = vmatprep.subr.bf16.mxu1 %v12824_v45 }
 0x922   :  { %10115 = vmatpush3.bf16.msra.mxu1 %v10114_v5 }
 0x923   :  { %10116 = vmatprep.subr.bf16.mxu1 %v12824_v45 }
 0x926   :  { %10118 = vmatpush3.bf16.msra.mxu1 %v10117_v55 }
 0x927   :  { %10119 = vmatprep.subr.bf16.mxu1 %v12824_v45 }
 0x92a   :  { %10121 = vmatpush3.bf16.msra.mxu1 %v10120_v20 }
 0x92b   :  { %10122 = vmatprep.subr.bf16.mxu1 %v12824_v45 }
 0x92e   :  { %10124 = vmatpush3.bf16.msra.mxu1 %v10123_v54 }
 0x92f   :  { %10125 = vmatprep.subr.bf16.mxu1 %v12824_v45 }
 0x932   :  { %10127 = vmatpush3.bf16.msra.mxu1 %v10126_v35 }
 0x933   :  { %10152 = vmatprep.subr.bf16.mxu1 %v12824_v45 }
 0x935   :  { %9305 = vmatmul.mubr.f32.vlgmr.msra.gmra.mrb[30].mxu1 %v11903_v36  ;;  %v10159_v36 = vpack.c.bf16 %v7771_v56, %v7764_v49  ;;  %v8166_v49 = vld [vmem:[%s12730_s5 + $0x400] ss:$0 sm:$0xff] }
 0x936   :  { %10154 = vmatpush3.bf16.msra.mxu1 %v10153_v46  ;;  %9350 = vmatprep.mubr.msk.f32.mxu1 %vm10358_vm4, %v12828_v43 }
 0x937   :  { %10155 = vmatprep.subr.bf16.mxu1 %v12824_v45 }
 0x93a   :  { %10157 = vmatpush3.bf16.msra.mxu1 %v10156_v61 }
 0x93b   :  { %10158 = vmatprep.subr.bf16.mxu1 %v12824_v45 }
 0x93d   :  { %9351 = vmatmul.mubr.f32.vlgmr.msra.gmra.mrb[32].mxu1 %v12902_v40 }
 0x93e   :  { %10160 = vmatpush3.bf16.msra.mxu1 %v10159_v36  ;;  %9361 = vmatprep.mubr.msk.f32.mxu1 %vm10358_vm4, %v12828_v43 }
 0x93f   :  { %10161 = vmatprep.subr.bf16.mxu1 %v12824_v45 }
 0x940   :  { %v6625_v37 = vpop.f32.mrb[10].mxu1 }
 0x941   :  { %v9076_v44 = vpop.f32.mrb[11].mxu1 }
 0x942   :  { %10163 = vmatpush3.bf16.msra.mxu1 %v10162_v12 }
 0x943   :  { %10170 = vmatprep.subr.bf16.mxu1 %v12824_v45 }
 0x945   :  { %9362 = vmatmul.mubr.f32.vlgmr.msra.gmra.mrb[34].mxu1 %v12903_v53 }
 0x946   :  { %10172 = vmatpush3.bf16.msra.mxu1 %v10153_v46  ;;  %9383 = vmatprep.mubr.msk.f32.mxu1 %vm10358_vm4, %v12828_v43 }
 0x947   :  { %10173 = vmatprep.subr.bf16.mxu1 %v12824_v45 }
 0x948   :  { %v6716_v18 = vpop.f32.mrb[12].mxu1 }
 0x949   :  { %v6717_v57 = vadd.f32 %v6716_v18, %v6625_v37  ;;  %v9087_v58 = vpop.f32.mrb[13].mxu1 }
 0x94a   :  { %10175 = vmatpush3.bf16.msra.mxu1 %v10156_v61 }
 0x94b   :  { %10182 = vmatprep.subr.bf16.mxu1 %v12824_v45 }
 0x94d   :  { %9384 = vmatmul.mubr.f32.vlgmr.msra.gmra.mrb[36].mxu1 %v12904_v60 }
 0x94e   :  { %10184 = vmatpush3.bf16.msra.mxu1 %v10153_v46  ;;  %9405 = vmatprep.mubr.msk.f32.mxu1 %vm10358_vm4, %v12828_v43 }
 0x94f   :  { %10185 = vmatprep.subr.bf16.mxu1 %v12824_v45 }
 0x950   :  { %v6796_v13 = vpop.f32.mrb[14].mxu1 }
 0x951   :  { %v6797_v42 = vadd.f32 %v6796_v13, %v6717_v57  ;;  %v9098_v15 = vpop.f32.mrb[15].mxu1 }
 0x952   :  { %10187 = vmatpush3.bf16.msra.mxu1 %v10156_v61 }
 0x955   :  { %9406 = vmatmul.mubr.f32.vlgmr.msra.gmra.mrb[38].mxu1 %v12903_v53 }
 0x958   :  { %v6873_v24 = vpop.f32.mrb[16].mxu1 }
 0x959   :  { %v6874_v22 = vadd.f32 %v6873_v24, %v6797_v42  ;;  %v9109_v8 = vpop.f32.mrb[17].mxu1 }
 0x960   :  { %v6956_v16 = vpop.f32.mrb[18].mxu1 }
 0x961   :  { %v6957_v41 = vadd.f32 %v6956_v16, %v6874_v22  ;;  %v9120_v11 = vpop.f32.mrb[19].mxu1 }
 0x968   :  { %v7031_v48 = vpop.f32.mrb[20].mxu1 }
 0x969   :  { %v7032_v21 = vadd.f32 %v7031_v48, %v6957_v41  ;;  %v9131_v6 = vpop.f32.mrb[21].mxu1 }
 0x988   :  { %v7122_v2 = vpop.f32.mrb[22].mxu1 }
 0x989   :  { %v7123_v39 = vadd.f32 %v7122_v2, %v7032_v21  ;;  %v9166_v43 = vpop.f32.mrb[23].mxu1 }
 0x9a8   :  { %v7273_v59 = vpop.f32.mrb[24].mxu1 }
 0x9a9   :  { %v7274_v45 = vadd.f32 %v7273_v59, %v7123_v39  ;;  %v9201_v5 = vpop.f32.mrb[25].mxu1 }
 0x9c8   :  { %v7377_v34 = vpop.f32.mrb[26].mxu1 }
 0x9c9   :  { %v7378_v32 = vadd.f32 %v7377_v34, %v7274_v45  ;;  %v9236_v55 = vpop.f32.mrb[27].mxu1 }
 0x9e8   :  { %v7466_v63 = vpop.f32.mrb[28].mxu1 }
 0x9e9   :  { %v7467_v17 = vadd.f32 %v7466_v63, %v7378_v32  ;;  %v9271_v20 = vpop.f32.mrb[29].mxu1 }
 0xa08   :  { %v7585_v28 = vpop.f32.mrb[30].mxu1 }
 0xa09   :  { %v7586_v29 = vadd.f32 %v7585_v28, %v7467_v17  ;;  %v9306_v54 = vpop.f32.mrb[31].mxu1 }
 0xa0b   :  { %v7673_v10 = vadd.f32 %v12499_v50, %v7586_v29 }
 0xa10   :  { %v7755_v25 = vpop.f32.mrb[32].mxu1 }
 0xa11   :  { %v9352_v35 = vpop.f32.mrb[33].mxu1 }
 0xa18   :  { %v7846_v9 = vpop.f32.mrb[34].mxu1 }
 0xa19   :  { %v7847_v27 = vadd.f32 %v7846_v9, %v7755_v25  ;;  %v9363_v46 = vpop.f32.mrb[35].mxu1 }
 0xa1b   :  { %v7927_v7 = vadd.f32 %v12511_v52, %v7847_v27 }
 0xa20   :  { %v8003_v30 = vpop.f32.mrb[36].mxu1 }
 0xa21   :  { %v8004_v3 = vadd.f32 %v8003_v30, %v7927_v7  ;;  %v9385_v33 = vpop.f32.mrb[37].mxu1 }
 0xa23   :  { %v8087_v26 = vadd.f32 %v12519_v4, %v8004_v3 }
 0xa28   :  { %v8161_v1 = vpop.f32.mrb[38].mxu1 }
 0xa29   :  { %v8162_v38 = vadd.f32 %v8161_v1, %v8087_v26  ;;  %v9407_v61 = vpop.f32.mrb[39].mxu1 }
 0xa2b   :  { %v8165_v50 = vadd.f32 %v8162_v38, %v7673_v10 }
 0xa2d   :  { %v8167_v56 = vadd.f32 %v8166_v49, %v8165_v50 }
 0xa2f   :  { %8168 = vst [vmem:[#allocation2] sm:$0xff] %v8167_v56 }
 0xa30   :  { %10343 = shalt.err (!%p10340_p4)
}
 0xa31   :  { %s10344_s1 = scalar_lea.hbm %s12731_s6, 128 }
 0xa32   :  { %p10345_p5 = scmp.ne.s32.totalorder %s12731_s6, %s10344_s1  ;;  %p10348_p6 = scmp.lt.u32.totalorder %s10344_s1, %s12731_s6 }
 0xa34   :  { %p10350_p7 = pnand %p10348_p6, %p10345_p5 }
 0xa36   :  { %10353 = shalt.err (!%p10350_p7)
}
 0xa37   :  { %8178 = dma.vmem_to_hbm [thread:$0]  %s8176_s4, 128, %s12731_s6, [#allocation3]  }
 0xa38   :  { %10354 = dma.done.wait [#allocation3], 128  }
 0xa39   :  { %10355 = vsyncadd [#allocation3], 4294967168 }
 0xa3a   :  { %8182 = vsyncpa [#allocation3], 1 }

</bundles_post_ra>
